<compile_context>
chip_gen: v7x
topology: tpu7x:2x2x1
jax: 0.10.0
libtpu: 0.0.40
codegen_flags: <defaults>
</compile_context>

<pallas_src>
import functools

import jax
import jax.numpy as jnp
from jax.experimental import pallas as pl
from jax.experimental.pallas import tpu as pltpu

HIDDEN = 128          # self.size == self.embedding_dim == 128
NUM_LAYERS = 3


# ----------------------------------------------------------------------------
# Fused kernel: 3 stacked LSTM layers + final linear projection.
# Single grid point; the whole problem (a few hundred KB) lives in VMEM.
# ----------------------------------------------------------------------------
def fused_lstm_fc_kernel(x_ref, wih_ref, whh_ref, b_ref, h0_ref, c0_ref,
                         fcw_ref, fcb_ref,
                         logits_ref, hN_ref, cN_ref,
                         act_scr, *, seq_len, batch):
    H = HIDDEN
    T, B = seq_len, batch

    # Layer-0 input sequence, flattened (T*B, H), resident in VMEM scratch.
    act_scr[...] = x_ref[...]

    for l in range(NUM_LAYERS):                       # static: 3 layers fused
        w_ih = wih_ref[l]                             # (H, 4H)  bf16
        w_hh = whh_ref[l]                             # (H, 4H)  bf16

        # Hoisted input projection: one batched (T*B, H) @ (H, 4H) matmul,
        # bias (b_ih + b_hh) folded in.  fp32 accumulation.
        pre = (jnp.dot(act_scr[...].astype(jnp.bfloat16), w_ih,
                       preferred_element_type=jnp.float32)
               + b_ref[l])                            # (T*B, 4H) fp32

        h = h0_ref[l]                                 # (B, H) fp32
        c = c0_ref[l]                                 # (B, H) fp32

        # Time recurrence, fully unrolled (static trip count); only the
        # (B, H) @ (H, 4H) recurrent matmul is serially dependent.
        for t in range(T):
            gates = pre[t * B:(t + 1) * B, :] + jnp.dot(
                h.astype(jnp.bfloat16), w_hh,
                preferred_element_type=jnp.float32)   # (B, 4H) fp32

            i_g = jax.nn.sigmoid(gates[:, 0 * H:1 * H])   # PyTorch order: i,f,g,o
            f_g = jax.nn.sigmoid(gates[:, 1 * H:2 * H])
            g_g = jnp.tanh(gates[:, 2 * H:3 * H])
            o_g = jax.nn.sigmoid(gates[:, 3 * H:4 * H])

            c = f_g * c + i_g * g_g
            h = o_g * jnp.tanh(c)

            # Layer output becomes next layer's input (sublane-aligned rows).
            act_scr[t * B:(t + 1) * B, :] = h

        # Final state written unconditionally for each layer.
        hN_ref[l] = h
        cN_ref[l] = c
        # TODO(synk): inter-layer dropout(p=0.2) is training-only in nn.LSTM;
        # omitted (eval forward).

    # Fused final FC on the VMEM-resident last-layer outputs.
    logits_ref[...] = (jnp.dot(act_scr[...].astype(jnp.bfloat16), fcw_ref[...],
                               preferred_element_type=jnp.float32)
                       + fcb_ref[...])


def fused_forward(embed2d, w_ih_t, w_hh_t, bias, h0, c0, fc_w_t, fc_b,
                  *, seq_len, batch):
    TB, H = embed2d.shape
    V = fc_w_t.shape[1]
    kernel = functools.partial(fused_lstm_fc_kernel,
                               seq_len=seq_len, batch=batch)
    logits2d, hN, cN = pl.pallas_call(
        kernel,
        out_shape=(jax.ShapeDtypeStruct((TB, V), jnp.float32),
                   jax.ShapeDtypeStruct((NUM_LAYERS, batch, H), jnp.float32),
                   jax.ShapeDtypeStruct((NUM_LAYERS, batch, H), jnp.float32)),
        grid=(1,),
        in_specs=[
            pl.BlockSpec((TB, H), lambda i: (0, 0)),                    # embed (T*B, H)
            pl.BlockSpec((NUM_LAYERS, H, 4 * H), lambda i: (0, 0, 0)),  # W_ih^T (bf16)
            pl.BlockSpec((NUM_LAYERS, H, 4 * H), lambda i: (0, 0, 0)),  # W_hh^T (bf16)
            pl.BlockSpec((NUM_LAYERS, 1, 4 * H), lambda i: (0, 0, 0)),  # b_ih + b_hh
            pl.BlockSpec((NUM_LAYERS, batch, H), lambda i: (0, 0, 0)),  # h0
            pl.BlockSpec((NUM_LAYERS, batch, H), lambda i: (0, 0, 0)),  # c0
            pl.BlockSpec((H, V), lambda i: (0, 0)),                     # fc W^T (bf16)
            pl.BlockSpec((1, V), lambda i: (0, 0)),                     # fc bias
        ],
        out_specs=[
            pl.BlockSpec((TB, V), lambda i: (0, 0)),                    # logits
            pl.BlockSpec((NUM_LAYERS, batch, H), lambda i: (0, 0, 0)),  # h_T
            pl.BlockSpec((NUM_LAYERS, batch, H), lambda i: (0, 0, 0)),  # c_T
        ],
        scratch_shapes=[pltpu.VMEM((TB, H), jnp.float32)],
        compiler_params=pltpu.CompilerParams(
            dimension_semantics=("arbitrary",)),      # recurrence => sequential
    )(embed2d, w_ih_t, w_hh_t, bias, h0, c0, fc_w_t, fc_b)
    return logits2d, hN, cN


# ----------------------------------------------------------------------------
# Parameters (deterministic init; matches PyTorch shapes: W_ih (4H, in),
# W_hh (4H, H), b_ih/b_hh (4H,), embedding (n_vocab, 128), fc (n_vocab, 128)).
# Matmul weights are pre-transposed and stored in bf16 (fp32 accumulation in
# the kernel); biases and embedding stay fp32.
# ----------------------------------------------------------------------------
def init_params(key, n_vocab):
    H = HIDDEN
    k = 1.0 / jnp.sqrt(jnp.float32(H))
    keys = jax.random.split(key, 2 + 4 * NUM_LAYERS + 2)
    params = {}
    params["embedding"] = jax.random.normal(keys[0], (n_vocab, H), jnp.float32)

    w_ih_t, w_hh_t, bias = [], [], []
    for l in range(NUM_LAYERS):
        k0, k1, k2, k3 = keys[1 + 4 * l: 5 + 4 * l]
        w_ih = jax.random.uniform(k0, (4 * H, H), jnp.float32, -k, k)
        w_hh = jax.random.uniform(k1, (4 * H, H), jnp.float32, -k, k)
        b_ih = jax.random.uniform(k2, (4 * H,), jnp.float32, -k, k)
        b_hh = jax.random.uniform(k3, (4 * H,), jnp.float32, -k, k)
        w_ih_t.append(w_ih.T)                          # (H, 4H)
        w_hh_t.append(w_hh.T)                          # (H, 4H)
        bias.append((b_ih + b_hh).reshape(1, 4 * H))   # (1, 4H)
    params["w_ih_t"] = jnp.stack(w_ih_t).astype(jnp.bfloat16)
    params["w_hh_t"] = jnp.stack(w_hh_t).astype(jnp.bfloat16)
    params["bias"] = jnp.stack(bias)                   # fp32

    kf0, kf1 = keys[-2:]
    fc_w = jax.random.uniform(kf0, (n_vocab, H), jnp.float32, -k, k)
    fc_b = jax.random.uniform(kf1, (n_vocab,), jnp.float32, -k, k)
    params["fc_w_t"] = fc_w.T.astype(jnp.bfloat16)     # (H, n_vocab)
    params["fc_b"] = fc_b.reshape(1, n_vocab)          # fp32
    return params


@jax.jit
def rnn_model_forward(x_tokens, params, prev_state):
    """Equivalent of RNN_model.forward(x, prev_state) with rnn_model='LSTM'."""
    h0, c0 = prev_state                                # each (3, B, H)
    T, B = x_tokens.shape
    H = HIDDEN
    V = params["fc_w_t"].shape[1]

    embed = jnp.take(params["embedding"], x_tokens, axis=0)   # (T, B, H) glue gather
    embed2d = embed.reshape(T * B, H)

    logits2d, hN, cN = fused_forward(
        embed2d, params["w_ih_t"], params["w_hh_t"], params["bias"],
        h0, c0, params["fc_w_t"], params["fc_b"],
        seq_len=T, batch=B)

    logits = logits2d.reshape(T, B, V)
    return logits, (hN, cN)


if __name__ == "__main__":
    n_vocab = 256
    seq_len = 8
    batch = 8

    key = jax.random.PRNGKey(0)
    kp, kx = jax.random.split(key)
    params = init_params(kp, n_vocab)

    x_tokens = jax.random.randint(kx, (seq_len, batch), 0, n_vocab, dtype=jnp.int32)
    prev_state = (jnp.zeros((NUM_LAYERS, batch, HIDDEN), jnp.float32),
                  jnp.zeros((NUM_LAYERS, batch, HIDDEN), jnp.float32))

    logits, (hN, cN) = rnn_model_forward(x_tokens, params, prev_state)
    jax.block_until_ready((logits, hN, cN))

    assert logits.shape == (seq_len, batch, n_vocab)
    assert hN.shape == (NUM_LAYERS, batch, HIDDEN)
    assert cN.shape == (NUM_LAYERS, batch, HIDDEN)
    assert bool(jnp.all(jnp.isfinite(logits)))
    assert bool(jnp.all(jnp.isfinite(hN))) and bool(jnp.all(jnp.isfinite(cN)))
    print("KERNEL_OK")
</pallas_src>

<mosaic_0001>
module attributes {stable_mosaic.version = 11 : i64} {
  func.func @fused_lstm_fc_kernel(%arg0: i32, %arg1: memref<64x128xf32, #tpu.memory_space<vmem>>, %arg2: memref<3x128x512xbf16, #tpu.memory_space<vmem>>, %arg3: memref<3x128x512xbf16, #tpu.memory_space<vmem>>, %arg4: memref<3x1x512xf32, #tpu.memory_space<vmem>>, %arg5: memref<3x8x128xf32, #tpu.memory_space<vmem>>, %arg6: memref<3x8x128xf32, #tpu.memory_space<vmem>>, %arg7: memref<128x256xbf16, #tpu.memory_space<vmem>>, %arg8: memref<1x256xf32, #tpu.memory_space<vmem>>, %arg9: memref<64x256xf32, #tpu.memory_space<vmem>>, %arg10: memref<3x8x128xf32, #tpu.memory_space<vmem>>, %arg11: memref<3x8x128xf32, #tpu.memory_space<vmem>>, %arg12: memref<64x128xf32, #tpu.memory_space<vmem>>) attributes {dimension_semantics = [#tpu.dimension_semantics<arbitrary>], iteration_bounds = array<i64: 1>, scalar_prefetch = 0 : i64, scratch_operands = 1 : i64, tpu.core_type = #tpu.core_type<tc>, window_params = [{pipeline_mode = #tpu.pipeline_mode<synchronous>, transform_indices = @transform_0, window_bounds = array<i64: 64, 128>}, {pipeline_mode = #tpu.pipeline_mode<synchronous>, transform_indices = @transform_1, window_bounds = array<i64: 3, 128, 512>}, {pipeline_mode = #tpu.pipeline_mode<synchronous>, transform_indices = @transform_2, window_bounds = array<i64: 3, 128, 512>}, {pipeline_mode = #tpu.pipeline_mode<synchronous>, transform_indices = @transform_3, window_bounds = array<i64: 3, 1, 512>}, {pipeline_mode = #tpu.pipeline_mode<synchronous>, transform_indices = @transform_4, window_bounds = array<i64: 3, 8, 128>}, {pipeline_mode = #tpu.pipeline_mode<synchronous>, transform_indices = @transform_5, window_bounds = array<i64: 3, 8, 128>}, {pipeline_mode = #tpu.pipeline_mode<synchronous>, transform_indices = @transform_6, window_bounds = array<i64: 128, 256>}, {pipeline_mode = #tpu.pipeline_mode<synchronous>, transform_indices = @transform_7, window_bounds = array<i64: 1, 256>}, {pipeline_mode = #tpu.pipeline_mode<synchronous>, transform_indices = @transform_8, window_bounds = array<i64: 64, 256>}, {pipeline_mode = #tpu.pipeline_mode<synchronous>, transform_indices = @transform_9, window_bounds = array<i64: 3, 8, 128>}, {pipeline_mode = #tpu.pipeline_mode<synchronous>, transform_indices = @transform_10, window_bounds = array<i64: 3, 8, 128>}]} {
    %c0 = arith.constant 0 : index
    %c0_0 = arith.constant 0 : index
    %0 = vector.load %arg1[%c0, %c0_0] : memref<64x128xf32, #tpu.memory_space<vmem>>, vector<64x128xf32>
    %c0_1 = arith.constant 0 : index
    %c0_2 = arith.constant 0 : index
    %1 = vector.load %arg12[%c0_1, %c0_2] : memref<64x128xf32, #tpu.memory_space<vmem>>, vector<64x128xf32>
    tpu.vector_store %arg12[%c0_1, %c0_2], %0 {strides = array<i32>} : memref<64x128xf32, #tpu.memory_space<vmem>>, vector<64x128xf32>,
    %c0_3 = arith.constant 0 : index
    %c0_4 = arith.constant 0 : index
    %c0_5 = arith.constant 0 : index
    %2 = vector.load %arg2[%c0_3, %c0_4, %c0_5] : memref<3x128x512xbf16, #tpu.memory_space<vmem>>, vector<1x128x512xbf16>
    %3 = vector.shape_cast %2 : vector<1x128x512xbf16> to vector<128x512xbf16>
    %c0_6 = arith.constant 0 : index
    %c0_7 = arith.constant 0 : index
    %c0_8 = arith.constant 0 : index
    %4 = vector.load %arg3[%c0_6, %c0_7, %c0_8] : memref<3x128x512xbf16, #tpu.memory_space<vmem>>, vector<1x128x512xbf16>
    %5 = vector.shape_cast %4 : vector<1x128x512xbf16> to vector<128x512xbf16>
    %c0_9 = arith.constant 0 : index
    %c0_10 = arith.constant 0 : index
    %6 = vector.load %arg12[%c0_9, %c0_10] : memref<64x128xf32, #tpu.memory_space<vmem>>, vector<64x128xf32>
    %7 = arith.truncf %6 : vector<64x128xf32> to vector<64x128xbf16>
    %cst = arith.constant dense<0.000000e+00> : vector<64x512xf32>
    %8 = tpu.matmul %7, %3, %cst {dimension_numbers = #tpu.dot_dimension_numbers<[1], [0], [0], [1], [0, 0, 1, 1], [], []>} : vector<64x128xbf16>, vector<128x512xbf16>, vector<64x512xf32> -> vector<64x512xf32>
    %c0_11 = arith.constant 0 : index
    %c0_12 = arith.constant 0 : index
    %c0_13 = arith.constant 0 : index
    %9 = vector.load %arg4[%c0_11, %c0_12, %c0_13] : memref<3x1x512xf32, #tpu.memory_space<vmem>>, vector<1x1x512xf32>
    %10 = vector.shape_cast %9 : vector<1x1x512xf32> to vector<1x512xf32>
    %11 = vector.broadcast %10 : vector<1x512xf32> to vector<64x512xf32>
    %12 = arith.addf %8, %11 : vector<64x512xf32>
    %c0_14 = arith.constant 0 : index
    %c0_15 = arith.constant 0 : index
    %c0_16 = arith.constant 0 : index
    %13 = vector.load %arg5[%c0_14, %c0_15, %c0_16] : memref<3x8x128xf32, #tpu.memory_space<vmem>>, vector<1x8x128xf32>
    %14 = vector.shape_cast %13 : vector<1x8x128xf32> to vector<8x128xf32>
    %c0_17 = arith.constant 0 : index
    %c0_18 = arith.constant 0 : index
    %c0_19 = arith.constant 0 : index
    %15 = vector.load %arg6[%c0_17, %c0_18, %c0_19] : memref<3x8x128xf32, #tpu.memory_space<vmem>>, vector<1x8x128xf32>
    %16 = vector.shape_cast %15 : vector<1x8x128xf32> to vector<8x128xf32>
    %17 = vector.extract_strided_slice %12 {offsets = [0, 0], sizes = [8, 512], strides = [1, 1]} : vector<64x512xf32> to vector<8x512xf32>
    %18 = arith.truncf %14 : vector<8x128xf32> to vector<8x128xbf16>
    %cst_20 = arith.constant dense<0.000000e+00> : vector<8x512xf32>
    %19 = tpu.matmul %18, %5, %cst_20 {dimension_numbers = #tpu.dot_dimension_numbers<[1], [0], [0], [1], [0, 0, 1, 1], [], []>} : vector<8x128xbf16>, vector<128x512xbf16>, vector<8x512xf32> -> vector<8x512xf32>
    %20 = arith.addf %17, %19 : vector<8x512xf32>
    %21 = vector.extract_strided_slice %20 {offsets = [0, 0], sizes = [8, 128], strides = [1, 1]} : vector<8x512xf32> to vector<8x128xf32>
    %22 = arith.negf %21 : vector<8x128xf32>
    %23 = math.exp %22 : vector<8x128xf32>
    %cst_21 = arith.constant 1.000000e+00 : f32
    %24 = vector.broadcast %cst_21 : f32 to vector<8x128xf32>
    %25 = arith.addf %24, %23 : vector<8x128xf32>
    %26 = arith.divf %24, %25 : vector<8x128xf32>
    %27 = vector.extract_strided_slice %20 {offsets = [0, 128], sizes = [8, 128], strides = [1, 1]} : vector<8x512xf32> to vector<8x128xf32>
    %28 = arith.negf %27 : vector<8x128xf32>
    %29 = math.exp %28 : vector<8x128xf32>
    %cst_22 = arith.constant 1.000000e+00 : f32
    %30 = vector.broadcast %cst_22 : f32 to vector<8x128xf32>
    %31 = arith.addf %30, %29 : vector<8x128xf32>
    %32 = arith.divf %30, %31 : vector<8x128xf32>
    %33 = vector.extract_strided_slice %20 {offsets = [0, 256], sizes = [8, 128], strides = [1, 1]} : vector<8x512xf32> to vector<8x128xf32>
    %34 = math.tanh %33 : vector<8x128xf32>
    %35 = vector.extract_strided_slice %20 {offsets = [0, 384], sizes = [8, 128], strides = [1, 1]} : vector<8x512xf32> to vector<8x128xf32>
    %36 = arith.negf %35 : vector<8x128xf32>
    %37 = math.exp %36 : vector<8x128xf32>
    %cst_23 = arith.constant 1.000000e+00 : f32
    %38 = vector.broadcast %cst_23 : f32 to vector<8x128xf32>
    %39 = arith.addf %38, %37 : vector<8x128xf32>
    %40 = arith.divf %38, %39 : vector<8x128xf32>
    %41 = arith.mulf %32, %16 : vector<8x128xf32>
    %42 = arith.mulf %26, %34 : vector<8x128xf32>
    %43 = arith.addf %41, %42 : vector<8x128xf32>
    %44 = math.tanh %43 : vector<8x128xf32>
    %45 = arith.mulf %40, %44 : vector<8x128xf32>
    %c0_24 = arith.constant 0 : index
    %c0_25 = arith.constant 0 : index
    %46 = vector.load %arg12[%c0_24, %c0_25] : memref<64x128xf32, #tpu.memory_space<vmem>>, vector<8x128xf32>
    tpu.vector_store %arg12[%c0_24, %c0_25], %45 {strides = array<i32>} : memref<64x128xf32, #tpu.memory_space<vmem>>, vector<8x128xf32>,
    %47 = vector.extract_strided_slice %12 {offsets = [8, 0], sizes = [8, 512], strides = [1, 1]} : vector<64x512xf32> to vector<8x512xf32>
    %48 = arith.truncf %45 : vector<8x128xf32> to vector<8x128xbf16>
    %cst_26 = arith.constant dense<0.000000e+00> : vector<8x512xf32>
    %49 = tpu.matmul %48, %5, %cst_26 {dimension_numbers = #tpu.dot_dimension_numbers<[1], [0], [0], [1], [0, 0, 1, 1], [], []>} : vector<8x128xbf16>, vector<128x512xbf16>, vector<8x512xf32> -> vector<8x512xf32>
    %50 = arith.addf %47, %49 : vector<8x512xf32>
    %51 = vector.extract_strided_slice %50 {offsets = [0, 0], sizes = [8, 128], strides = [1, 1]} : vector<8x512xf32> to vector<8x128xf32>
    %52 = arith.negf %51 : vector<8x128xf32>
    %53 = math.exp %52 : vector<8x128xf32>
    %cst_27 = arith.constant 1.000000e+00 : f32
    %54 = vector.broadcast %cst_27 : f32 to vector<8x128xf32>
    %55 = arith.addf %54, %53 : vector<8x128xf32>
    %56 = arith.divf %54, %55 : vector<8x128xf32>
    %57 = vector.extract_strided_slice %50 {offsets = [0, 128], sizes = [8, 128], strides = [1, 1]} : vector<8x512xf32> to vector<8x128xf32>
    %58 = arith.negf %57 : vector<8x128xf32>
    %59 = math.exp %58 : vector<8x128xf32>
    %cst_28 = arith.constant 1.000000e+00 : f32
    %60 = vector.broadcast %cst_28 : f32 to vector<8x128xf32>
    %61 = arith.addf %60, %59 : vector<8x128xf32>
    %62 = arith.divf %60, %61 : vector<8x128xf32>
    %63 = vector.extract_strided_slice %50 {offsets = [0, 256], sizes = [8, 128], strides = [1, 1]} : vector<8x512xf32> to vector<8x128xf32>
    %64 = math.tanh %63 : vector<8x128xf32>
    %65 = vector.extract_strided_slice %50 {offsets = [0, 384], sizes = [8, 128], strides = [1, 1]} : vector<8x512xf32> to vector<8x128xf32>
    %66 = arith.negf %65 : vector<8x128xf32>
    %67 = math.exp %66 : vector<8x128xf32>
    %cst_29 = arith.constant 1.000000e+00 : f32
    %68 = vector.broadcast %cst_29 : f32 to vector<8x128xf32>
    %69 = arith.addf %68, %67 : vector<8x128xf32>
    %70 = arith.divf %68, %69 : vector<8x128xf32>
    %71 = arith.mulf %62, %43 : vector<8x128xf32>
    %72 = arith.mulf %56, %64 : vector<8x128xf32>
    %73 = arith.addf %71, %72 : vector<8x128xf32>
    %74 = math.tanh %73 : vector<8x128xf32>
    %75 = arith.mulf %70, %74 : vector<8x128xf32>
    %c8 = arith.constant 8 : index
    %c0_30 = arith.constant 0 : index
    %76 = vector.load %arg12[%c8, %c0_30] : memref<64x128xf32, #tpu.memory_space<vmem>>, vector<8x128xf32>
    tpu.vector_store %arg12[%c8, %c0_30], %75 {strides = array<i32>} : memref<64x128xf32, #tpu.memory_space<vmem>>, vector<8x128xf32>,
    %77 = vector.extract_strided_slice %12 {offsets = [16, 0], sizes = [8, 512], strides = [1, 1]} : vector<64x512xf32> to vector<8x512xf32>
    %78 = arith.truncf %75 : vector<8x128xf32> to vector<8x128xbf16>
    %cst_31 = arith.constant dense<0.000000e+00> : vector<8x512xf32>
    %79 = tpu.matmul %78, %5, %cst_31 {dimension_numbers = #tpu.dot_dimension_numbers<[1], [0], [0], [1], [0, 0, 1, 1], [], []>} : vector<8x128xbf16>, vector<128x512xbf16>, vector<8x512xf32> -> vector<8x512xf32>
    %80 = arith.addf %77, %79 : vector<8x512xf32>
    %81 = vector.extract_strided_slice %80 {offsets = [0, 0], sizes = [8, 128], strides = [1, 1]} : vector<8x512xf32> to vector<8x128xf32>
    %82 = arith.negf %81 : vector<8x128xf32>
    %83 = math.exp %82 : vector<8x128xf32>
    %cst_32 = arith.constant 1.000000e+00 : f32
    %84 = vector.broadcast %cst_32 : f32 to vector<8x128xf32>
    %85 = arith.addf %84, %83 : vector<8x128xf32>
    %86 = arith.divf %84, %85 : vector<8x128xf32>
    %87 = vector.extract_strided_slice %80 {offsets = [0, 128], sizes = [8, 128], strides = [1, 1]} : vector<8x512xf32> to vector<8x128xf32>
    %88 = arith.negf %87 : vector<8x128xf32>
    %89 = math.exp %88 : vector<8x128xf32>
    %cst_33 = arith.constant 1.000000e+00 : f32
    %90 = vector.broadcast %cst_33 : f32 to vector<8x128xf32>
    %91 = arith.addf %90, %89 : vector<8x128xf32>
    %92 = arith.divf %90, %91 : vector<8x128xf32>
    %93 = vector.extract_strided_slice %80 {offsets = [0, 256], sizes = [8, 128], strides = [1, 1]} : vector<8x512xf32> to vector<8x128xf32>
    %94 = math.tanh %93 : vector<8x128xf32>
    %95 = vector.extract_strided_slice %80 {offsets = [0, 384], sizes = [8, 128], strides = [1, 1]} : vector<8x512xf32> to vector<8x128xf32>
    %96 = arith.negf %95 : vector<8x128xf32>
    %97 = math.exp %96 : vector<8x128xf32>
    %cst_34 = arith.constant 1.000000e+00 : f32
    %98 = vector.broadcast %cst_34 : f32 to vector<8x128xf32>
    %99 = arith.addf %98, %97 : vector<8x128xf32>
    %100 = arith.divf %98, %99 : vector<8x128xf32>
    %101 = arith.mulf %92, %73 : vector<8x128xf32>
    %102 = arith.mulf %86, %94 : vector<8x128xf32>
    %103 = arith.addf %101, %102 : vector<8x128xf32>
    %104 = math.tanh %103 : vector<8x128xf32>
    %105 = arith.mulf %100, %104 : vector<8x128xf32>
    %c16 = arith.constant 16 : index
    %c0_35 = arith.constant 0 : index
    %106 = vector.load %arg12[%c16, %c0_35] : memref<64x128xf32, #tpu.memory_space<vmem>>, vector<8x128xf32>
    tpu.vector_store %arg12[%c16, %c0_35], %105 {strides = array<i32>} : memref<64x128xf32, #tpu.memory_space<vmem>>, vector<8x128xf32>,
    %107 = vector.extract_strided_slice %12 {offsets = [24, 0], sizes = [8, 512], strides = [1, 1]} : vector<64x512xf32> to vector<8x512xf32>
    %108 = arith.truncf %105 : vector<8x128xf32> to vector<8x128xbf16>
    %cst_36 = arith.constant dense<0.000000e+00> : vector<8x512xf32>
    %109 = tpu.matmul %108, %5, %cst_36 {dimension_numbers = #tpu.dot_dimension_numbers<[1], [0], [0], [1], [0, 0, 1, 1], [], []>} : vector<8x128xbf16>, vector<128x512xbf16>, vector<8x512xf32> -> vector<8x512xf32>
    %110 = arith.addf %107, %109 : vector<8x512xf32>
    %111 = vector.extract_strided_slice %110 {offsets = [0, 0], sizes = [8, 128], strides = [1, 1]} : vector<8x512xf32> to vector<8x128xf32>
    %112 = arith.negf %111 : vector<8x128xf32>
    %113 = math.exp %112 : vector<8x128xf32>
    %cst_37 = arith.constant 1.000000e+00 : f32
    %114 = vector.broadcast %cst_37 : f32 to vector<8x128xf32>
    %115 = arith.addf %114, %113 : vector<8x128xf32>
    %116 = arith.divf %114, %115 : vector<8x128xf32>
    %117 = vector.extract_strided_slice %110 {offsets = [0, 128], sizes = [8, 128], strides = [1, 1]} : vector<8x512xf32> to vector<8x128xf32>
    %118 = arith.negf %117 : vector<8x128xf32>
    %119 = math.exp %118 : vector<8x128xf32>
    %cst_38 = arith.constant 1.000000e+00 : f32
    %120 = vector.broadcast %cst_38 : f32 to vector<8x128xf32>
    %121 = arith.addf %120, %119 : vector<8x128xf32>
    %122 = arith.divf %120, %121 : vector<8x128xf32>
    %123 = vector.extract_strided_slice %110 {offsets = [0, 256], sizes = [8, 128], strides = [1, 1]} : vector<8x512xf32> to vector<8x128xf32>
    %124 = math.tanh %123 : vector<8x128xf32>
    %125 = vector.extract_strided_slice %110 {offsets = [0, 384], sizes = [8, 128], strides = [1, 1]} : vector<8x512xf32> to vector<8x128xf32>
    %126 = arith.negf %125 : vector<8x128xf32>
    %127 = math.exp %126 : vector<8x128xf32>
    %cst_39 = arith.constant 1.000000e+00 : f32
    %128 = vector.broadcast %cst_39 : f32 to vector<8x128xf32>
    %129 = arith.addf %128, %127 : vector<8x128xf32>
    %130 = arith.divf %128, %129 : vector<8x128xf32>
    %131 = arith.mulf %122, %103 : vector<8x128xf32>
    %132 = arith.mulf %116, %124 : vector<8x128xf32>
    %133 = arith.addf %131, %132 : vector<8x128xf32>
    %134 = math.tanh %133 : vector<8x128xf32>
    %135 = arith.mulf %130, %134 : vector<8x128xf32>
    %c24 = arith.constant 24 : index
    %c0_40 = arith.constant 0 : index
    %136 = vector.load %arg12[%c24, %c0_40] : memref<64x128xf32, #tpu.memory_space<vmem>>, vector<8x128xf32>
    tpu.vector_store %arg12[%c24, %c0_40], %135 {strides = array<i32>} : memref<64x128xf32, #tpu.memory_space<vmem>>, vector<8x128xf32>,
    %137 = vector.extract_strided_slice %12 {offsets = [32, 0], sizes = [8, 512], strides = [1, 1]} : vector<64x512xf32> to vector<8x512xf32>
    %138 = arith.truncf %135 : vector<8x128xf32> to vector<8x128xbf16>
    %cst_41 = arith.constant dense<0.000000e+00> : vector<8x512xf32>
    %139 = tpu.matmul %138, %5, %cst_41 {dimension_numbers = #tpu.dot_dimension_numbers<[1], [0], [0], [1], [0, 0, 1, 1], [], []>} : vector<8x128xbf16>, vector<128x512xbf16>, vector<8x512xf32> -> vector<8x512xf32>
    %140 = arith.addf %137, %139 : vector<8x512xf32>
    %141 = vector.extract_strided_slice %140 {offsets = [0, 0], sizes = [8, 128], strides = [1, 1]} : vector<8x512xf32> to vector<8x128xf32>
    %142 = arith.negf %141 : vector<8x128xf32>
    %143 = math.exp %142 : vector<8x128xf32>
    %cst_42 = arith.constant 1.000000e+00 : f32
    %144 = vector.broadcast %cst_42 : f32 to vector<8x128xf32>
    %145 = arith.addf %144, %143 : vector<8x128xf32>
    %146 = arith.divf %144, %145 : vector<8x128xf32>
    %147 = vector.extract_strided_slice %140 {offsets = [0, 128], sizes = [8, 128], strides = [1, 1]} : vector<8x512xf32> to vector<8x128xf32>
    %148 = arith.negf %147 : vector<8x128xf32>
    %149 = math.exp %148 : vector<8x128xf32>
    %cst_43 = arith.constant 1.000000e+00 : f32
    %150 = vector.broadcast %cst_43 : f32 to vector<8x128xf32>
    %151 = arith.addf %150, %149 : vector<8x128xf32>
    %152 = arith.divf %150, %151 : vector<8x128xf32>
    %153 = vector.extract_strided_slice %140 {offsets = [0, 256], sizes = [8, 128], strides = [1, 1]} : vector<8x512xf32> to vector<8x128xf32>
    %154 = math.tanh %153 : vector<8x128xf32>
    %155 = vector.extract_strided_slice %140 {offsets = [0, 384], sizes = [8, 128], strides = [1, 1]} : vector<8x512xf32> to vector<8x128xf32>
    %156 = arith.negf %155 : vector<8x128xf32>
    %157 = math.exp %156 : vector<8x128xf32>
    %cst_44 = arith.constant 1.000000e+00 : f32
    %158 = vector.broadcast %cst_44 : f32 to vector<8x128xf32>
    %159 = arith.addf %158, %157 : vector<8x128xf32>
    %160 = arith.divf %158, %159 : vector<8x128xf32>
    %161 = arith.mulf %152, %133 : vector<8x128xf32>
    %162 = arith.mulf %146, %154 : vector<8x128xf32>
    %163 = arith.addf %161, %162 : vector<8x128xf32>
    %164 = math.tanh %163 : vector<8x128xf32>
    %165 = arith.mulf %160, %164 : vector<8x128xf32>
    %c32 = arith.constant 32 : index
    %c0_45 = arith.constant 0 : index
    %166 = vector.load %arg12[%c32, %c0_45] : memref<64x128xf32, #tpu.memory_space<vmem>>, vector<8x128xf32>
    tpu.vector_store %arg12[%c32, %c0_45], %165 {strides = array<i32>} : memref<64x128xf32, #tpu.memory_space<vmem>>, vector<8x128xf32>,
    %167 = vector.extract_strided_slice %12 {offsets = [40, 0], sizes = [8, 512], strides = [1, 1]} : vector<64x512xf32> to vector<8x512xf32>
    %168 = arith.truncf %165 : vector<8x128xf32> to vector<8x128xbf16>
    %cst_46 = arith.constant dense<0.000000e+00> : vector<8x512xf32>
    %169 = tpu.matmul %168, %5, %cst_46 {dimension_numbers = #tpu.dot_dimension_numbers<[1], [0], [0], [1], [0, 0, 1, 1], [], []>} : vector<8x128xbf16>, vector<128x512xbf16>, vector<8x512xf32> -> vector<8x512xf32>
    %170 = arith.addf %167, %169 : vector<8x512xf32>
    %171 = vector.extract_strided_slice %170 {offsets = [0, 0], sizes = [8, 128], strides = [1, 1]} : vector<8x512xf32> to vector<8x128xf32>
    %172 = arith.negf %171 : vector<8x128xf32>
    %173 = math.exp %172 : vector<8x128xf32>
    %cst_47 = arith.constant 1.000000e+00 : f32
    %174 = vector.broadcast %cst_47 : f32 to vector<8x128xf32>
    %175 = arith.addf %174, %173 : vector<8x128xf32>
    %176 = arith.divf %174, %175 : vector<8x128xf32>
    %177 = vector.extract_strided_slice %170 {offsets = [0, 128], sizes = [8, 128], strides = [1, 1]} : vector<8x512xf32> to vector<8x128xf32>
    %178 = arith.negf %177 : vector<8x128xf32>
    %179 = math.exp %178 : vector<8x128xf32>
    %cst_48 = arith.constant 1.000000e+00 : f32
    %180 = vector.broadcast %cst_48 : f32 to vector<8x128xf32>
    %181 = arith.addf %180, %179 : vector<8x128xf32>
    %182 = arith.divf %180, %181 : vector<8x128xf32>
    %183 = vector.extract_strided_slice %170 {offsets = [0, 256], sizes = [8, 128], strides = [1, 1]} : vector<8x512xf32> to vector<8x128xf32>
    %184 = math.tanh %183 : vector<8x128xf32>
    %185 = vector.extract_strided_slice %170 {offsets = [0, 384], sizes = [8, 128], strides = [1, 1]} : vector<8x512xf32> to vector<8x128xf32>
    %186 = arith.negf %185 : vector<8x128xf32>
    %187 = math.exp %186 : vector<8x128xf32>
    %cst_49 = arith.constant 1.000000e+00 : f32
    %188 = vector.broadcast %cst_49 : f32 to vector<8x128xf32>
    %189 = arith.addf %188, %187 : vector<8x128xf32>
    %190 = arith.divf %188, %189 : vector<8x128xf32>
    %191 = arith.mulf %182, %163 : vector<8x128xf32>
    %192 = arith.mulf %176, %184 : vector<8x128xf32>
    %193 = arith.addf %191, %192 : vector<8x128xf32>
    %194 = math.tanh %193 : vector<8x128xf32>
    %195 = arith.mulf %190, %194 : vector<8x128xf32>
    %c40 = arith.constant 40 : index
    %c0_50 = arith.constant 0 : index
    %196 = vector.load %arg12[%c40, %c0_50] : memref<64x128xf32, #tpu.memory_space<vmem>>, vector<8x128xf32>
    tpu.vector_store %arg12[%c40, %c0_50], %195 {strides = array<i32>} : memref<64x128xf32, #tpu.memory_space<vmem>>, vector<8x128xf32>,
    %197 = vector.extract_strided_slice %12 {offsets = [48, 0], sizes = [8, 512], strides = [1, 1]} : vector<64x512xf32> to vector<8x512xf32>
    %198 = arith.truncf %195 : vector<8x128xf32> to vector<8x128xbf16>
    %cst_51 = arith.constant dense<0.000000e+00> : vector<8x512xf32>
    %199 = tpu.matmul %198, %5, %cst_51 {dimension_numbers = #tpu.dot_dimension_numbers<[1], [0], [0], [1], [0, 0, 1, 1], [], []>} : vector<8x128xbf16>, vector<128x512xbf16>, vector<8x512xf32> -> vector<8x512xf32>
    %200 = arith.addf %197, %199 : vector<8x512xf32>
    %201 = vector.extract_strided_slice %200 {offsets = [0, 0], sizes = [8, 128], strides = [1, 1]} : vector<8x512xf32> to vector<8x128xf32>
    %202 = arith.negf %201 : vector<8x128xf32>
    %203 = math.exp %202 : vector<8x128xf32>
    %cst_52 = arith.constant 1.000000e+00 : f32
    %204 = vector.broadcast %cst_52 : f32 to vector<8x128xf32>
    %205 = arith.addf %204, %203 : vector<8x128xf32>
    %206 = arith.divf %204, %205 : vector<8x128xf32>
    %207 = vector.extract_strided_slice %200 {offsets = [0, 128], sizes = [8, 128], strides = [1, 1]} : vector<8x512xf32> to vector<8x128xf32>
    %208 = arith.negf %207 : vector<8x128xf32>
    %209 = math.exp %208 : vector<8x128xf32>
    %cst_53 = arith.constant 1.000000e+00 : f32
    %210 = vector.broadcast %cst_53 : f32 to vector<8x128xf32>
    %211 = arith.addf %210, %209 : vector<8x128xf32>
    %212 = arith.divf %210, %211 : vector<8x128xf32>
    %213 = vector.extract_strided_slice %200 {offsets = [0, 256], sizes = [8, 128], strides = [1, 1]} : vector<8x512xf32> to vector<8x128xf32>
    %214 = math.tanh %213 : vector<8x128xf32>
    %215 = vector.extract_strided_slice %200 {offsets = [0, 384], sizes = [8, 128], strides = [1, 1]} : vector<8x512xf32> to vector<8x128xf32>
    %216 = arith.negf %215 : vector<8x128xf32>
    %217 = math.exp %216 : vector<8x128xf32>
    %cst_54 = arith.constant 1.000000e+00 : f32
    %218 = vector.broadcast %cst_54 : f32 to vector<8x128xf32>
    %219 = arith.addf %218, %217 : vector<8x128xf32>
    %220 = arith.divf %218, %219 : vector<8x128xf32>
    %221 = arith.mulf %212, %193 : vector<8x128xf32>
    %222 = arith.mulf %206, %214 : vector<8x128xf32>
    %223 = arith.addf %221, %222 : vector<8x128xf32>
    %224 = math.tanh %223 : vector<8x128xf32>
    %225 = arith.mulf %220, %224 : vector<8x128xf32>
    %c48 = arith.constant 48 : index
    %c0_55 = arith.constant 0 : index
    %226 = vector.load %arg12[%c48, %c0_55] : memref<64x128xf32, #tpu.memory_space<vmem>>, vector<8x128xf32>
    tpu.vector_store %arg12[%c48, %c0_55], %225 {strides = array<i32>} : memref<64x128xf32, #tpu.memory_space<vmem>>, vector<8x128xf32>,
    %227 = vector.extract_strided_slice %12 {offsets = [56, 0], sizes = [8, 512], strides = [1, 1]} : vector<64x512xf32> to vector<8x512xf32>
    %228 = arith.truncf %225 : vector<8x128xf32> to vector<8x128xbf16>
    %cst_56 = arith.constant dense<0.000000e+00> : vector<8x512xf32>
    %229 = tpu.matmul %228, %5, %cst_56 {dimension_numbers = #tpu.dot_dimension_numbers<[1], [0], [0], [1], [0, 0, 1, 1], [], []>} : vector<8x128xbf16>, vector<128x512xbf16>, vector<8x512xf32> -> vector<8x512xf32>
    %230 = arith.addf %227, %229 : vector<8x512xf32>
    %231 = vector.extract_strided_slice %230 {offsets = [0, 0], sizes = [8, 128], strides = [1, 1]} : vector<8x512xf32> to vector<8x128xf32>
    %232 = arith.negf %231 : vector<8x128xf32>
    %233 = math.exp %232 : vector<8x128xf32>
    %cst_57 = arith.constant 1.000000e+00 : f32
    %234 = vector.broadcast %cst_57 : f32 to vector<8x128xf32>
    %235 = arith.addf %234, %233 : vector<8x128xf32>
    %236 = arith.divf %234, %235 : vector<8x128xf32>
    %237 = vector.extract_strided_slice %230 {offsets = [0, 128], sizes = [8, 128], strides = [1, 1]} : vector<8x512xf32> to vector<8x128xf32>
    %238 = arith.negf %237 : vector<8x128xf32>
    %239 = math.exp %238 : vector<8x128xf32>
    %cst_58 = arith.constant 1.000000e+00 : f32
    %240 = vector.broadcast %cst_58 : f32 to vector<8x128xf32>
    %241 = arith.addf %240, %239 : vector<8x128xf32>
    %242 = arith.divf %240, %241 : vector<8x128xf32>
    %243 = vector.extract_strided_slice %230 {offsets = [0, 256], sizes = [8, 128], strides = [1, 1]} : vector<8x512xf32> to vector<8x128xf32>
    %244 = math.tanh %243 : vector<8x128xf32>
    %245 = vector.extract_strided_slice %230 {offsets = [0, 384], sizes = [8, 128], strides = [1, 1]} : vector<8x512xf32> to vector<8x128xf32>
    %246 = arith.negf %245 : vector<8x128xf32>
    %247 = math.exp %246 : vector<8x128xf32>
    %cst_59 = arith.constant 1.000000e+00 : f32
    %248 = vector.broadcast %cst_59 : f32 to vector<8x128xf32>
    %249 = arith.addf %248, %247 : vector<8x128xf32>
    %250 = arith.divf %248, %249 : vector<8x128xf32>
    %251 = arith.mulf %242, %223 : vector<8x128xf32>
    %252 = arith.mulf %236, %244 : vector<8x128xf32>
    %253 = arith.addf %251, %252 : vector<8x128xf32>
    %254 = math.tanh %253 : vector<8x128xf32>
    %255 = arith.mulf %250, %254 : vector<8x128xf32>
    %c56 = arith.constant 56 : index
    %c0_60 = arith.constant 0 : index
    %256 = vector.load %arg12[%c56, %c0_60] : memref<64x128xf32, #tpu.memory_space<vmem>>, vector<8x128xf32>
    tpu.vector_store %arg12[%c56, %c0_60], %255 {strides = array<i32>} : memref<64x128xf32, #tpu.memory_space<vmem>>, vector<8x128xf32>,
    %c0_61 = arith.constant 0 : index
    %c0_62 = arith.constant 0 : index
    %c0_63 = arith.constant 0 : index
    %257 = vector.load %arg10[%c0_61, %c0_62, %c0_63] : memref<3x8x128xf32, #tpu.memory_space<vmem>>, vector<1x8x128xf32>
    %258 = vector.shape_cast %257 : vector<1x8x128xf32> to vector<8x128xf32>
    %259 = vector.shape_cast %255 : vector<8x128xf32> to vector<1x8x128xf32>
    tpu.vector_store %arg10[%c0_61, %c0_62, %c0_63], %259 {strides = array<i32>} : memref<3x8x128xf32, #tpu.memory_space<vmem>>, vector<1x8x128xf32>,
    %c0_64 = arith.constant 0 : index
    %c0_65 = arith.constant 0 : index
    %c0_66 = arith.constant 0 : index
    %260 = vector.load %arg11[%c0_64, %c0_65, %c0_66] : memref<3x8x128xf32, #tpu.memory_space<vmem>>, vector<1x8x128xf32>
    %261 = vector.shape_cast %260 : vector<1x8x128xf32> to vector<8x128xf32>
    %262 = vector.shape_cast %253 : vector<8x128xf32> to vector<1x8x128xf32>
    tpu.vector_store %arg11[%c0_64, %c0_65, %c0_66], %262 {strides = array<i32>} : memref<3x8x128xf32, #tpu.memory_space<vmem>>, vector<1x8x128xf32>,
    %c1 = arith.constant 1 : index
    %c0_67 = arith.constant 0 : index
    %c0_68 = arith.constant 0 : index
    %263 = vector.load %arg2[%c1, %c0_67, %c0_68] : memref<3x128x512xbf16, #tpu.memory_space<vmem>>, vector<1x128x512xbf16>
    %264 = vector.shape_cast %263 : vector<1x128x512xbf16> to vector<128x512xbf16>
    %c1_69 = arith.constant 1 : index
    %c0_70 = arith.constant 0 : index
    %c0_71 = arith.constant 0 : index
    %265 = vector.load %arg3[%c1_69, %c0_70, %c0_71] : memref<3x128x512xbf16, #tpu.memory_space<vmem>>, vector<1x128x512xbf16>
    %266 = vector.shape_cast %265 : vector<1x128x512xbf16> to vector<128x512xbf16>
    %c0_72 = arith.constant 0 : index
    %c0_73 = arith.constant 0 : index
    %267 = vector.load %arg12[%c0_72, %c0_73] : memref<64x128xf32, #tpu.memory_space<vmem>>, vector<64x128xf32>
    %268 = arith.truncf %267 : vector<64x128xf32> to vector<64x128xbf16>
    %cst_74 = arith.constant dense<0.000000e+00> : vector<64x512xf32>
    %269 = tpu.matmul %268, %264, %cst_74 {dimension_numbers = #tpu.dot_dimension_numbers<[1], [0], [0], [1], [0, 0, 1, 1], [], []>} : vector<64x128xbf16>, vector<128x512xbf16>, vector<64x512xf32> -> vector<64x512xf32>
    %c1_75 = arith.constant 1 : index
    %c0_76 = arith.constant 0 : index
    %c0_77 = arith.constant 0 : index
    %270 = vector.load %arg4[%c1_75, %c0_76, %c0_77] : memref<3x1x512xf32, #tpu.memory_space<vmem>>, vector<1x1x512xf32>
    %271 = vector.shape_cast %270 : vector<1x1x512xf32> to vector<1x512xf32>
    %272 = vector.broadcast %271 : vector<1x512xf32> to vector<64x512xf32>
    %273 = arith.addf %269, %272 : vector<64x512xf32>
    %c1_78 = arith.constant 1 : index
    %c0_79 = arith.constant 0 : index
    %c0_80 = arith.constant 0 : index
    %274 = vector.load %arg5[%c1_78, %c0_79, %c0_80] : memref<3x8x128xf32, #tpu.memory_space<vmem>>, vector<1x8x128xf32>
    %275 = vector.shape_cast %274 : vector<1x8x128xf32> to vector<8x128xf32>
    %c1_81 = arith.constant 1 : index
    %c0_82 = arith.constant 0 : index
    %c0_83 = arith.constant 0 : index
    %276 = vector.load %arg6[%c1_81, %c0_82, %c0_83] : memref<3x8x128xf32, #tpu.memory_space<vmem>>, vector<1x8x128xf32>
    %277 = vector.shape_cast %276 : vector<1x8x128xf32> to vector<8x128xf32>
    %278 = vector.extract_strided_slice %273 {offsets = [0, 0], sizes = [8, 512], strides = [1, 1]} : vector<64x512xf32> to vector<8x512xf32>
    %279 = arith.truncf %275 : vector<8x128xf32> to vector<8x128xbf16>
    %cst_84 = arith.constant dense<0.000000e+00> : vector<8x512xf32>
    %280 = tpu.matmul %279, %266, %cst_84 {dimension_numbers = #tpu.dot_dimension_numbers<[1], [0], [0], [1], [0, 0, 1, 1], [], []>} : vector<8x128xbf16>, vector<128x512xbf16>, vector<8x512xf32> -> vector<8x512xf32>
    %281 = arith.addf %278, %280 : vector<8x512xf32>
    %282 = vector.extract_strided_slice %281 {offsets = [0, 0], sizes = [8, 128], strides = [1, 1]} : vector<8x512xf32> to vector<8x128xf32>
    %283 = arith.negf %282 : vector<8x128xf32>
    %284 = math.exp %283 : vector<8x128xf32>
    %cst_85 = arith.constant 1.000000e+00 : f32
    %285 = vector.broadcast %cst_85 : f32 to vector<8x128xf32>
    %286 = arith.addf %285, %284 : vector<8x128xf32>
    %287 = arith.divf %285, %286 : vector<8x128xf32>
    %288 = vector.extract_strided_slice %281 {offsets = [0, 128], sizes = [8, 128], strides = [1, 1]} : vector<8x512xf32> to vector<8x128xf32>
    %289 = arith.negf %288 : vector<8x128xf32>
    %290 = math.exp %289 : vector<8x128xf32>
    %cst_86 = arith.constant 1.000000e+00 : f32
    %291 = vector.broadcast %cst_86 : f32 to vector<8x128xf32>
    %292 = arith.addf %291, %290 : vector<8x128xf32>
    %293 = arith.divf %291, %292 : vector<8x128xf32>
    %294 = vector.extract_strided_slice %281 {offsets = [0, 256], sizes = [8, 128], strides = [1, 1]} : vector<8x512xf32> to vector<8x128xf32>
    %295 = math.tanh %294 : vector<8x128xf32>
    %296 = vector.extract_strided_slice %281 {offsets = [0, 384], sizes = [8, 128], strides = [1, 1]} : vector<8x512xf32> to vector<8x128xf32>
    %297 = arith.negf %296 : vector<8x128xf32>
    %298 = math.exp %297 : vector<8x128xf32>
    %cst_87 = arith.constant 1.000000e+00 : f32
    %299 = vector.broadcast %cst_87 : f32 to vector<8x128xf32>
    %300 = arith.addf %299, %298 : vector<8x128xf32>
    %301 = arith.divf %299, %300 : vector<8x128xf32>
    %302 = arith.mulf %293, %277 : vector<8x128xf32>
    %303 = arith.mulf %287, %295 : vector<8x128xf32>
    %304 = arith.addf %302, %303 : vector<8x128xf32>
    %305 = math.tanh %304 : vector<8x128xf32>
    %306 = arith.mulf %301, %305 : vector<8x128xf32>
    %c0_88 = arith.constant 0 : index
    %c0_89 = arith.constant 0 : index
    %307 = vector.load %arg12[%c0_88, %c0_89] : memref<64x128xf32, #tpu.memory_space<vmem>>, vector<8x128xf32>
    tpu.vector_store %arg12[%c0_88, %c0_89], %306 {strides = array<i32>} : memref<64x128xf32, #tpu.memory_space<vmem>>, vector<8x128xf32>,
    %308 = vector.extract_strided_slice %273 {offsets = [8, 0], sizes = [8, 512], strides = [1, 1]} : vector<64x512xf32> to vector<8x512xf32>
    %309 = arith.truncf %306 : vector<8x128xf32> to vector<8x128xbf16>
    %cst_90 = arith.constant dense<0.000000e+00> : vector<8x512xf32>
    %310 = tpu.matmul %309, %266, %cst_90 {dimension_numbers = #tpu.dot_dimension_numbers<[1], [0], [0], [1], [0, 0, 1, 1], [], []>} : vector<8x128xbf16>, vector<128x512xbf16>, vector<8x512xf32> -> vector<8x512xf32>
    %311 = arith.addf %308, %310 : vector<8x512xf32>
    %312 = vector.extract_strided_slice %311 {offsets = [0, 0], sizes = [8, 128], strides = [1, 1]} : vector<8x512xf32> to vector<8x128xf32>
    %313 = arith.negf %312 : vector<8x128xf32>
    %314 = math.exp %313 : vector<8x128xf32>
    %cst_91 = arith.constant 1.000000e+00 : f32
    %315 = vector.broadcast %cst_91 : f32 to vector<8x128xf32>
    %316 = arith.addf %315, %314 : vector<8x128xf32>
    %317 = arith.divf %315, %316 : vector<8x128xf32>
    %318 = vector.extract_strided_slice %311 {offsets = [0, 128], sizes = [8, 128], strides = [1, 1]} : vector<8x512xf32> to vector<8x128xf32>
    %319 = arith.negf %318 : vector<8x128xf32>
    %320 = math.exp %319 : vector<8x128xf32>
    %cst_92 = arith.constant 1.000000e+00 : f32
    %321 = vector.broadcast %cst_92 : f32 to vector<8x128xf32>
    %322 = arith.addf %321, %320 : vector<8x128xf32>
    %323 = arith.divf %321, %322 : vector<8x128xf32>
    %324 = vector.extract_strided_slice %311 {offsets = [0, 256], sizes = [8, 128], strides = [1, 1]} : vector<8x512xf32> to vector<8x128xf32>
    %325 = math.tanh %324 : vector<8x128xf32>
    %326 = vector.extract_strided_slice %311 {offsets = [0, 384], sizes = [8, 128], strides = [1, 1]} : vector<8x512xf32> to vector<8x128xf32>
    %327 = arith.negf %326 : vector<8x128xf32>
    %328 = math.exp %327 : vector<8x128xf32>
    %cst_93 = arith.constant 1.000000e+00 : f32
    %329 = vector.broadcast %cst_93 : f32 to vector<8x128xf32>
    %330 = arith.addf %329, %328 : vector<8x128xf32>
    %331 = arith.divf %329, %330 : vector<8x128xf32>
    %332 = arith.mulf %323, %304 : vector<8x128xf32>
    %333 = arith.mulf %317, %325 : vector<8x128xf32>
    %334 = arith.addf %332, %333 : vector<8x128xf32>
    %335 = math.tanh %334 : vector<8x128xf32>
    %336 = arith.mulf %331, %335 : vector<8x128xf32>
    %c8_94 = arith.constant 8 : index
    %c0_95 = arith.constant 0 : index
    %337 = vector.load %arg12[%c8_94, %c0_95] : memref<64x128xf32, #tpu.memory_space<vmem>>, vector<8x128xf32>
    tpu.vector_store %arg12[%c8_94, %c0_95], %336 {strides = array<i32>} : memref<64x128xf32, #tpu.memory_space<vmem>>, vector<8x128xf32>,
    %338 = vector.extract_strided_slice %273 {offsets = [16, 0], sizes = [8, 512], strides = [1, 1]} : vector<64x512xf32> to vector<8x512xf32>
    %339 = arith.truncf %336 : vector<8x128xf32> to vector<8x128xbf16>
    %cst_96 = arith.constant dense<0.000000e+00> : vector<8x512xf32>
    %340 = tpu.matmul %339, %266, %cst_96 {dimension_numbers = #tpu.dot_dimension_numbers<[1], [0], [0], [1], [0, 0, 1, 1], [], []>} : vector<8x128xbf16>, vector<128x512xbf16>, vector<8x512xf32> -> vector<8x512xf32>
    %341 = arith.addf %338, %340 : vector<8x512xf32>
    %342 = vector.extract_strided_slice %341 {offsets = [0, 0], sizes = [8, 128], strides = [1, 1]} : vector<8x512xf32> to vector<8x128xf32>
    %343 = arith.negf %342 : vector<8x128xf32>
    %344 = math.exp %343 : vector<8x128xf32>
    %cst_97 = arith.constant 1.000000e+00 : f32
    %345 = vector.broadcast %cst_97 : f32 to vector<8x128xf32>
    %346 = arith.addf %345, %344 : vector<8x128xf32>
    %347 = arith.divf %345, %346 : vector<8x128xf32>
    %348 = vector.extract_strided_slice %341 {offsets = [0, 128], sizes = [8, 128], strides = [1, 1]} : vector<8x512xf32> to vector<8x128xf32>
    %349 = arith.negf %348 : vector<8x128xf32>
    %350 = math.exp %349 : vector<8x128xf32>
    %cst_98 = arith.constant 1.000000e+00 : f32
    %351 = vector.broadcast %cst_98 : f32 to vector<8x128xf32>
    %352 = arith.addf %351, %350 : vector<8x128xf32>
    %353 = arith.divf %351, %352 : vector<8x128xf32>
    %354 = vector.extract_strided_slice %341 {offsets = [0, 256], sizes = [8, 128], strides = [1, 1]} : vector<8x512xf32> to vector<8x128xf32>
    %355 = math.tanh %354 : vector<8x128xf32>
    %356 = vector.extract_strided_slice %341 {offsets = [0, 384], sizes = [8, 128], strides = [1, 1]} : vector<8x512xf32> to vector<8x128xf32>
    %357 = arith.negf %356 : vector<8x128xf32>
    %358 = math.exp %357 : vector<8x128xf32>
    %cst_99 = arith.constant 1.000000e+00 : f32
    %359 = vector.broadcast %cst_99 : f32 to vector<8x128xf32>
    %360 = arith.addf %359, %358 : vector<8x128xf32>
    %361 = arith.divf %359, %360 : vector<8x128xf32>
    %362 = arith.mulf %353, %334 : vector<8x128xf32>
    %363 = arith.mulf %347, %355 : vector<8x128xf32>
    %364 = arith.addf %362, %363 : vector<8x128xf32>
    %365 = math.tanh %364 : vector<8x128xf32>
    %366 = arith.mulf %361, %365 : vector<8x128xf32>
    %c16_100 = arith.constant 16 : index
    %c0_101 = arith.constant 0 : index
    %367 = vector.load %arg12[%c16_100, %c0_101] : memref<64x128xf32, #tpu.memory_space<vmem>>, vector<8x128xf32>
    tpu.vector_store %arg12[%c16_100, %c0_101], %366 {strides = array<i32>} : memref<64x128xf32, #tpu.memory_space<vmem>>, vector<8x128xf32>,
    %368 = vector.extract_strided_slice %273 {offsets = [24, 0], sizes = [8, 512], strides = [1, 1]} : vector<64x512xf32> to vector<8x512xf32>
    %369 = arith.truncf %366 : vector<8x128xf32> to vector<8x128xbf16>
    %cst_102 = arith.constant dense<0.000000e+00> : vector<8x512xf32>
    %370 = tpu.matmul %369, %266, %cst_102 {dimension_numbers = #tpu.dot_dimension_numbers<[1], [0], [0], [1], [0, 0, 1, 1], [], []>} : vector<8x128xbf16>, vector<128x512xbf16>, vector<8x512xf32> -> vector<8x512xf32>
    %371 = arith.addf %368, %370 : vector<8x512xf32>
    %372 = vector.extract_strided_slice %371 {offsets = [0, 0], sizes = [8, 128], strides = [1, 1]} : vector<8x512xf32> to vector<8x128xf32>
    %373 = arith.negf %372 : vector<8x128xf32>
    %374 = math.exp %373 : vector<8x128xf32>
    %cst_103 = arith.constant 1.000000e+00 : f32
    %375 = vector.broadcast %cst_103 : f32 to vector<8x128xf32>
    %376 = arith.addf %375, %374 : vector<8x128xf32>
    %377 = arith.divf %375, %376 : vector<8x128xf32>
    %378 = vector.extract_strided_slice %371 {offsets = [0, 128], sizes = [8, 128], strides = [1, 1]} : vector<8x512xf32> to vector<8x128xf32>
    %379 = arith.negf %378 : vector<8x128xf32>
    %380 = math.exp %379 : vector<8x128xf32>
    %cst_104 = arith.constant 1.000000e+00 : f32
    %381 = vector.broadcast %cst_104 : f32 to vector<8x128xf32>
    %382 = arith.addf %381, %380 : vector<8x128xf32>
    %383 = arith.divf %381, %382 : vector<8x128xf32>
    %384 = vector.extract_strided_slice %371 {offsets = [0, 256], sizes = [8, 128], strides = [1, 1]} : vector<8x512xf32> to vector<8x128xf32>
    %385 = math.tanh %384 : vector<8x128xf32>
    %386 = vector.extract_strided_slice %371 {offsets = [0, 384], sizes = [8, 128], strides = [1, 1]} : vector<8x512xf32> to vector<8x128xf32>
    %387 = arith.negf %386 : vector<8x128xf32>
    %388 = math.exp %387 : vector<8x128xf32>
    %cst_105 = arith.constant 1.000000e+00 : f32
    %389 = vector.broadcast %cst_105 : f32 to vector<8x128xf32>
    %390 = arith.addf %389, %388 : vector<8x128xf32>
    %391 = arith.divf %389, %390 : vector<8x128xf32>
    %392 = arith.mulf %383, %364 : vector<8x128xf32>
    %393 = arith.mulf %377, %385 : vector<8x128xf32>
    %394 = arith.addf %392, %393 : vector<8x128xf32>
    %395 = math.tanh %394 : vector<8x128xf32>
    %396 = arith.mulf %391, %395 : vector<8x128xf32>
    %c24_106 = arith.constant 24 : index
    %c0_107 = arith.constant 0 : index
    %397 = vector.load %arg12[%c24_106, %c0_107] : memref<64x128xf32, #tpu.memory_space<vmem>>, vector<8x128xf32>
    tpu.vector_store %arg12[%c24_106, %c0_107], %396 {strides = array<i32>} : memref<64x128xf32, #tpu.memory_space<vmem>>, vector<8x128xf32>,
    %398 = vector.extract_strided_slice %273 {offsets = [32, 0], sizes = [8, 512], strides = [1, 1]} : vector<64x512xf32> to vector<8x512xf32>
    %399 = arith.truncf %396 : vector<8x128xf32> to vector<8x128xbf16>
    %cst_108 = arith.constant dense<0.000000e+00> : vector<8x512xf32>
    %400 = tpu.matmul %399, %266, %cst_108 {dimension_numbers = #tpu.dot_dimension_numbers<[1], [0], [0], [1], [0, 0, 1, 1], [], []>} : vector<8x128xbf16>, vector<128x512xbf16>, vector<8x512xf32> -> vector<8x512xf32>
    %401 = arith.addf %398, %400 : vector<8x512xf32>
    %402 = vector.extract_strided_slice %401 {offsets = [0, 0], sizes = [8, 128], strides = [1, 1]} : vector<8x512xf32> to vector<8x128xf32>
    %403 = arith.negf %402 : vector<8x128xf32>
    %404 = math.exp %403 : vector<8x128xf32>
    %cst_109 = arith.constant 1.000000e+00 : f32
    %405 = vector.broadcast %cst_109 : f32 to vector<8x128xf32>
    %406 = arith.addf %405, %404 : vector<8x128xf32>
    %407 = arith.divf %405, %406 : vector<8x128xf32>
    %408 = vector.extract_strided_slice %401 {offsets = [0, 128], sizes = [8, 128], strides = [1, 1]} : vector<8x512xf32> to vector<8x128xf32>
    %409 = arith.negf %408 : vector<8x128xf32>
    %410 = math.exp %409 : vector<8x128xf32>
    %cst_110 = arith.constant 1.000000e+00 : f32
    %411 = vector.broadcast %cst_110 : f32 to vector<8x128xf32>
    %412 = arith.addf %411, %410 : vector<8x128xf32>
    %413 = arith.divf %411, %412 : vector<8x128xf32>
    %414 = vector.extract_strided_slice %401 {offsets = [0, 256], sizes = [8, 128], strides = [1, 1]} : vector<8x512xf32> to vector<8x128xf32>
    %415 = math.tanh %414 : vector<8x128xf32>
    %416 = vector.extract_strided_slice %401 {offsets = [0, 384], sizes = [8, 128], strides = [1, 1]} : vector<8x512xf32> to vector<8x128xf32>
    %417 = arith.negf %416 : vector<8x128xf32>
    %418 = math.exp %417 : vector<8x128xf32>
    %cst_111 = arith.constant 1.000000e+00 : f32
    %419 = vector.broadcast %cst_111 : f32 to vector<8x128xf32>
    %420 = arith.addf %419, %418 : vector<8x128xf32>
    %421 = arith.divf %419, %420 : vector<8x128xf32>
    %422 = arith.mulf %413, %394 : vector<8x128xf32>
    %423 = arith.mulf %407, %415 : vector<8x128xf32>
    %424 = arith.addf %422, %423 : vector<8x128xf32>
    %425 = math.tanh %424 : vector<8x128xf32>
    %426 = arith.mulf %421, %425 : vector<8x128xf32>
    %c32_112 = arith.constant 32 : index
    %c0_113 = arith.constant 0 : index
    %427 = vector.load %arg12[%c32_112, %c0_113] : memref<64x128xf32, #tpu.memory_space<vmem>>, vector<8x128xf32>
    tpu.vector_store %arg12[%c32_112, %c0_113], %426 {strides = array<i32>} : memref<64x128xf32, #tpu.memory_space<vmem>>, vector<8x128xf32>,
    %428 = vector.extract_strided_slice %273 {offsets = [40, 0], sizes = [8, 512], strides = [1, 1]} : vector<64x512xf32> to vector<8x512xf32>
    %429 = arith.truncf %426 : vector<8x128xf32> to vector<8x128xbf16>
    %cst_114 = arith.constant dense<0.000000e+00> : vector<8x512xf32>
    %430 = tpu.matmul %429, %266, %cst_114 {dimension_numbers = #tpu.dot_dimension_numbers<[1], [0], [0], [1], [0, 0, 1, 1], [], []>} : vector<8x128xbf16>, vector<128x512xbf16>, vector<8x512xf32> -> vector<8x512xf32>
    %431 = arith.addf %428, %430 : vector<8x512xf32>
    %432 = vector.extract_strided_slice %431 {offsets = [0, 0], sizes = [8, 128], strides = [1, 1]} : vector<8x512xf32> to vector<8x128xf32>
    %433 = arith.negf %432 : vector<8x128xf32>
    %434 = math.exp %433 : vector<8x128xf32>
    %cst_115 = arith.constant 1.000000e+00 : f32
    %435 = vector.broadcast %cst_115 : f32 to vector<8x128xf32>
    %436 = arith.addf %435, %434 : vector<8x128xf32>
    %437 = arith.divf %435, %436 : vector<8x128xf32>
    %438 = vector.extract_strided_slice %431 {offsets = [0, 128], sizes = [8, 128], strides = [1, 1]} : vector<8x512xf32> to vector<8x128xf32>
    %439 = arith.negf %438 : vector<8x128xf32>
    %440 = math.exp %439 : vector<8x128xf32>
    %cst_116 = arith.constant 1.000000e+00 : f32
    %441 = vector.broadcast %cst_116 : f32 to vector<8x128xf32>
    %442 = arith.addf %441, %440 : vector<8x128xf32>
    %443 = arith.divf %441, %442 : vector<8x128xf32>
    %444 = vector.extract_strided_slice %431 {offsets = [0, 256], sizes = [8, 128], strides = [1, 1]} : vector<8x512xf32> to vector<8x128xf32>
    %445 = math.tanh %444 : vector<8x128xf32>
    %446 = vector.extract_strided_slice %431 {offsets = [0, 384], sizes = [8, 128], strides = [1, 1]} : vector<8x512xf32> to vector<8x128xf32>
    %447 = arith.negf %446 : vector<8x128xf32>
    %448 = math.exp %447 : vector<8x128xf32>
    %cst_117 = arith.constant 1.000000e+00 : f32
    %449 = vector.broadcast %cst_117 : f32 to vector<8x128xf32>
    %450 = arith.addf %449, %448 : vector<8x128xf32>
    %451 = arith.divf %449, %450 : vector<8x128xf32>
    %452 = arith.mulf %443, %424 : vector<8x128xf32>
    %453 = arith.mulf %437, %445 : vector<8x128xf32>
    %454 = arith.addf %452, %453 : vector<8x128xf32>
    %455 = math.tanh %454 : vector<8x128xf32>
    %456 = arith.mulf %451, %455 : vector<8x128xf32>
    %c40_118 = arith.constant 40 : index
    %c0_119 = arith.constant 0 : index
    %457 = vector.load %arg12[%c40_118, %c0_119] : memref<64x128xf32, #tpu.memory_space<vmem>>, vector<8x128xf32>
    tpu.vector_store %arg12[%c40_118, %c0_119], %456 {strides = array<i32>} : memref<64x128xf32, #tpu.memory_space<vmem>>, vector<8x128xf32>,
    %458 = vector.extract_strided_slice %273 {offsets = [48, 0], sizes = [8, 512], strides = [1, 1]} : vector<64x512xf32> to vector<8x512xf32>
    %459 = arith.truncf %456 : vector<8x128xf32> to vector<8x128xbf16>
    %cst_120 = arith.constant dense<0.000000e+00> : vector<8x512xf32>
    %460 = tpu.matmul %459, %266, %cst_120 {dimension_numbers = #tpu.dot_dimension_numbers<[1], [0], [0], [1], [0, 0, 1, 1], [], []>} : vector<8x128xbf16>, vector<128x512xbf16>, vector<8x512xf32> -> vector<8x512xf32>
    %461 = arith.addf %458, %460 : vector<8x512xf32>
    %462 = vector.extract_strided_slice %461 {offsets = [0, 0], sizes = [8, 128], strides = [1, 1]} : vector<8x512xf32> to vector<8x128xf32>
    %463 = arith.negf %462 : vector<8x128xf32>
    %464 = math.exp %463 : vector<8x128xf32>
    %cst_121 = arith.constant 1.000000e+00 : f32
    %465 = vector.broadcast %cst_121 : f32 to vector<8x128xf32>
    %466 = arith.addf %465, %464 : vector<8x128xf32>
    %467 = arith.divf %465, %466 : vector<8x128xf32>
    %468 = vector.extract_strided_slice %461 {offsets = [0, 128], sizes = [8, 128], strides = [1, 1]} : vector<8x512xf32> to vector<8x128xf32>
    %469 = arith.negf %468 : vector<8x128xf32>
    %470 = math.exp %469 : vector<8x128xf32>
    %cst_122 = arith.constant 1.000000e+00 : f32
    %471 = vector.broadcast %cst_122 : f32 to vector<8x128xf32>
    %472 = arith.addf %471, %470 : vector<8x128xf32>
    %473 = arith.divf %471, %472 : vector<8x128xf32>
    %474 = vector.extract_strided_slice %461 {offsets = [0, 256], sizes = [8, 128], strides = [1, 1]} : vector<8x512xf32> to vector<8x128xf32>
    %475 = math.tanh %474 : vector<8x128xf32>
    %476 = vector.extract_strided_slice %461 {offsets = [0, 384], sizes = [8, 128], strides = [1, 1]} : vector<8x512xf32> to vector<8x128xf32>
    %477 = arith.negf %476 : vector<8x128xf32>
    %478 = math.exp %477 : vector<8x128xf32>
    %cst_123 = arith.constant 1.000000e+00 : f32
    %479 = vector.broadcast %cst_123 : f32 to vector<8x128xf32>
    %480 = arith.addf %479, %478 : vector<8x128xf32>
    %481 = arith.divf %479, %480 : vector<8x128xf32>
    %482 = arith.mulf %473, %454 : vector<8x128xf32>
    %483 = arith.mulf %467, %475 : vector<8x128xf32>
    %484 = arith.addf %482, %483 : vector<8x128xf32>
    %485 = math.tanh %484 : vector<8x128xf32>
    %486 = arith.mulf %481, %485 : vector<8x128xf32>
    %c48_124 = arith.constant 48 : index
    %c0_125 = arith.constant 0 : index
    %487 = vector.load %arg12[%c48_124, %c0_125] : memref<64x128xf32, #tpu.memory_space<vmem>>, vector<8x128xf32>
    tpu.vector_store %arg12[%c48_124, %c0_125], %486 {strides = array<i32>} : memref<64x128xf32, #tpu.memory_space<vmem>>, vector<8x128xf32>,
    %488 = vector.extract_strided_slice %273 {offsets = [56, 0], sizes = [8, 512], strides = [1, 1]} : vector<64x512xf32> to vector<8x512xf32>
    %489 = arith.truncf %486 : vector<8x128xf32> to vector<8x128xbf16>
    %cst_126 = arith.constant dense<0.000000e+00> : vector<8x512xf32>
    %490 = tpu.matmul %489, %266, %cst_126 {dimension_numbers = #tpu.dot_dimension_numbers<[1], [0], [0], [1], [0, 0, 1, 1], [], []>} : vector<8x128xbf16>, vector<128x512xbf16>, vector<8x512xf32> -> vector<8x512xf32>
    %491 = arith.addf %488, %490 : vector<8x512xf32>
    %492 = vector.extract_strided_slice %491 {offsets = [0, 0], sizes = [8, 128], strides = [1, 1]} : vector<8x512xf32> to vector<8x128xf32>
    %493 = arith.negf %492 : vector<8x128xf32>
    %494 = math.exp %493 : vector<8x128xf32>
    %cst_127 = arith.constant 1.000000e+00 : f32
    %495 = vector.broadcast %cst_127 : f32 to vector<8x128xf32>
    %496 = arith.addf %495, %494 : vector<8x128xf32>
    %497 = arith.divf %495, %496 : vector<8x128xf32>
    %498 = vector.extract_strided_slice %491 {offsets = [0, 128], sizes = [8, 128], strides = [1, 1]} : vector<8x512xf32> to vector<8x128xf32>
    %499 = arith.negf %498 : vector<8x128xf32>
    %500 = math.exp %499 : vector<8x128xf32>
    %cst_128 = arith.constant 1.000000e+00 : f32
    %501 = vector.broadcast %cst_128 : f32 to vector<8x128xf32>
    %502 = arith.addf %501, %500 : vector<8x128xf32>
    %503 = arith.divf %501, %502 : vector<8x128xf32>
    %504 = vector.extract_strided_slice %491 {offsets = [0, 256], sizes = [8, 128], strides = [1, 1]} : vector<8x512xf32> to vector<8x128xf32>
    %505 = math.tanh %504 : vector<8x128xf32>
    %506 = vector.extract_strided_slice %491 {offsets = [0, 384], sizes = [8, 128], strides = [1, 1]} : vector<8x512xf32> to vector<8x128xf32>
    %507 = arith.negf %506 : vector<8x128xf32>
    %508 = math.exp %507 : vector<8x128xf32>
    %cst_129 = arith.constant 1.000000e+00 : f32
    %509 = vector.broadcast %cst_129 : f32 to vector<8x128xf32>
    %510 = arith.addf %509, %508 : vector<8x128xf32>
    %511 = arith.divf %509, %510 : vector<8x128xf32>
    %512 = arith.mulf %503, %484 : vector<8x128xf32>
    %513 = arith.mulf %497, %505 : vector<8x128xf32>
    %514 = arith.addf %512, %513 : vector<8x128xf32>
    %515 = math.tanh %514 : vector<8x128xf32>
    %516 = arith.mulf %511, %515 : vector<8x128xf32>
    %c56_130 = arith.constant 56 : index
    %c0_131 = arith.constant 0 : index
    %517 = vector.load %arg12[%c56_130, %c0_131] : memref<64x128xf32, #tpu.memory_space<vmem>>, vector<8x128xf32>
    tpu.vector_store %arg12[%c56_130, %c0_131], %516 {strides = array<i32>} : memref<64x128xf32, #tpu.memory_space<vmem>>, vector<8x128xf32>,
    %c1_132 = arith.constant 1 : index
    %c0_133 = arith.constant 0 : index
    %c0_134 = arith.constant 0 : index
    %518 = vector.load %arg10[%c1_132, %c0_133, %c0_134] : memref<3x8x128xf32, #tpu.memory_space<vmem>>, vector<1x8x128xf32>
    %519 = vector.shape_cast %518 : vector<1x8x128xf32> to vector<8x128xf32>
    %520 = vector.shape_cast %516 : vector<8x128xf32> to vector<1x8x128xf32>
    tpu.vector_store %arg10[%c1_132, %c0_133, %c0_134], %520 {strides = array<i32>} : memref<3x8x128xf32, #tpu.memory_space<vmem>>, vector<1x8x128xf32>,
    %c1_135 = arith.constant 1 : index
    %c0_136 = arith.constant 0 : index
    %c0_137 = arith.constant 0 : index
    %521 = vector.load %arg11[%c1_135, %c0_136, %c0_137] : memref<3x8x128xf32, #tpu.memory_space<vmem>>, vector<1x8x128xf32>
    %522 = vector.shape_cast %521 : vector<1x8x128xf32> to vector<8x128xf32>
    %523 = vector.shape_cast %514 : vector<8x128xf32> to vector<1x8x128xf32>
    tpu.vector_store %arg11[%c1_135, %c0_136, %c0_137], %523 {strides = array<i32>} : memref<3x8x128xf32, #tpu.memory_space<vmem>>, vector<1x8x128xf32>,
    %c2 = arith.constant 2 : index
    %c0_138 = arith.constant 0 : index
    %c0_139 = arith.constant 0 : index
    %524 = vector.load %arg2[%c2, %c0_138, %c0_139] : memref<3x128x512xbf16, #tpu.memory_space<vmem>>, vector<1x128x512xbf16>
    %525 = vector.shape_cast %524 : vector<1x128x512xbf16> to vector<128x512xbf16>
    %c2_140 = arith.constant 2 : index
    %c0_141 = arith.constant 0 : index
    %c0_142 = arith.constant 0 : index
    %526 = vector.load %arg3[%c2_140, %c0_141, %c0_142] : memref<3x128x512xbf16, #tpu.memory_space<vmem>>, vector<1x128x512xbf16>
    %527 = vector.shape_cast %526 : vector<1x128x512xbf16> to vector<128x512xbf16>
    %c0_143 = arith.constant 0 : index
    %c0_144 = arith.constant 0 : index
    %528 = vector.load %arg12[%c0_143, %c0_144] : memref<64x128xf32, #tpu.memory_space<vmem>>, vector<64x128xf32>
    %529 = arith.truncf %528 : vector<64x128xf32> to vector<64x128xbf16>
    %cst_145 = arith.constant dense<0.000000e+00> : vector<64x512xf32>
    %530 = tpu.matmul %529, %525, %cst_145 {dimension_numbers = #tpu.dot_dimension_numbers<[1], [0], [0], [1], [0, 0, 1, 1], [], []>} : vector<64x128xbf16>, vector<128x512xbf16>, vector<64x512xf32> -> vector<64x512xf32>
    %c2_146 = arith.constant 2 : index
    %c0_147 = arith.constant 0 : index
    %c0_148 = arith.constant 0 : index
    %531 = vector.load %arg4[%c2_146, %c0_147, %c0_148] : memref<3x1x512xf32, #tpu.memory_space<vmem>>, vector<1x1x512xf32>
    %532 = vector.shape_cast %531 : vector<1x1x512xf32> to vector<1x512xf32>
    %533 = vector.broadcast %532 : vector<1x512xf32> to vector<64x512xf32>
    %534 = arith.addf %530, %533 : vector<64x512xf32>
    %c2_149 = arith.constant 2 : index
    %c0_150 = arith.constant 0 : index
    %c0_151 = arith.constant 0 : index
    %535 = vector.load %arg5[%c2_149, %c0_150, %c0_151] : memref<3x8x128xf32, #tpu.memory_space<vmem>>, vector<1x8x128xf32>
    %536 = vector.shape_cast %535 : vector<1x8x128xf32> to vector<8x128xf32>
    %c2_152 = arith.constant 2 : index
    %c0_153 = arith.constant 0 : index
    %c0_154 = arith.constant 0 : index
    %537 = vector.load %arg6[%c2_152, %c0_153, %c0_154] : memref<3x8x128xf32, #tpu.memory_space<vmem>>, vector<1x8x128xf32>
    %538 = vector.shape_cast %537 : vector<1x8x128xf32> to vector<8x128xf32>
    %539 = vector.extract_strided_slice %534 {offsets = [0, 0], sizes = [8, 512], strides = [1, 1]} : vector<64x512xf32> to vector<8x512xf32>
    %540 = arith.truncf %536 : vector<8x128xf32> to vector<8x128xbf16>
    %cst_155 = arith.constant dense<0.000000e+00> : vector<8x512xf32>
    %541 = tpu.matmul %540, %527, %cst_155 {dimension_numbers = #tpu.dot_dimension_numbers<[1], [0], [0], [1], [0, 0, 1, 1], [], []>} : vector<8x128xbf16>, vector<128x512xbf16>, vector<8x512xf32> -> vector<8x512xf32>
    %542 = arith.addf %539, %541 : vector<8x512xf32>
    %543 = vector.extract_strided_slice %542 {offsets = [0, 0], sizes = [8, 128], strides = [1, 1]} : vector<8x512xf32> to vector<8x128xf32>
    %544 = arith.negf %543 : vector<8x128xf32>
    %545 = math.exp %544 : vector<8x128xf32>
    %cst_156 = arith.constant 1.000000e+00 : f32
    %546 = vector.broadcast %cst_156 : f32 to vector<8x128xf32>
    %547 = arith.addf %546, %545 : vector<8x128xf32>
    %548 = arith.divf %546, %547 : vector<8x128xf32>
    %549 = vector.extract_strided_slice %542 {offsets = [0, 128], sizes = [8, 128], strides = [1, 1]} : vector<8x512xf32> to vector<8x128xf32>
    %550 = arith.negf %549 : vector<8x128xf32>
    %551 = math.exp %550 : vector<8x128xf32>
    %cst_157 = arith.constant 1.000000e+00 : f32
    %552 = vector.broadcast %cst_157 : f32 to vector<8x128xf32>
    %553 = arith.addf %552, %551 : vector<8x128xf32>
    %554 = arith.divf %552, %553 : vector<8x128xf32>
    %555 = vector.extract_strided_slice %542 {offsets = [0, 256], sizes = [8, 128], strides = [1, 1]} : vector<8x512xf32> to vector<8x128xf32>
    %556 = math.tanh %555 : vector<8x128xf32>
    %557 = vector.extract_strided_slice %542 {offsets = [0, 384], sizes = [8, 128], strides = [1, 1]} : vector<8x512xf32> to vector<8x128xf32>
    %558 = arith.negf %557 : vector<8x128xf32>
    %559 = math.exp %558 : vector<8x128xf32>
    %cst_158 = arith.constant 1.000000e+00 : f32
    %560 = vector.broadcast %cst_158 : f32 to vector<8x128xf32>
    %561 = arith.addf %560, %559 : vector<8x128xf32>
    %562 = arith.divf %560, %561 : vector<8x128xf32>
    %563 = arith.mulf %554, %538 : vector<8x128xf32>
    %564 = arith.mulf %548, %556 : vector<8x128xf32>
    %565 = arith.addf %563, %564 : vector<8x128xf32>
    %566 = math.tanh %565 : vector<8x128xf32>
    %567 = arith.mulf %562, %566 : vector<8x128xf32>
    %c0_159 = arith.constant 0 : index
    %c0_160 = arith.constant 0 : index
    %568 = vector.load %arg12[%c0_159, %c0_160] : memref<64x128xf32, #tpu.memory_space<vmem>>, vector<8x128xf32>
    tpu.vector_store %arg12[%c0_159, %c0_160], %567 {strides = array<i32>} : memref<64x128xf32, #tpu.memory_space<vmem>>, vector<8x128xf32>,
    %569 = vector.extract_strided_slice %534 {offsets = [8, 0], sizes = [8, 512], strides = [1, 1]} : vector<64x512xf32> to vector<8x512xf32>
    %570 = arith.truncf %567 : vector<8x128xf32> to vector<8x128xbf16>
    %cst_161 = arith.constant dense<0.000000e+00> : vector<8x512xf32>
    %571 = tpu.matmul %570, %527, %cst_161 {dimension_numbers = #tpu.dot_dimension_numbers<[1], [0], [0], [1], [0, 0, 1, 1], [], []>} : vector<8x128xbf16>, vector<128x512xbf16>, vector<8x512xf32> -> vector<8x512xf32>
    %572 = arith.addf %569, %571 : vector<8x512xf32>
    %573 = vector.extract_strided_slice %572 {offsets = [0, 0], sizes = [8, 128], strides = [1, 1]} : vector<8x512xf32> to vector<8x128xf32>
    %574 = arith.negf %573 : vector<8x128xf32>
    %575 = math.exp %574 : vector<8x128xf32>
    %cst_162 = arith.constant 1.000000e+00 : f32
    %576 = vector.broadcast %cst_162 : f32 to vector<8x128xf32>
    %577 = arith.addf %576, %575 : vector<8x128xf32>
    %578 = arith.divf %576, %577 : vector<8x128xf32>
    %579 = vector.extract_strided_slice %572 {offsets = [0, 128], sizes = [8, 128], strides = [1, 1]} : vector<8x512xf32> to vector<8x128xf32>
    %580 = arith.negf %579 : vector<8x128xf32>
    %581 = math.exp %580 : vector<8x128xf32>
    %cst_163 = arith.constant 1.000000e+00 : f32
    %582 = vector.broadcast %cst_163 : f32 to vector<8x128xf32>
    %583 = arith.addf %582, %581 : vector<8x128xf32>
    %584 = arith.divf %582, %583 : vector<8x128xf32>
    %585 = vector.extract_strided_slice %572 {offsets = [0, 256], sizes = [8, 128], strides = [1, 1]} : vector<8x512xf32> to vector<8x128xf32>
    %586 = math.tanh %585 : vector<8x128xf32>
    %587 = vector.extract_strided_slice %572 {offsets = [0, 384], sizes = [8, 128], strides = [1, 1]} : vector<8x512xf32> to vector<8x128xf32>
    %588 = arith.negf %587 : vector<8x128xf32>
    %589 = math.exp %588 : vector<8x128xf32>
    %cst_164 = arith.constant 1.000000e+00 : f32
    %590 = vector.broadcast %cst_164 : f32 to vector<8x128xf32>
    %591 = arith.addf %590, %589 : vector<8x128xf32>
    %592 = arith.divf %590, %591 : vector<8x128xf32>
    %593 = arith.mulf %584, %565 : vector<8x128xf32>
    %594 = arith.mulf %578, %586 : vector<8x128xf32>
    %595 = arith.addf %593, %594 : vector<8x128xf32>
    %596 = math.tanh %595 : vector<8x128xf32>
    %597 = arith.mulf %592, %596 : vector<8x128xf32>
    %c8_165 = arith.constant 8 : index
    %c0_166 = arith.constant 0 : index
    %598 = vector.load %arg12[%c8_165, %c0_166] : memref<64x128xf32, #tpu.memory_space<vmem>>, vector<8x128xf32>
    tpu.vector_store %arg12[%c8_165, %c0_166], %597 {strides = array<i32>} : memref<64x128xf32, #tpu.memory_space<vmem>>, vector<8x128xf32>,
    %599 = vector.extract_strided_slice %534 {offsets = [16, 0], sizes = [8, 512], strides = [1, 1]} : vector<64x512xf32> to vector<8x512xf32>
    %600 = arith.truncf %597 : vector<8x128xf32> to vector<8x128xbf16>
    %cst_167 = arith.constant dense<0.000000e+00> : vector<8x512xf32>
    %601 = tpu.matmul %600, %527, %cst_167 {dimension_numbers = #tpu.dot_dimension_numbers<[1], [0], [0], [1], [0, 0, 1, 1], [], []>} : vector<8x128xbf16>, vector<128x512xbf16>, vector<8x512xf32> -> vector<8x512xf32>
    %602 = arith.addf %599, %601 : vector<8x512xf32>
    %603 = vector.extract_strided_slice %602 {offsets = [0, 0], sizes = [8, 128], strides = [1, 1]} : vector<8x512xf32> to vector<8x128xf32>
    %604 = arith.negf %603 : vector<8x128xf32>
    %605 = math.exp %604 : vector<8x128xf32>
    %cst_168 = arith.constant 1.000000e+00 : f32
    %606 = vector.broadcast %cst_168 : f32 to vector<8x128xf32>
    %607 = arith.addf %606, %605 : vector<8x128xf32>
    %608 = arith.divf %606, %607 : vector<8x128xf32>
    %609 = vector.extract_strided_slice %602 {offsets = [0, 128], sizes = [8, 128], strides = [1, 1]} : vector<8x512xf32> to vector<8x128xf32>
    %610 = arith.negf %609 : vector<8x128xf32>
    %611 = math.exp %610 : vector<8x128xf32>
    %cst_169 = arith.constant 1.000000e+00 : f32
    %612 = vector.broadcast %cst_169 : f32 to vector<8x128xf32>
    %613 = arith.addf %612, %611 : vector<8x128xf32>
    %614 = arith.divf %612, %613 : vector<8x128xf32>
    %615 = vector.extract_strided_slice %602 {offsets = [0, 256], sizes = [8, 128], strides = [1, 1]} : vector<8x512xf32> to vector<8x128xf32>
    %616 = math.tanh %615 : vector<8x128xf32>
    %617 = vector.extract_strided_slice %602 {offsets = [0, 384], sizes = [8, 128], strides = [1, 1]} : vector<8x512xf32> to vector<8x128xf32>
    %618 = arith.negf %617 : vector<8x128xf32>
    %619 = math.exp %618 : vector<8x128xf32>
    %cst_170 = arith.constant 1.000000e+00 : f32
    %620 = vector.broadcast %cst_170 : f32 to vector<8x128xf32>
    %621 = arith.addf %620, %619 : vector<8x128xf32>
    %622 = arith.divf %620, %621 : vector<8x128xf32>
    %623 = arith.mulf %614, %595 : vector<8x128xf32>
    %624 = arith.mulf %608, %616 : vector<8x128xf32>
    %625 = arith.addf %623, %624 : vector<8x128xf32>
    %626 = math.tanh %625 : vector<8x128xf32>
    %627 = arith.mulf %622, %626 : vector<8x128xf32>
    %c16_171 = arith.constant 16 : index
    %c0_172 = arith.constant 0 : index
    %628 = vector.load %arg12[%c16_171, %c0_172] : memref<64x128xf32, #tpu.memory_space<vmem>>, vector<8x128xf32>
    tpu.vector_store %arg12[%c16_171, %c0_172], %627 {strides = array<i32>} : memref<64x128xf32, #tpu.memory_space<vmem>>, vector<8x128xf32>,
    %629 = vector.extract_strided_slice %534 {offsets = [24, 0], sizes = [8, 512], strides = [1, 1]} : vector<64x512xf32> to vector<8x512xf32>
    %630 = arith.truncf %627 : vector<8x128xf32> to vector<8x128xbf16>
    %cst_173 = arith.constant dense<0.000000e+00> : vector<8x512xf32>
    %631 = tpu.matmul %630, %527, %cst_173 {dimension_numbers = #tpu.dot_dimension_numbers<[1], [0], [0], [1], [0, 0, 1, 1], [], []>} : vector<8x128xbf16>, vector<128x512xbf16>, vector<8x512xf32> -> vector<8x512xf32>
    %632 = arith.addf %629, %631 : vector<8x512xf32>
    %633 = vector.extract_strided_slice %632 {offsets = [0, 0], sizes = [8, 128], strides = [1, 1]} : vector<8x512xf32> to vector<8x128xf32>
    %634 = arith.negf %633 : vector<8x128xf32>
    %635 = math.exp %634 : vector<8x128xf32>
    %cst_174 = arith.constant 1.000000e+00 : f32
    %636 = vector.broadcast %cst_174 : f32 to vector<8x128xf32>
    %637 = arith.addf %636, %635 : vector<8x128xf32>
    %638 = arith.divf %636, %637 : vector<8x128xf32>
    %639 = vector.extract_strided_slice %632 {offsets = [0, 128], sizes = [8, 128], strides = [1, 1]} : vector<8x512xf32> to vector<8x128xf32>
    %640 = arith.negf %639 : vector<8x128xf32>
    %641 = math.exp %640 : vector<8x128xf32>
    %cst_175 = arith.constant 1.000000e+00 : f32
    %642 = vector.broadcast %cst_175 : f32 to vector<8x128xf32>
    %643 = arith.addf %642, %641 : vector<8x128xf32>
    %644 = arith.divf %642, %643 : vector<8x128xf32>
    %645 = vector.extract_strided_slice %632 {offsets = [0, 256], sizes = [8, 128], strides = [1, 1]} : vector<8x512xf32> to vector<8x128xf32>
    %646 = math.tanh %645 : vector<8x128xf32>
    %647 = vector.extract_strided_slice %632 {offsets = [0, 384], sizes = [8, 128], strides = [1, 1]} : vector<8x512xf32> to vector<8x128xf32>
    %648 = arith.negf %647 : vector<8x128xf32>
    %649 = math.exp %648 : vector<8x128xf32>
    %cst_176 = arith.constant 1.000000e+00 : f32
    %650 = vector.broadcast %cst_176 : f32 to vector<8x128xf32>
    %651 = arith.addf %650, %649 : vector<8x128xf32>
    %652 = arith.divf %650, %651 : vector<8x128xf32>
    %653 = arith.mulf %644, %625 : vector<8x128xf32>
    %654 = arith.mulf %638, %646 : vector<8x128xf32>
    %655 = arith.addf %653, %654 : vector<8x128xf32>
    %656 = math.tanh %655 : vector<8x128xf32>
    %657 = arith.mulf %652, %656 : vector<8x128xf32>
    %c24_177 = arith.constant 24 : index
    %c0_178 = arith.constant 0 : index
    %658 = vector.load %arg12[%c24_177, %c0_178] : memref<64x128xf32, #tpu.memory_space<vmem>>, vector<8x128xf32>
    tpu.vector_store %arg12[%c24_177, %c0_178], %657 {strides = array<i32>} : memref<64x128xf32, #tpu.memory_space<vmem>>, vector<8x128xf32>,
    %659 = vector.extract_strided_slice %534 {offsets = [32, 0], sizes = [8, 512], strides = [1, 1]} : vector<64x512xf32> to vector<8x512xf32>
    %660 = arith.truncf %657 : vector<8x128xf32> to vector<8x128xbf16>
    %cst_179 = arith.constant dense<0.000000e+00> : vector<8x512xf32>
    %661 = tpu.matmul %660, %527, %cst_179 {dimension_numbers = #tpu.dot_dimension_numbers<[1], [0], [0], [1], [0, 0, 1, 1], [], []>} : vector<8x128xbf16>, vector<128x512xbf16>, vector<8x512xf32> -> vector<8x512xf32>
    %662 = arith.addf %659, %661 : vector<8x512xf32>
    %663 = vector.extract_strided_slice %662 {offsets = [0, 0], sizes = [8, 128], strides = [1, 1]} : vector<8x512xf32> to vector<8x128xf32>
    %664 = arith.negf %663 : vector<8x128xf32>
    %665 = math.exp %664 : vector<8x128xf32>
    %cst_180 = arith.constant 1.000000e+00 : f32
    %666 = vector.broadcast %cst_180 : f32 to vector<8x128xf32>
    %667 = arith.addf %666, %665 : vector<8x128xf32>
    %668 = arith.divf %666, %667 : vector<8x128xf32>
    %669 = vector.extract_strided_slice %662 {offsets = [0, 128], sizes = [8, 128], strides = [1, 1]} : vector<8x512xf32> to vector<8x128xf32>
    %670 = arith.negf %669 : vector<8x128xf32>
    %671 = math.exp %670 : vector<8x128xf32>
    %cst_181 = arith.constant 1.000000e+00 : f32
    %672 = vector.broadcast %cst_181 : f32 to vector<8x128xf32>
    %673 = arith.addf %672, %671 : vector<8x128xf32>
    %674 = arith.divf %672, %673 : vector<8x128xf32>
    %675 = vector.extract_strided_slice %662 {offsets = [0, 256], sizes = [8, 128], strides = [1, 1]} : vector<8x512xf32> to vector<8x128xf32>
    %676 = math.tanh %675 : vector<8x128xf32>
    %677 = vector.extract_strided_slice %662 {offsets = [0, 384], sizes = [8, 128], strides = [1, 1]} : vector<8x512xf32> to vector<8x128xf32>
    %678 = arith.negf %677 : vector<8x128xf32>
    %679 = math.exp %678 : vector<8x128xf32>
    %cst_182 = arith.constant 1.000000e+00 : f32
    %680 = vector.broadcast %cst_182 : f32 to vector<8x128xf32>
    %681 = arith.addf %680, %679 : vector<8x128xf32>
    %682 = arith.divf %680, %681 : vector<8x128xf32>
    %683 = arith.mulf %674, %655 : vector<8x128xf32>
    %684 = arith.mulf %668, %676 : vector<8x128xf32>
    %685 = arith.addf %683, %684 : vector<8x128xf32>
    %686 = math.tanh %685 : vector<8x128xf32>
    %687 = arith.mulf %682, %686 : vector<8x128xf32>
    %c32_183 = arith.constant 32 : index
    %c0_184 = arith.constant 0 : index
    %688 = vector.load %arg12[%c32_183, %c0_184] : memref<64x128xf32, #tpu.memory_space<vmem>>, vector<8x128xf32>
    tpu.vector_store %arg12[%c32_183, %c0_184], %687 {strides = array<i32>} : memref<64x128xf32, #tpu.memory_space<vmem>>, vector<8x128xf32>,
    %689 = vector.extract_strided_slice %534 {offsets = [40, 0], sizes = [8, 512], strides = [1, 1]} : vector<64x512xf32> to vector<8x512xf32>
    %690 = arith.truncf %687 : vector<8x128xf32> to vector<8x128xbf16>
    %cst_185 = arith.constant dense<0.000000e+00> : vector<8x512xf32>
    %691 = tpu.matmul %690, %527, %cst_185 {dimension_numbers = #tpu.dot_dimension_numbers<[1], [0], [0], [1], [0, 0, 1, 1], [], []>} : vector<8x128xbf16>, vector<128x512xbf16>, vector<8x512xf32> -> vector<8x512xf32>
    %692 = arith.addf %689, %691 : vector<8x512xf32>
    %693 = vector.extract_strided_slice %692 {offsets = [0, 0], sizes = [8, 128], strides = [1, 1]} : vector<8x512xf32> to vector<8x128xf32>
    %694 = arith.negf %693 : vector<8x128xf32>
    %695 = math.exp %694 : vector<8x128xf32>
    %cst_186 = arith.constant 1.000000e+00 : f32
    %696 = vector.broadcast %cst_186 : f32 to vector<8x128xf32>
    %697 = arith.addf %696, %695 : vector<8x128xf32>
    %698 = arith.divf %696, %697 : vector<8x128xf32>
    %699 = vector.extract_strided_slice %692 {offsets = [0, 128], sizes = [8, 128], strides = [1, 1]} : vector<8x512xf32> to vector<8x128xf32>
    %700 = arith.negf %699 : vector<8x128xf32>
    %701 = math.exp %700 : vector<8x128xf32>
    %cst_187 = arith.constant 1.000000e+00 : f32
    %702 = vector.broadcast %cst_187 : f32 to vector<8x128xf32>
    %703 = arith.addf %702, %701 : vector<8x128xf32>
    %704 = arith.divf %702, %703 : vector<8x128xf32>
    %705 = vector.extract_strided_slice %692 {offsets = [0, 256], sizes = [8, 128], strides = [1, 1]} : vector<8x512xf32> to vector<8x128xf32>
    %706 = math.tanh %705 : vector<8x128xf32>
    %707 = vector.extract_strided_slice %692 {offsets = [0, 384], sizes = [8, 128], strides = [1, 1]} : vector<8x512xf32> to vector<8x128xf32>
    %708 = arith.negf %707 : vector<8x128xf32>
    %709 = math.exp %708 : vector<8x128xf32>
    %cst_188 = arith.constant 1.000000e+00 : f32
    %710 = vector.broadcast %cst_188 : f32 to vector<8x128xf32>
    %711 = arith.addf %710, %709 : vector<8x128xf32>
    %712 = arith.divf %710, %711 : vector<8x128xf32>
    %713 = arith.mulf %704, %685 : vector<8x128xf32>
    %714 = arith.mulf %698, %706 : vector<8x128xf32>
    %715 = arith.addf %713, %714 : vector<8x128xf32>
    %716 = math.tanh %715 : vector<8x128xf32>
    %717 = arith.mulf %712, %716 : vector<8x128xf32>
    %c40_189 = arith.constant 40 : index
    %c0_190 = arith.constant 0 : index
    %718 = vector.load %arg12[%c40_189, %c0_190] : memref<64x128xf32, #tpu.memory_space<vmem>>, vector<8x128xf32>
    tpu.vector_store %arg12[%c40_189, %c0_190], %717 {strides = array<i32>} : memref<64x128xf32, #tpu.memory_space<vmem>>, vector<8x128xf32>,
    %719 = vector.extract_strided_slice %534 {offsets = [48, 0], sizes = [8, 512], strides = [1, 1]} : vector<64x512xf32> to vector<8x512xf32>
    %720 = arith.truncf %717 : vector<8x128xf32> to vector<8x128xbf16>
    %cst_191 = arith.constant dense<0.000000e+00> : vector<8x512xf32>
    %721 = tpu.matmul %720, %527, %cst_191 {dimension_numbers = #tpu.dot_dimension_numbers<[1], [0], [0], [1], [0, 0, 1, 1], [], []>} : vector<8x128xbf16>, vector<128x512xbf16>, vector<8x512xf32> -> vector<8x512xf32>
    %722 = arith.addf %719, %721 : vector<8x512xf32>
    %723 = vector.extract_strided_slice %722 {offsets = [0, 0], sizes = [8, 128], strides = [1, 1]} : vector<8x512xf32> to vector<8x128xf32>
    %724 = arith.negf %723 : vector<8x128xf32>
    %725 = math.exp %724 : vector<8x128xf32>
    %cst_192 = arith.constant 1.000000e+00 : f32
    %726 = vector.broadcast %cst_192 : f32 to vector<8x128xf32>
    %727 = arith.addf %726, %725 : vector<8x128xf32>
    %728 = arith.divf %726, %727 : vector<8x128xf32>
    %729 = vector.extract_strided_slice %722 {offsets = [0, 128], sizes = [8, 128], strides = [1, 1]} : vector<8x512xf32> to vector<8x128xf32>
    %730 = arith.negf %729 : vector<8x128xf32>
    %731 = math.exp %730 : vector<8x128xf32>
    %cst_193 = arith.constant 1.000000e+00 : f32
    %732 = vector.broadcast %cst_193 : f32 to vector<8x128xf32>
    %733 = arith.addf %732, %731 : vector<8x128xf32>
    %734 = arith.divf %732, %733 : vector<8x128xf32>
    %735 = vector.extract_strided_slice %722 {offsets = [0, 256], sizes = [8, 128], strides = [1, 1]} : vector<8x512xf32> to vector<8x128xf32>
    %736 = math.tanh %735 : vector<8x128xf32>
    %737 = vector.extract_strided_slice %722 {offsets = [0, 384], sizes = [8, 128], strides = [1, 1]} : vector<8x512xf32> to vector<8x128xf32>
    %738 = arith.negf %737 : vector<8x128xf32>
    %739 = math.exp %738 : vector<8x128xf32>
    %cst_194 = arith.constant 1.000000e+00 : f32
    %740 = vector.broadcast %cst_194 : f32 to vector<8x128xf32>
    %741 = arith.addf %740, %739 : vector<8x128xf32>
    %742 = arith.divf %740, %741 : vector<8x128xf32>
    %743 = arith.mulf %734, %715 : vector<8x128xf32>
    %744 = arith.mulf %728, %736 : vector<8x128xf32>
    %745 = arith.addf %743, %744 : vector<8x128xf32>
    %746 = math.tanh %745 : vector<8x128xf32>
    %747 = arith.mulf %742, %746 : vector<8x128xf32>
    %c48_195 = arith.constant 48 : index
    %c0_196 = arith.constant 0 : index
    %748 = vector.load %arg12[%c48_195, %c0_196] : memref<64x128xf32, #tpu.memory_space<vmem>>, vector<8x128xf32>
    tpu.vector_store %arg12[%c48_195, %c0_196], %747 {strides = array<i32>} : memref<64x128xf32, #tpu.memory_space<vmem>>, vector<8x128xf32>,
    %749 = vector.extract_strided_slice %534 {offsets = [56, 0], sizes = [8, 512], strides = [1, 1]} : vector<64x512xf32> to vector<8x512xf32>
    %750 = arith.truncf %747 : vector<8x128xf32> to vector<8x128xbf16>
    %cst_197 = arith.constant dense<0.000000e+00> : vector<8x512xf32>
    %751 = tpu.matmul %750, %527, %cst_197 {dimension_numbers = #tpu.dot_dimension_numbers<[1], [0], [0], [1], [0, 0, 1, 1], [], []>} : vector<8x128xbf16>, vector<128x512xbf16>, vector<8x512xf32> -> vector<8x512xf32>
    %752 = arith.addf %749, %751 : vector<8x512xf32>
    %753 = vector.extract_strided_slice %752 {offsets = [0, 0], sizes = [8, 128], strides = [1, 1]} : vector<8x512xf32> to vector<8x128xf32>
    %754 = arith.negf %753 : vector<8x128xf32>
    %755 = math.exp %754 : vector<8x128xf32>
    %cst_198 = arith.constant 1.000000e+00 : f32
    %756 = vector.broadcast %cst_198 : f32 to vector<8x128xf32>
    %757 = arith.addf %756, %755 : vector<8x128xf32>
    %758 = arith.divf %756, %757 : vector<8x128xf32>
    %759 = vector.extract_strided_slice %752 {offsets = [0, 128], sizes = [8, 128], strides = [1, 1]} : vector<8x512xf32> to vector<8x128xf32>
    %760 = arith.negf %759 : vector<8x128xf32>
    %761 = math.exp %760 : vector<8x128xf32>
    %cst_199 = arith.constant 1.000000e+00 : f32
    %762 = vector.broadcast %cst_199 : f32 to vector<8x128xf32>
    %763 = arith.addf %762, %761 : vector<8x128xf32>
    %764 = arith.divf %762, %763 : vector<8x128xf32>
    %765 = vector.extract_strided_slice %752 {offsets = [0, 256], sizes = [8, 128], strides = [1, 1]} : vector<8x512xf32> to vector<8x128xf32>
    %766 = math.tanh %765 : vector<8x128xf32>
    %767 = vector.extract_strided_slice %752 {offsets = [0, 384], sizes = [8, 128], strides = [1, 1]} : vector<8x512xf32> to vector<8x128xf32>
    %768 = arith.negf %767 : vector<8x128xf32>
    %769 = math.exp %768 : vector<8x128xf32>
    %cst_200 = arith.constant 1.000000e+00 : f32
    %770 = vector.broadcast %cst_200 : f32 to vector<8x128xf32>
    %771 = arith.addf %770, %769 : vector<8x128xf32>
    %772 = arith.divf %770, %771 : vector<8x128xf32>
    %773 = arith.mulf %764, %745 : vector<8x128xf32>
    %774 = arith.mulf %758, %766 : vector<8x128xf32>
    %775 = arith.addf %773, %774 : vector<8x128xf32>
    %776 = math.tanh %775 : vector<8x128xf32>
    %777 = arith.mulf %772, %776 : vector<8x128xf32>
    %c56_201 = arith.constant 56 : index
    %c0_202 = arith.constant 0 : index
    %778 = vector.load %arg12[%c56_201, %c0_202] : memref<64x128xf32, #tpu.memory_space<vmem>>, vector<8x128xf32>
    tpu.vector_store %arg12[%c56_201, %c0_202], %777 {strides = array<i32>} : memref<64x128xf32, #tpu.memory_space<vmem>>, vector<8x128xf32>,
    %c2_203 = arith.constant 2 : index
    %c0_204 = arith.constant 0 : index
    %c0_205 = arith.constant 0 : index
    %779 = vector.load %arg10[%c2_203, %c0_204, %c0_205] : memref<3x8x128xf32, #tpu.memory_space<vmem>>, vector<1x8x128xf32>
    %780 = vector.shape_cast %779 : vector<1x8x128xf32> to vector<8x128xf32>
    %781 = vector.shape_cast %777 : vector<8x128xf32> to vector<1x8x128xf32>
    tpu.vector_store %arg10[%c2_203, %c0_204, %c0_205], %781 {strides = array<i32>} : memref<3x8x128xf32, #tpu.memory_space<vmem>>, vector<1x8x128xf32>,
    %c2_206 = arith.constant 2 : index
    %c0_207 = arith.constant 0 : index
    %c0_208 = arith.constant 0 : index
    %782 = vector.load %arg11[%c2_206, %c0_207, %c0_208] : memref<3x8x128xf32, #tpu.memory_space<vmem>>, vector<1x8x128xf32>
    %783 = vector.shape_cast %782 : vector<1x8x128xf32> to vector<8x128xf32>
    %784 = vector.shape_cast %775 : vector<8x128xf32> to vector<1x8x128xf32>
    tpu.vector_store %arg11[%c2_206, %c0_207, %c0_208], %784 {strides = array<i32>} : memref<3x8x128xf32, #tpu.memory_space<vmem>>, vector<1x8x128xf32>,
    %c0_209 = arith.constant 0 : index
    %c0_210 = arith.constant 0 : index
    %785 = vector.load %arg12[%c0_209, %c0_210] : memref<64x128xf32, #tpu.memory_space<vmem>>, vector<64x128xf32>
    %786 = arith.truncf %785 : vector<64x128xf32> to vector<64x128xbf16>
    %c0_211 = arith.constant 0 : index
    %c0_212 = arith.constant 0 : index
    %787 = vector.load %arg7[%c0_211, %c0_212] : memref<128x256xbf16, #tpu.memory_space<vmem>>, vector<128x256xbf16>
    %cst_213 = arith.constant dense<0.000000e+00> : vector<64x256xf32>
    %788 = tpu.matmul %786, %787, %cst_213 {dimension_numbers = #tpu.dot_dimension_numbers<[1], [0], [0], [1], [0, 0, 1, 1], [], []>} : vector<64x128xbf16>, vector<128x256xbf16>, vector<64x256xf32> -> vector<64x256xf32>
    %c0_214 = arith.constant 0 : index
    %c0_215 = arith.constant 0 : index
    %789 = vector.load %arg8[%c0_214, %c0_215] : memref<1x256xf32, #tpu.memory_space<vmem>>, vector<1x256xf32>
    %790 = vector.broadcast %789 : vector<1x256xf32> to vector<64x256xf32>
    %791 = arith.addf %788, %790 : vector<64x256xf32>
    %c0_216 = arith.constant 0 : index
    %c0_217 = arith.constant 0 : index
    %792 = vector.load %arg9[%c0_216, %c0_217] : memref<64x256xf32, #tpu.memory_space<vmem>>, vector<64x256xf32>
    tpu.vector_store %arg9[%c0_216, %c0_217], %791 {strides = array<i32>} : memref<64x256xf32, #tpu.memory_space<vmem>>, vector<64x256xf32>,
    return
  }
  func.func @transform_0(%arg0: i32) -> (i32, i32) {
    %c0_i32 = arith.constant 0 : i32
    %c0_i32_0 = arith.constant 0 : i32
    %c0_i32_1 = arith.constant 0 : i32
    return %c0_i32, %c0_i32_0 : i32, i32
  }
  func.func @transform_1(%arg0: i32) -> (i32, i32, i32) {
    %c0_i32 = arith.constant 0 : i32
    %c0_i32_0 = arith.constant 0 : i32
    %c0_i32_1 = arith.constant 0 : i32
    %c0_i32_2 = arith.constant 0 : i32
    return %c0_i32, %c0_i32_0, %c0_i32_1 : i32, i32, i32
  }
  func.func @transform_2(%arg0: i32) -> (i32, i32, i32) {
    %c0_i32 = arith.constant 0 : i32
    %c0_i32_0 = arith.constant 0 : i32
    %c0_i32_1 = arith.constant 0 : i32
    %c0_i32_2 = arith.constant 0 : i32
    return %c0_i32, %c0_i32_0, %c0_i32_1 : i32, i32, i32
  }
  func.func @transform_3(%arg0: i32) -> (i32, i32, i32) {
    %c0_i32 = arith.constant 0 : i32
    %c0_i32_0 = arith.constant 0 : i32
    %c0_i32_1 = arith.constant 0 : i32
    %c0_i32_2 = arith.constant 0 : i32
    return %c0_i32, %c0_i32_0, %c0_i32_1 : i32, i32, i32
  }
  func.func @transform_4(%arg0: i32) -> (i32, i32, i32) {
    %c0_i32 = arith.constant 0 : i32
    %c0_i32_0 = arith.constant 0 : i32
    %c0_i32_1 = arith.constant 0 : i32
    %c0_i32_2 = arith.constant 0 : i32
    return %c0_i32, %c0_i32_0, %c0_i32_1 : i32, i32, i32
  }
  func.func @transform_5(%arg0: i32) -> (i32, i32, i32) {
    %c0_i32 = arith.constant 0 : i32
    %c0_i32_0 = arith.constant 0 : i32
    %c0_i32_1 = arith.constant 0 : i32
    %c0_i32_2 = arith.constant 0 : i32
    return %c0_i32, %c0_i32_0, %c0_i32_1 : i32, i32, i32
  }
  func.func @transform_6(%arg0: i32) -> (i32, i32) {
    %c0_i32 = arith.constant 0 : i32
    %c0_i32_0 = arith.constant 0 : i32
    %c0_i32_1 = arith.constant 0 : i32
    return %c0_i32, %c0_i32_0 : i32, i32
  }
  func.func @transform_7(%arg0: i32) -> (i32, i32) {
    %c0_i32 = arith.constant 0 : i32
    %c0_i32_0 = arith.constant 0 : i32
    %c0_i32_1 = arith.constant 0 : i32
    return %c0_i32, %c0_i32_0 : i32, i32
  }
  func.func @transform_8(%arg0: i32) -> (i32, i32) {
    %c0_i32 = arith.constant 0 : i32
    %c0_i32_0 = arith.constant 0 : i32
    %c0_i32_1 = arith.constant 0 : i32
    return %c0_i32, %c0_i32_0 : i32, i32
  }
  func.func @transform_9(%arg0: i32) -> (i32, i32, i32) {
    %c0_i32 = arith.constant 0 : i32
    %c0_i32_0 = arith.constant 0 : i32
    %c0_i32_1 = arith.constant 0 : i32
    %c0_i32_2 = arith.constant 0 : i32
    return %c0_i32, %c0_i32_0, %c0_i32_1 : i32, i32, i32
  }
  func.func @transform_10(%arg0: i32) -> (i32, i32, i32) {
    %c0_i32 = arith.constant 0 : i32
    %c0_i32_0 = arith.constant 0 : i32
    %c0_i32_1 = arith.constant 0 : i32
    %c0_i32_2 = arith.constant 0 : i32
    return %c0_i32, %c0_i32_0, %c0_i32_1 : i32, i32, i32
  }
}

</mosaic_0001>

<bundles_post_ra>
// kernel: rnn_model_forward.1
= control target key start
LH: loop header
LB: loop body
LE: loop exit
PB: predicated region body
PF: predicated region fallthrough
CT: control target
= control target key end

     0   :  { %16 = vsyncpa [#allocation4], 0  ;;  %s8426_s0 = inlined_call_operand.vmem [shape: f32[64,128], index: 0, kind: input, shape index: {}]   ;;  %s8427_s1 = inlined_call_operand.vmem [shape: bf16[3,128,512], index: 1, kind: input, shape index: {}]   ;;  %s8428_s2 = inlined_call_operand.hbm [shape: bf16[3,128,512], index: 2, kind: input, shape index: {}]   ;;  %s8429_s3 = inlined_call_operand.hbm [shape: f32[3,1,512], index: 3, kind: input, shape index: {}]   ;;  %s8430_s4 = inlined_call_operand.hbm [shape: f32[3,8,128], index: 4, kind: input, shape index: {}]   ;;  %s8431_s5 = inlined_call_operand.hbm [shape: f32[3,8,128], index: 5, kind: input, shape index: {}]   ;;  %s8432_s6 = inlined_call_operand.hbm [shape: bf16[128,256], index: 6, kind: input, shape index: {}]   ;;  %s8433_s7 = inlined_call_operand.vmem [shape: f32[1,256], index: 7, kind: input, shape index: {}]   ;;  %s8434_s8 = inlined_call_operand.hbm [shape: f32[64,256], index: 8, kind: output, shape index: {0}]   ;;  %s8435_s9 = inlined_call_operand.hbm [shape: f32[3,8,128], index: 9, kind: output, shape index: {1}]   ;;  %s8436_s10 = inlined_call_operand.hbm [shape: f32[3,8,128], index: 10, kind: output, shape index: {2}]  }
   0x1   :  { %17 = vsyncpa [#allocation7], 0 }
   0x2   :  { %18 = vsyncpa [#allocation10], 0 }
   0x3   :  { %19 = vsyncpa [#allocation5], 0 }
   0x4   :  { %20 = vsyncpa [#allocation14], 0  ;;  %s6121_s13 = smov [#allocation6]   ;;  %s5935_s17 = scalar_lea.hbm %s8429_s3, 192 }
   0x5   :  { %s42_s14 = sshll.u32 %s6121_s13, 4  ;;  %p5936_p0 = scmp.ne.s32.totalorder %s8429_s3, %s5935_s17  ;;  %s43_s14 = int_to_ptr.vmem [resolvable:$true] %s42_s14 }
   0x6   :  { %p5939_p1 = scmp.lt.u32.totalorder %s5935_s17, %s8429_s3 }
   0x8   :  { %p5941_p2 = pnand %p5939_p1, %p5936_p0 }
   0xa   :  { %5944 = shalt.err (!%p5941_p2)
}
   0xb   :  { %s5945_s22 = scalar_lea.vmem %s43_s14, 192  ;;  %p5950_p4 = scmp.lt.s32.totalorder %s43_s14, %s43_s14 }
   0xc   :  { %p5946_p3 = scmp.ne.s32.totalorder %s43_s14, %s5945_s22  ;;  %p5951_p5 = scmp.lt.s32.totalorder %s5945_s22, %s5945_s22 }
   0xe   :  { %p5952_p6 = por %p5951_p5, %p5950_p4 }
  0x10   :  { %p5953_p7 = pnand %p5952_p6, %p5946_p3 }
  0x12   :  { %5956 = shalt.err (!%p5953_p7)
}
  0x13   :  { %s6122_s23 = smov 64   ;;  %s6123_s24 = smov 4  }
  0x14   :  { %48 = dma.hbm_to_vmem [thread:$0]  %s8429_s3, 192, %s43_s14, [#allocation7], %s6122_s23, %s6122_s23, %s6123_s24  }
  0x15   :  { %s6124_s27 = smov [#allocation9]   ;;  %s6125_s29 = smov [#allocation3]  }
  0x16   :  { %s66_s28 = sshll.u32 %s6124_s27, 4  ;;  %s30_s30 = sshll.u32 %s6125_s29, 4  ;;  %s67_s28 = int_to_ptr.vmem [resolvable:$true] %s66_s28  ;;  %s31_s30 = int_to_ptr.vmem [resolvable:$true] %s30_s30 }
  0x17   :  { %s5957_s13 = scalar_lea.hbm %s8431_s5, 384 }
  0x18   :  { %p5958_p8 = scmp.ne.s32.totalorder %s8431_s5, %s5957_s13  ;;  %p5961_p9 = scmp.lt.u32.totalorder %s5957_s13, %s8431_s5 }
  0x1a   :  { %p5963_p10 = pnand %p5961_p9, %p5958_p8 }
  0x1c   :  { %5966 = shalt.err (!%p5963_p10)
}
  0x1d   :  { %s5967_s3 = scalar_lea.vmem %s67_s28, 384  ;;  %p5972_p12 = scmp.lt.s32.totalorder %s67_s28, %s67_s28 }
  0x1e   :  { %p5968_p11 = scmp.ne.s32.totalorder %s67_s28, %s5967_s3  ;;  %p5973_p13 = scmp.lt.s32.totalorder %s5967_s3, %s5967_s3 }
  0x20   :  { %p5974_p0 = por %p5973_p13, %p5972_p12 }
  0x22   :  { %p5975_p1 = pnand %p5974_p0, %p5968_p11 }
  0x24   :  { %5978 = shalt.err (!%p5975_p1)
}
  0x25   :  { %s6126_s14 = smov 128   ;;  %s6127_s19 = smov 8  }
  0x26   :  { %72 = dma.hbm_to_vmem [thread:$0]  %s8431_s5, 384, %s67_s28, [#allocation10], %s6126_s14, %s6126_s14, %s6127_s19  }
  0x27   :  { %s5979_s24 = scalar_lea.hbm %s8428_s2, 12288 }
  0x28   :  { %p5980_p2 = scmp.ne.s32.totalorder %s8428_s2, %s5979_s24  ;;  %p5983_p3 = scmp.lt.u32.totalorder %s5979_s24, %s8428_s2 }
  0x2a   :  { %p5985_p4 = pnand %p5983_p3, %p5980_p2 }
  0x2c   :  { %5988 = shalt.err (!%p5985_p4)
}
  0x2d   :  { %s5989_s11 = scalar_lea.vmem %s31_s30, 12288  ;;  %p5994_p6 = scmp.lt.s32.totalorder %s31_s30, %s31_s30 }
  0x2e   :  { %p5990_p5 = scmp.ne.s32.totalorder %s31_s30, %s5989_s11  ;;  %p5995_p7 = scmp.lt.s32.totalorder %s5989_s11, %s5989_s11 }
  0x30   :  { %p5996_p8 = por %p5995_p7, %p5994_p6 }
  0x32   :  { %p5997_p9 = pnand %p5996_p8, %p5990_p5 }
  0x34   :  { %6000 = shalt.err (!%p5997_p9)
}
  0x35   :  { %s6128_s5 = smov 256   ;;  %s6129_s28 = smov 16  }
  0x36   :  { %36 = dma.hbm_to_vmem [thread:$0]  %s8428_s2, 12288, %s31_s30, [#allocation4], %s6128_s5, %s6128_s5, %s6129_s28  }
  0x37   :  { %s6130_s15 = smov [#allocation8]   ;;  %s6131_s17 = smov [#allocation11]  }
  0x38   :  { %s54_s16 = sshll.u32 %s6130_s15, 4  ;;  %s78_s18 = sshll.u32 %s6131_s17, 4  ;;  %s55_s16 = int_to_ptr.vmem [resolvable:$true] %s54_s16  ;;  %s79_s18 = int_to_ptr.vmem [resolvable:$true] %s78_s18 }
  0x39   :  { %s6001_s21 = scalar_lea.hbm %s8430_s4, 384 }
  0x3a   :  { %p6002_p10 = scmp.ne.s32.totalorder %s8430_s4, %s6001_s21  ;;  %p6005_p11 = scmp.lt.u32.totalorder %s6001_s21, %s8430_s4 }
  0x3c   :  { %p6007_p12 = pnand %p6005_p11, %p6002_p10 }
  0x3e   :  { %6010 = shalt.err (!%p6007_p12)
}
  0x3f   :  { %s6011_s2 = scalar_lea.vmem %s55_s16, 384  ;;  %p6016_p0 = scmp.lt.s32.totalorder %s55_s16, %s55_s16 }
  0x40   :  { %p6012_p13 = scmp.ne.s32.totalorder %s55_s16, %s6011_s2  ;;  %p6017_p1 = scmp.lt.s32.totalorder %s6011_s2, %s6011_s2 }
  0x42   :  { %p6018_p2 = por %p6017_p1, %p6016_p0 }
  0x44   :  { %p6019_p3 = pnand %p6018_p2, %p6012_p13 }
  0x46   :  { %6022 = shalt.err (!%p6019_p3)
}
  0x47   :  { %60 = dma.hbm_to_vmem [thread:$0]  %s8430_s4, 384, %s55_s16, [#allocation7], %s6126_s14, %s6126_s14, %s6127_s19  }
  0x48   :  { %s6023_s11 = scalar_lea.hbm %s8432_s6, 2048 }
  0x49   :  { %p6024_p4 = scmp.ne.s32.totalorder %s8432_s6, %s6023_s11  ;;  %p6027_p5 = scmp.lt.u32.totalorder %s6023_s11, %s8432_s6 }
  0x4b   :  { %p6029_p6 = pnand %p6027_p5, %p6024_p4 }
  0x4d   :  { %6032 = shalt.err (!%p6029_p6)
}
  0x4e   :  { %s6033_s3 = scalar_lea.vmem %s79_s18, 2048  ;;  %p6038_p8 = scmp.lt.s32.totalorder %s79_s18, %s79_s18 }
  0x4f   :  { %p6034_p7 = scmp.ne.s32.totalorder %s79_s18, %s6033_s3  ;;  %p6039_p9 = scmp.lt.s32.totalorder %s6033_s3, %s6033_s3 }
  0x51   :  { %p6040_p10 = por %p6039_p9, %p6038_p8 }
  0x53   :  { %p6041_p11 = pnand %p6040_p10, %p6034_p7 }
  0x55   :  { %6044 = shalt.err (!%p6041_p11)
}
  0x56   :  { %84 = dma.hbm_to_vmem [thread:$0]  %s8432_s6, 2048, %s79_s18, [#allocation10], %s6126_s14, %s6126_s14, %s6127_s19  }
  0x57   :  { %6111 = dma.done.wait [#allocation4], 12288  }
  0x58   :  { %6112 = vsyncadd [#allocation4], 4294955008 }
  0x59   :  { %6113 = dma.done.wait [#allocation7], 576  }
  0x5a   :  { %6114 = vsyncadd [#allocation7], 4294966720 }
  0x5b   :  { %6115 = dma.done.wait [#allocation10], 2432  }
  0x5c   :  { %6116 = vsyncadd [#allocation10], 4294964864  ;;  %v8437_v0 = vmov 0   ;;  %v5143_v1 = vld [vmem:[%s8427_s1 + $0x4] ss:$16 sps:$4 sm:$0xff]   ;;  %v104_v33 = vld [vmem:[%s8426_s0 + $0x8] sm:$0xff] }
  0x5d   :  { %409 = vmatprep.mubr.bf16.mxu1 %v8437_v0  ;;  %718 = vmatprep.mubr.bf16.mxu0 %v8437_v0  ;;  %v5145_v2 = vld [vmem:[%s8427_s1] ss:$16 sps:$4 sm:$0xff]   ;;  %v6271_v3 = vld [vmem:[#allocation3 + $0x4] ss:$16 sps:$4 sm:$0xff]   ;;  %v5193_v35 = vld [vmem:[%s8427_s1 + $0xc] ss:$16 sps:$4 sm:$0xff]  }
  0x5e   :  { %377 = vmatprep.subr.bf16.mxu1 %v5143_v1  ;;  %v6273_v4 = vld [vmem:[#allocation3] ss:$16 sps:$4 sm:$0xff]   ;;  %v5149_v5 = vld [vmem:[%s8427_s1 + $0x24] ss:$16 sps:$4 sm:$0xff]   ;;  %686 = vmatprep.subr.bf16.mxu0 %v6271_v3  ;;  %v5191_v38 = vld [vmem:[%s8427_s1 + $0x8] ss:$16 sps:$4 sm:$0xff]  }
  0x5f   :  { %378 = vmatpush1.bf16.msra.mxu1 %v5145_v2  ;;  %v5151_v6 = vld [vmem:[%s8427_s1 + $0x20] ss:$16 sps:$4 sm:$0xff]   ;;  %v6282_v7 = vld [vmem:[#allocation3 + $0x24] ss:$16 sps:$4 sm:$0xff]   ;;  %687 = vmatpush1.bf16.msra.mxu0 %v6273_v4  ;;  %v5196_v40 = vld [vmem:[%s8427_s1 + $0x2c] ss:$16 sps:$4 sm:$0xff]  }
  0x60   :  { %379 = vmatprep.subr.bf16.mxu1 %v5149_v5  ;;  %v6285_v8 = vld [vmem:[#allocation3 + $0x20] ss:$16 sps:$4 sm:$0xff]   ;;  %688 = vmatprep.subr.bf16.mxu0 %v6282_v7  ;;  %v5155_v9 = vld [vmem:[%s8427_s1 + $0x44] ss:$16 sps:$4 sm:$0xff]   ;;  %v5194_v41 = vld [vmem:[%s8427_s1 + $0x28] ss:$16 sps:$4 sm:$0xff]  }
  0x61   :  { %v5157_v10 = vld [vmem:[%s8427_s1 + $0x40] ss:$16 sps:$4 sm:$0xff]   ;;  %v6294_v11 = vld [vmem:[#allocation3 + $0x44] ss:$16 sps:$4 sm:$0xff]   ;;  %v106_v43 = vld [vmem:[%s8426_s0 + $0x18] sm:$0xff] }
  0x62   :  { %v5161_v12 = vld [vmem:[%s8427_s1 + $0x64] ss:$16 sps:$4 sm:$0xff]   ;;  %v6300_v13 = vld [vmem:[#allocation3 + $0x40] ss:$16 sps:$4 sm:$0xff]   ;;  %v5199_v44 = vld [vmem:[%s8427_s1 + $0x4c] ss:$16 sps:$4 sm:$0xff]  }
  0x63   :  { %380 = vmatpush1.bf16.msra.mxu1 %v5151_v6  ;;  %689 = vmatpush1.bf16.msra.mxu0 %v6285_v8  ;;  %v6303_v14 = vld [vmem:[#allocation3 + $0x64] ss:$16 sps:$4 sm:$0xff]   ;;  %v5163_v15 = vld [vmem:[%s8427_s1 + $0x60] ss:$16 sps:$4 sm:$0xff]   ;;  %v5197_v46 = vld [vmem:[%s8427_s1 + $0x48] ss:$16 sps:$4 sm:$0xff]  }
  0x64   :  { %381 = vmatprep.subr.bf16.mxu1 %v5155_v9  ;;  %690 = vmatprep.subr.bf16.mxu0 %v6294_v11  ;;  %v5167_v16 = vld [vmem:[%s8427_s1 + $0x84] ss:$16 sps:$4 sm:$0xff]   ;;  %v6312_v17 = vld [vmem:[#allocation3 + $0x60] ss:$16 sps:$4 sm:$0xff]   ;;  %v5202_v47 = vld [vmem:[%s8427_s1 + $0x6c] ss:$16 sps:$4 sm:$0xff]  }
  0x65   :  { %v6315_v18 = vld [vmem:[#allocation3 + $0x84] ss:$16 sps:$4 sm:$0xff]   ;;  %v5169_v19 = vld [vmem:[%s8427_s1 + $0x80] ss:$16 sps:$4 sm:$0xff]   ;;  %v5200_v48 = vld [vmem:[%s8427_s1 + $0x68] ss:$16 sps:$4 sm:$0xff]  }
  0x66   :  { %v5173_v20 = vld [vmem:[%s8427_s1 + $0xa4] ss:$16 sps:$4 sm:$0xff]   ;;  %v6324_v21 = vld [vmem:[#allocation3 + $0x80] ss:$16 sps:$4 sm:$0xff]   ;;  %v108_v50 = vld [vmem:[%s8426_s0 + $0x28] sm:$0xff] }
  0x67   :  { %382 = vmatpush1.bf16.msra.mxu1 %v5157_v10  ;;  %691 = vmatpush1.bf16.msra.mxu0 %v6300_v13  ;;  %v6327_v22 = vld [vmem:[#allocation3 + $0xa4] ss:$16 sps:$4 sm:$0xff]   ;;  %v5175_v23 = vld [vmem:[%s8427_s1 + $0xa0] ss:$16 sps:$4 sm:$0xff]   ;;  %v5205_v51 = vld [vmem:[%s8427_s1 + $0x8c] ss:$16 sps:$4 sm:$0xff]  }
  0x68   :  { %383 = vmatprep.subr.bf16.mxu1 %v5161_v12  ;;  %692 = vmatprep.subr.bf16.mxu0 %v6303_v14  ;;  %v5179_v24 = vld [vmem:[%s8427_s1 + $0xc4] ss:$16 sps:$4 sm:$0xff]   ;;  %v6336_v25 = vld [vmem:[#allocation3 + $0xa0] ss:$16 sps:$4 sm:$0xff]   ;;  %v5203_v52 = vld [vmem:[%s8427_s1 + $0x88] ss:$16 sps:$4 sm:$0xff]  }
  0x69   :  { %v6339_v26 = vld [vmem:[#allocation3 + $0xc4] ss:$16 sps:$4 sm:$0xff]   ;;  %v5181_v27 = vld [vmem:[%s8427_s1 + $0xc0] ss:$16 sps:$4 sm:$0xff]   ;;  %v5208_v54 = vld [vmem:[%s8427_s1 + $0xac] ss:$16 sps:$4 sm:$0xff]  }
  0x6a   :  { %v5185_v28 = vld [vmem:[%s8427_s1 + $0xe4] ss:$16 sps:$4 sm:$0xff]   ;;  %v6348_v29 = vld [vmem:[#allocation3 + $0xc0] ss:$16 sps:$4 sm:$0xff]   ;;  %v5206_v55 = vld [vmem:[%s8427_s1 + $0xa8] ss:$16 sps:$4 sm:$0xff]  }
  0x6b   :  { %384 = vmatpush1.bf16.msra.mxu1 %v5163_v15  ;;  %693 = vmatpush1.bf16.msra.mxu0 %v6312_v17  ;;  %v5187_v30 = vld [vmem:[%s8427_s1 + $0xe0] ss:$16 sps:$4 sm:$0xff]   ;;  %v6354_v31 = vld [vmem:[#allocation3 + $0xe4] ss:$16 sps:$4 sm:$0xff]   ;;  %v110_v57 = vld [vmem:[%s8426_s0 + $0x38] sm:$0xff] }
  0x6c   :  { %385 = vmatprep.subr.bf16.mxu1 %v5167_v16  ;;  %694 = vmatprep.subr.bf16.mxu0 %v6315_v18  ;;  %v103_v32 = vld [vmem:[%s8426_s0] sm:$0xff]  ;;  %v523_v36 = vld [vmem:[#allocation8] sm:$0xff]  ;;  %v5209_v59 = vld [vmem:[%s8427_s1 + $0xc8] ss:$16 sps:$4 sm:$0xff]  }
  0x6d   :  { %v6362_v34 = vld [vmem:[#allocation3 + $0xe0] ss:$16 sps:$4 sm:$0xff]   ;;  %v6369_v37 = vpack.c.bf16 %v104_v33, %v103_v32  ;;  %v6374_v39 = vpack.c.bf16 %v523_v36, %v523_v36  ;;  %v5211_v58 = vld [vmem:[%s8427_s1 + $0xcc] ss:$16 sps:$4 sm:$0xff]   ;;  %v5212_v62 = vld [vmem:[%s8427_s1 + $0xe8] ss:$16 sps:$4 sm:$0xff]  }
  0x6e   :  { %v105_v42 = vld [vmem:[%s8426_s0 + $0x10] sm:$0xff]  ;;  %v107_v49 = vld [vmem:[%s8426_s0 + $0x20] sm:$0xff]  ;;  %v5214_v61 = vld [vmem:[%s8427_s1 + $0xec] ss:$16 sps:$4 sm:$0xff]  }
  0x6f   :  { %386 = vmatpush1.bf16.msra.mxu1 %v5169_v19  ;;  %695 = vmatpush1.bf16.msra.mxu0 %v6324_v21  ;;  %v6398_v45 = vpack.c.bf16 %v106_v43, %v105_v42  ;;  %v193_v53 = vpack.c.bf16 %v108_v50, %v107_v49  ;;  %v109_v56 = vld [vmem:[%s8426_s0 + $0x30] sm:$0xff]  ;;  %v6458_v63 = vld [vmem:[#allocation3 + $0xc] ss:$16 sps:$4 sm:$0xff]   ;;  %v6462_v1 = vld [vmem:[#allocation3 + $0x8] ss:$16 sps:$4 sm:$0xff]  }
  0x70   :  { %387 = vmatprep.subr.bf16.mxu1 %v5173_v20  ;;  %696 = vmatprep.subr.bf16.mxu0 %v6327_v22  ;;  %v194_v60 = vpack.c.bf16 %v110_v57, %v109_v56  ;;  %v6465_v2 = vld [vmem:[#allocation3 + $0x2c] ss:$16 sps:$4 sm:$0xff]   ;;  %v6479_v6 = vld [vmem:[#allocation3 + $0x48] ss:$16 sps:$4 sm:$0xff]   ;;  %v195_v32 = vld [vmem:[#allocation6] sm:$0xf] }
  0x71   :  { %v6473_v5 = vld [vmem:[#allocation3 + $0x4c] ss:$16 sps:$4 sm:$0xff]   ;;  %v6485_v10 = vld [vmem:[#allocation3 + $0x68] ss:$16 sps:$4 sm:$0xff]  }
  0x72   :  { %v6481_v9 = vld [vmem:[#allocation3 + $0x6c] ss:$16 sps:$4 sm:$0xff]   ;;  %v6499_v16 = vld [vmem:[#allocation3 + $0xa8] ss:$16 sps:$4 sm:$0xff]  }
  0x73   :  { %388 = vmatpush1.bf16.msra.mxu1 %v5175_v23  ;;  %697 = vmatpush1.bf16.msra.mxu0 %v6336_v25  ;;  %v6488_v12 = vld [vmem:[#allocation3 + $0x8c] ss:$16 sps:$4 sm:$0xff]   ;;  %v6506_v20 = vld [vmem:[#allocation3 + $0xc8] ss:$16 sps:$4 sm:$0xff]  }
  0x74   :  { %389 = vmatprep.subr.bf16.mxu1 %v5179_v24  ;;  %698 = vmatprep.subr.bf16.mxu0 %v6339_v26  ;;  %v6495_v15 = vld [vmem:[#allocation3 + $0xac] ss:$16 sps:$4 sm:$0xff]   ;;  %v6512_v24 = vld [vmem:[#allocation3 + $0xe8] ss:$16 sps:$4 sm:$0xff]  }
  0x75   :  { %v6501_v19 = vld [vmem:[#allocation3 + $0xcc] ss:$16 sps:$4 sm:$0xff]  }
  0x76   :  { %v6508_v23 = vld [vmem:[#allocation3 + $0xec] ss:$16 sps:$4 sm:$0xff]  }
  0x77   :  { %390 = vmatpush1.bf16.msra.mxu1 %v5181_v27  ;;  %699 = vmatpush1.bf16.msra.mxu0 %v6348_v29  ;;  %v197_v27 = vlaneseq }
  0x78   :  { %391 = vmatprep.subr.bf16.mxu1 %v5185_v28  ;;  %700 = vmatprep.subr.bf16.mxu0 %v6354_v31 }
  0x79   :  { %v198_v28 = vshrl.u32 %v197_v27, 7 }
  0x7b   :  { %392 = vmatpush1.bf16.msra.mxu1 %v5187_v30  ;;  %701 = vmatpush1.bf16.msra.mxu0 %v6362_v34  ;;  %v6537_v30 = vsub.s32 0, %v198_v28  ;;  %v6539_v33 = vsub.s32 1, %v198_v28 }
  0x7c   :  { %450 = vmatprep.subr.bf16.mxu1 %v5193_v35  ;;  %798 = vmatprep.subr.bf16.mxu0 %v6271_v3 }
  0x7d   :  { %8447 = vst [vmem:[#allocation21_spill] sm:$0xff] %v6537_v30  ;;  %8448 = vst [vmem:[#allocation22_spill] sm:$0xff] %v6539_v33  ;;  %v200_v35 = vrot.slane %v195_v32, %v6537_v30  ;;  %v204_v36 = vrot.slane %v195_v32, %v6539_v33 }
  0x7e   :  { %410 = vmatmul.mubr.bf16.vlgmr.msra.gmra.mrb[0].mxu1 %v6369_v37  ;;  %719 = vmatmul.mubr.bf16.vlgmr.msra.gmra.mrb[0].mxu0 %v6374_v39 }
  0x7f   :  { %451 = vmatpush1.bf16.msra.mxu1 %v5191_v38  ;;  %419 = vmatprep.mubr.bf16.mxu1 %v8437_v0 }
  0x80   :  { %452 = vmatprep.subr.bf16.mxu1 %v5196_v40  ;;  %799 = vmatpush1.bf16.msra.mxu0 %v6273_v4  ;;  %v6469_v4 = vld [vmem:[#allocation3 + $0x28] ss:$16 sps:$4 sm:$0xff]  }
  0x81   :  { %830 = vmatprep.mubr.bf16.mxu0 %v8437_v0  ;;  %800 = vmatprep.subr.bf16.mxu0 %v6282_v7 }
  0x83   :  { %453 = vmatpush1.bf16.msra.mxu1 %v5194_v41 }
  0x84   :  { %454 = vmatprep.subr.bf16.mxu1 %v5199_v44  ;;  %801 = vmatpush1.bf16.msra.mxu0 %v6285_v8 }
  0x85   :  { %802 = vmatprep.subr.bf16.mxu0 %v6294_v11 }
  0x86   :  { %420 = vmatmul.mubr.bf16.gmra.mrb[4].mxu1 %v6398_v45 }
  0x87   :  { %455 = vmatpush1.bf16.msra.mxu1 %v5197_v46  ;;  %429 = vmatprep.mubr.bf16.mxu1 %v8437_v0 }
  0x88   :  { %456 = vmatprep.subr.bf16.mxu1 %v5202_v47  ;;  %803 = vmatpush1.bf16.msra.mxu0 %v6300_v13 }
  0x89   :  { %804 = vmatprep.subr.bf16.mxu0 %v6303_v14 }
  0x8b   :  { %457 = vmatpush1.bf16.msra.mxu1 %v5200_v48 }
  0x8c   :  { %458 = vmatprep.subr.bf16.mxu1 %v5205_v51  ;;  %805 = vmatpush1.bf16.msra.mxu0 %v6312_v17 }
  0x8d   :  { %806 = vmatprep.subr.bf16.mxu0 %v6315_v18 }
  0x8e   :  { %430 = vmatmul.mubr.bf16.gmra.mrb[8].mxu1 %v193_v53 }
  0x8f   :  { %459 = vmatpush1.bf16.msra.mxu1 %v5203_v52  ;;  %439 = vmatprep.mubr.bf16.mxu1 %v8437_v0 }
  0x90   :  { %460 = vmatprep.subr.bf16.mxu1 %v5208_v54  ;;  %807 = vmatpush1.bf16.msra.mxu0 %v6324_v21 }
  0x91   :  { %808 = vmatprep.subr.bf16.mxu0 %v6327_v22 }
  0x93   :  { %461 = vmatpush1.bf16.msra.mxu1 %v5206_v55 }
  0x94   :  { %462 = vmatprep.subr.bf16.mxu1 %v5211_v58  ;;  %809 = vmatpush1.bf16.msra.mxu0 %v6336_v25 }
  0x95   :  { %810 = vmatprep.subr.bf16.mxu0 %v6339_v26 }
  0x96   :  { %440 = vmatmul.mubr.bf16.gmra.mrb[12].mxu1 %v194_v60 }
  0x97   :  { %463 = vmatpush1.bf16.msra.mxu1 %v5209_v59  ;;  %482 = vmatprep.mubr.bf16.mxu1 %v8437_v0 }
  0x98   :  { %464 = vmatprep.subr.bf16.mxu1 %v5214_v61  ;;  %811 = vmatpush1.bf16.msra.mxu0 %v6348_v29 }
  0x99   :  { %812 = vmatprep.subr.bf16.mxu0 %v6354_v31 }
  0x9b   :  { %465 = vmatpush1.bf16.msra.mxu1 %v5212_v62 }
  0x9c   :  { %727 = vmatprep.subr.bf16.mxu1 %v6458_v63  ;;  %813 = vmatpush1.bf16.msra.mxu0 %v6362_v34 }
  0x9d   :  { %910 = vmatprep.subr.bf16.mxu0 %v6271_v3  ;;  %v6493_v3 = vld [vmem:[#allocation3 + $0x88] ss:$16 sps:$4 sm:$0xff]  }
  0x9e   :  { %483 = vmatmul.mubr.bf16.vlgmr.msra.gmra.mrb[16].mxu1 %v6369_v37 }
  0x9f   :  { %728 = vmatpush1.bf16.msra.mxu1 %v6462_v1  ;;  %492 = vmatprep.mubr.bf16.mxu1 %v8437_v0 }
  0xa0   :  { %729 = vmatprep.subr.bf16.mxu1 %v6465_v2 }
  0xa3   :  { %730 = vmatpush1.bf16.msra.mxu1 %v6469_v4 }
  0xa4   :  { %731 = vmatprep.subr.bf16.mxu1 %v6473_v5 }
  0xa6   :  { %493 = vmatmul.mubr.bf16.gmra.mrb[20].mxu1 %v6398_v45 }
  0xa7   :  { %732 = vmatpush1.bf16.msra.mxu1 %v6479_v6  ;;  %502 = vmatprep.mubr.bf16.mxu1 %v8437_v0 }
  0xa8   :  { %733 = vmatprep.subr.bf16.mxu1 %v6481_v9 }
  0xab   :  { %734 = vmatpush1.bf16.msra.mxu1 %v6485_v10 }
  0xac   :  { %735 = vmatprep.subr.bf16.mxu1 %v6488_v12 }
  0xae   :  { %503 = vmatmul.mubr.bf16.gmra.mrb[24].mxu1 %v193_v53 }
  0xaf   :  { %736 = vmatpush1.bf16.msra.mxu1 %v6493_v3  ;;  %512 = vmatprep.mubr.bf16.mxu1 %v8437_v0 }
  0xb0   :  { %737 = vmatprep.subr.bf16.mxu1 %v6495_v15 }
  0xb3   :  { %738 = vmatpush1.bf16.msra.mxu1 %v6499_v16 }
  0xb4   :  { %739 = vmatprep.subr.bf16.mxu1 %v6501_v19 }
  0xb6   :  { %513 = vmatmul.mubr.bf16.gmra.mrb[28].mxu1 %v194_v60 }
  0xb7   :  { %740 = vmatpush1.bf16.msra.mxu1 %v6506_v20  ;;  %759 = vmatprep.mubr.bf16.mxu1 %v8437_v0 }
  0xb8   :  { %741 = vmatprep.subr.bf16.mxu1 %v6508_v23 }
  0xbb   :  { %742 = vmatpush1.bf16.msra.mxu1 %v6512_v24 }
  0xbc   :  { %839 = vmatprep.subr.bf16.mxu1 %v6458_v63 }
  0xbe   :  { %760 = vmatmul.mubr.bf16.vlgmr.msra.gmra.mrb[32].mxu1 %v6374_v39 }
  0xbf   :  { %840 = vmatpush1.bf16.msra.mxu1 %v6462_v1  ;;  %871 = vmatprep.mubr.bf16.mxu1 %v8437_v0 }
  0xc0   :  { %841 = vmatprep.subr.bf16.mxu1 %v6465_v2 }
  0xc3   :  { %842 = vmatpush1.bf16.msra.mxu1 %v6469_v4 }
  0xc4   :  { %843 = vmatprep.subr.bf16.mxu1 %v6473_v5 }
  0xc7   :  { %844 = vmatpush1.bf16.msra.mxu1 %v6479_v6 }
  0xc8   :  { %845 = vmatprep.subr.bf16.mxu1 %v6481_v9 }
  0xcb   :  { %846 = vmatpush1.bf16.msra.mxu1 %v6485_v10 }
  0xcc   :  { %847 = vmatprep.subr.bf16.mxu1 %v6488_v12 }
  0xcf   :  { %848 = vmatpush1.bf16.msra.mxu1 %v6493_v3 }
  0xd0   :  { %849 = vmatprep.subr.bf16.mxu1 %v6495_v15 }
  0xd3   :  { %850 = vmatpush1.bf16.msra.mxu1 %v6499_v16 }
  0xd4   :  { %851 = vmatprep.subr.bf16.mxu1 %v6501_v19 }
  0xd7   :  { %852 = vmatpush1.bf16.msra.mxu1 %v6506_v20 }
  0xd8   :  { %853 = vmatprep.subr.bf16.mxu1 %v6508_v23 }
  0xdb   :  { %854 = vmatpush1.bf16.msra.mxu1 %v6512_v24 }
  0xdc   :  { %951 = vmatprep.subr.bf16.mxu1 %v6458_v63 }
 0x151   :  { %v411_v37 = vpop.f32.mrb[0].mxu1  ;;  %v720_v42 = vpop.f32.mrb[0].mxu0 }
 0x152   :  { %v412_v38 = vadd.f32 %v411_v37, %v200_v35  ;;  %v413_v39 = vpop.f32.mrb[1].mxu1  ;;  %v722_v46 = vpop.f32.mrb[1].mxu0 }
 0x153   :  { %v414_v40 = vadd.f32 %v413_v39, %v204_v36  ;;  %v415_v41 = vpop.f32.mrb[2].mxu1  ;;  %v724_v49 = vpop.f32.mrb[2].mxu0 }
 0x154   :  { %v6543_v43 = vadd.f32 %v415_v41, %v200_v35  ;;  %v768_v44 = vadd.f32 %v720_v42, %v412_v38  ;;  %v417_v45 = vpop.f32.mrb[3].mxu1  ;;  %v725_v50 = vpop.f32.mrb[3].mxu0 }
 0x155   :  { %v6545_v47 = vadd.f32 %v417_v45, %v204_v36  ;;  %v769_v48 = vadd.f32 %v722_v46, %v414_v40 }
 0x159   :  { %v421_v51 = vpop.f32.mrb[4].mxu1 }
 0x15a   :  { %v6547_v52 = vadd.f32 %v421_v51, %v200_v35  ;;  %v423_v53 = vpop.f32.mrb[5].mxu1 }
 0x15b   :  { %v6549_v54 = vadd.f32 %v423_v53, %v204_v36  ;;  %v425_v55 = vpop.f32.mrb[6].mxu1  ;;  %v6571_v53 = vsub.s32 2, %v198_v28 }
 0x15c   :  { %v6551_v56 = vadd.f32 %v425_v55, %v200_v35  ;;  %v427_v57 = vpop.f32.mrb[7].mxu1  ;;  %v6573_v55 = vsub.s32 3, %v198_v28 }
 0x15d   :  { %v6553_v58 = vadd.f32 %v427_v57, %v204_v36  ;;  %8457 = vst [vmem:[#allocation31_spill] sm:$0xff] %v6571_v53 }
 0x15e   :  { %8458 = vst [vmem:[#allocation32_spill] sm:$0xff] %v6573_v55 }
 0x161   :  { %v431_v59 = vpop.f32.mrb[8].mxu1 }
 0x162   :  { %v6555_v60 = vadd.f32 %v431_v59, %v200_v35  ;;  %v433_v61 = vpop.f32.mrb[9].mxu1  ;;  %v208_v59 = vrot.slane %v195_v32, %v6571_v53  ;;  %v4849_v53 = vmul.f32 -1.442695, %v769_v48 }
 0x163   :  { %v6557_v62 = vadd.f32 %v433_v61, %v204_v36  ;;  %v435_v27 = vpop.f32.mrb[10].mxu1 }
 0x164   :  { %8449 = vst [vmem:[#allocation23_spill] sm:$0xff] %v6555_v60  ;;  %v6559_v37 = vadd.f32 %v435_v27, %v200_v35  ;;  %v437_v38 = vpop.f32.mrb[11].mxu1  ;;  %v212_v27 = vrot.slane %v195_v32, %v6573_v55  ;;  %v4848_v32 = vmul.f32 -1.442695, %v768_v44  ;;  %5455 = vpow2.f32 %v4849_v53 }
 0x165   :  { %8450 = vst [vmem:[#allocation24_spill] sm:$0xff] %v6557_v62  ;;  %v6561_v39 = vadd.f32 %v437_v38, %v204_v36 }
 0x166   :  { %8451 = vst [vmem:[#allocation25_spill] sm:$0xff] %v6559_v37  ;;  %5457 = vpow2.f32 %v4848_v32 }
 0x167   :  { %8452 = vst [vmem:[#allocation26_spill] sm:$0xff] %v6561_v39 }
 0x169   :  { %v441_v40 = vpop.f32.mrb[12].mxu1 }
 0x16a   :  { %v6563_v41 = vadd.f32 %v441_v40, %v200_v35  ;;  %v443_v42 = vpop.f32.mrb[13].mxu1 }
 0x16b   :  { %v6565_v45 = vadd.f32 %v443_v42, %v204_v36  ;;  %v445_v46 = vpop.f32.mrb[14].mxu1 }
 0x16c   :  { %8453 = vst [vmem:[#allocation27_spill] sm:$0xff] %v6563_v41  ;;  %v6567_v49 = vadd.f32 %v445_v46, %v200_v35  ;;  %v447_v50 = vpop.f32.mrb[15].mxu1 }
 0x16d   :  { %8454 = vst [vmem:[#allocation28_spill] sm:$0xff] %v6565_v45  ;;  %v6569_v51 = vadd.f32 %v447_v50, %v204_v36 }
 0x16e   :  { %8455 = vst [vmem:[#allocation29_spill] sm:$0xff] %v6567_v49  ;;  %v5456_v48 = vpop.eup %5455 }
 0x16f   :  { %8456 = vst [vmem:[#allocation30_spill] sm:$0xff] %v6569_v51 }
 0x170   :  { %v5458_v32 = vpop.eup %5457 }
 0x171   :  { %v484_v57 = vpop.f32.mrb[16].mxu1 }
 0x172   :  { %v486_v61 = vpop.f32.mrb[17].mxu1 }
 0x173   :  { %v488_v38 = vpop.f32.mrb[18].mxu1  ;;  %v487_v62 = vadd.f32 %v486_v61, %v212_v27 }
 0x174   :  { %v6577_v40 = vadd.f32 %v488_v38, %v208_v59  ;;  %v490_v42 = vpop.f32.mrb[19].mxu1 }
 0x175   :  { %v6579_v0 = vadd.f32 %v490_v42, %v212_v27 }
 0x179   :  { %v494_v35 = vpop.f32.mrb[20].mxu1 }
 0x17a   :  { %v6581_v46 = vadd.f32 %v494_v35, %v208_v59  ;;  %v496_v36 = vpop.f32.mrb[21].mxu1 }
 0x17b   :  { %v6583_v50 = vadd.f32 %v496_v36, %v212_v27  ;;  %v498_v28 = vpop.f32.mrb[22].mxu1 }
 0x17c   :  { %v6585_v33 = vadd.f32 %v498_v28, %v208_v59  ;;  %v500_v30 = vpop.f32.mrb[23].mxu1 }
 0x17d   :  { %v6587_v51 = vadd.f32 %v500_v30, %v212_v27 }
 0x181   :  { %v504_v38 = vpop.f32.mrb[24].mxu1 }
 0x182   :  { %v6589_v55 = vadd.f32 %v504_v38, %v208_v59  ;;  %v506_v42 = vpop.f32.mrb[25].mxu1 }
 0x183   :  { %v6591_v49 = vadd.f32 %v506_v42, %v212_v27  ;;  %v508_v35 = vpop.f32.mrb[26].mxu1 }
 0x184   :  { %8459 = vst [vmem:[#allocation33_spill] sm:$0xff] %v6589_v55  ;;  %v6593_v45 = vadd.f32 %v508_v35, %v208_v59  ;;  %v510_v36 = vpop.f32.mrb[27].mxu1  ;;  %v775_v35 = vadd.f32 1.0, %v5458_v32 }
 0x185   :  { %8460 = vst [vmem:[#allocation34_spill] sm:$0xff] %v6591_v49  ;;  %v6595_v41 = vadd.f32 %v510_v36, %v212_v27  ;;  %v781_v49 = vadd.f32 1.0, %v5456_v48 }
 0x186   :  { %8461 = vst [vmem:[#allocation35_spill] sm:$0xff] %v6593_v45  ;;  %v485_v45 = vadd.f32 %v484_v57, %v208_v59 }
 0x187   :  { %8462 = vst [vmem:[#allocation36_spill] sm:$0xff] %v6595_v41  ;;  %5459 = vrcp.f32 %v781_v49 }
 0x188   :  { %5461 = vrcp.f32 %v775_v35 }
 0x189   :  { %v514_v28 = vpop.f32.mrb[28].mxu1 }
 0x18a   :  { %v6597_v39 = vadd.f32 %v514_v28, %v208_v59  ;;  %v516_v30 = vpop.f32.mrb[29].mxu1 }
 0x18b   :  { %v6599_v44 = vadd.f32 %v516_v30, %v212_v27  ;;  %v518_v53 = vpop.f32.mrb[30].mxu1 }
 0x18c   :  { %8463 = vst [vmem:[#allocation37_spill] sm:$0xff] %v6597_v39  ;;  %v6601_v38 = vadd.f32 %v518_v53, %v208_v59  ;;  %v520_v37 = vpop.f32.mrb[31].mxu1 }
 0x18d   :  { %8464 = vst [vmem:[#allocation38_spill] sm:$0xff] %v6599_v44  ;;  %v6603_v42 = vadd.f32 %v520_v37, %v212_v27 }
 0x18e   :  { %8465 = vst [vmem:[#allocation39_spill] sm:$0xff] %v6601_v38  ;;  %v524_v38 = vld [vmem:[#allocation9] sm:$0xff] }
 0x18f   :  { %8466 = vst [vmem:[#allocation40_spill] sm:$0xff] %v6603_v42 }
 0x191   :  { %v761_v36 = vpop.f32.mrb[32].mxu1  ;;  %v5460_v53 = vpop.eup %5459 }
 0x192   :  { %v770_v41 = vadd.f32 %v761_v36, %v485_v45  ;;  %v763_v28 = vpop.f32.mrb[33].mxu1  ;;  %v5462_v60 = vpop.eup %5461  ;;  %v791_v42 = vmul.f32 %v5460_v53, %v524_v38 }
 0x193   :  { %v771_v39 = vadd.f32 %v763_v28, %v487_v62  ;;  %v765_v55 = vpop.f32.mrb[34].mxu1 }
 0x194   :  { %5463 = vtanh.f32 %v770_v41  ;;  %v766_v30 = vpop.f32.mrb[35].mxu1  ;;  %v6612_v41 = vld [vmem:[#allocation3] ss:$16 sps:$4 sm:$0xff]  }
 0x195   :  { %v4850_v44 = vmul.f32 -1.442695, %v771_v39 }
 0x197   :  { %5465 = vpow2.f32 %v4850_v44 }
 0x19e   :  { %v5464_v37 = vpop.eup %5463 }
 0x19f   :  { %v792_v48 = vmul.f32 %v5464_v37, %v5462_v60  ;;  %v8467_v60 = vmov 0  }
 0x1a1   :  { %v5466_v32 = vpop.eup %5465  ;;  %v6605_v57 = vadd.f32 %v792_v48, %v791_v42 }
 0x1a2   :  { %v788_v59 = vadd.f32 1.0, %v5466_v32 }
 0x1a3   :  { %5467 = vtanh.f32 %v6605_v57 }
 0x1a4   :  { %5469 = vrcp.f32 %v788_v59  ;;  %v6664_v59 = vld [vmem:[#allocation3 + $0x24] ss:$16 sps:$4 sm:$0xff]  }
 0x1ad   :  { %v5468_v45 = vpop.eup %5467 }
 0x1ae   :  { %v5470_v62 = vpop.eup %5469 }
 0x1af   :  { %v6608_v49 = vmul.f32 %v5470_v62, %v5468_v45  ;;  %v6674_v45 = vld [vmem:[#allocation3 + $0x44] ss:$16 sps:$4 sm:$0xff]   ;;  %v6678_v62 = vld [vmem:[#allocation3 + $0x40] ss:$16 sps:$4 sm:$0xff]  }
 0x1b1   :  { %v797_v39 = vpack.c.bf16 %v6608_v49, %v6608_v49 }
 0x1b3   :  { %831 = vmatmul.mubr.bf16.vlgmr.msra.gmra.mrb[4].mxu0 %v797_v39  ;;  %872 = vmatmul.mubr.bf16.vlgmr.msra.gmra.mrb[36].mxu1 %v797_v39  ;;  %v6682_v39 = vld [vmem:[#allocation3 + $0x64] ss:$16 sps:$4 sm:$0xff]  }
 0x1b4   :  { %911 = vmatpush1.bf16.msra.mxu0 %v6612_v41  ;;  %952 = vmatpush1.bf16.msra.mxu1 %v6462_v1 }
 0x1b5   :  { %912 = vmatprep.subr.bf16.mxu0 %v6282_v7  ;;  %953 = vmatprep.subr.bf16.mxu1 %v6465_v2  ;;  %v6646_v7 = vld [vmem:[#allocation3 + $0x4] ss:$16 sps:$4 sm:$0xff]  }
 0x1b6   :  { %942 = vmatprep.mubr.bf16.mxu0 %v8467_v60  ;;  %983 = vmatprep.mubr.bf16.mxu1 %v8467_v60 }
 0x1b8   :  { %913 = vmatpush1.bf16.msra.mxu0 %v6285_v8  ;;  %954 = vmatpush1.bf16.msra.mxu1 %v6469_v4 }
 0x1b9   :  { %914 = vmatprep.subr.bf16.mxu0 %v6294_v11  ;;  %955 = vmatprep.subr.bf16.mxu1 %v6473_v5 }
 0x1bc   :  { %915 = vmatpush1.bf16.msra.mxu0 %v6300_v13  ;;  %956 = vmatpush1.bf16.msra.mxu1 %v6479_v6 }
 0x1bd   :  { %916 = vmatprep.subr.bf16.mxu0 %v6303_v14  ;;  %957 = vmatprep.subr.bf16.mxu1 %v6481_v9 }
 0x1c0   :  { %917 = vmatpush1.bf16.msra.mxu0 %v6312_v17  ;;  %958 = vmatpush1.bf16.msra.mxu1 %v6485_v10 }
 0x1c1   :  { %918 = vmatprep.subr.bf16.mxu0 %v6315_v18  ;;  %959 = vmatprep.subr.bf16.mxu1 %v6488_v12 }
 0x1c4   :  { %919 = vmatpush1.bf16.msra.mxu0 %v6324_v21  ;;  %960 = vmatpush1.bf16.msra.mxu1 %v6493_v3 }
 0x1c5   :  { %920 = vmatprep.subr.bf16.mxu0 %v6327_v22  ;;  %961 = vmatprep.subr.bf16.mxu1 %v6495_v15 }
 0x1c8   :  { %921 = vmatpush1.bf16.msra.mxu0 %v6336_v25  ;;  %962 = vmatpush1.bf16.msra.mxu1 %v6499_v16 }
 0x1c9   :  { %922 = vmatprep.subr.bf16.mxu0 %v6339_v26  ;;  %963 = vmatprep.subr.bf16.mxu1 %v6501_v19 }
 0x1cc   :  { %923 = vmatpush1.bf16.msra.mxu0 %v6348_v29  ;;  %964 = vmatpush1.bf16.msra.mxu1 %v6506_v20 }
 0x1cd   :  { %924 = vmatprep.subr.bf16.mxu0 %v6354_v31  ;;  %965 = vmatprep.subr.bf16.mxu1 %v6508_v23 }
 0x1d0   :  { %925 = vmatpush1.bf16.msra.mxu0 %v6362_v34  ;;  %966 = vmatpush1.bf16.msra.mxu1 %v6512_v24 }
 0x1d1   :  { %1022 = vmatprep.subr.bf16.mxu0 %v6646_v7  ;;  %1063 = vmatprep.subr.bf16.mxu1 %v6458_v63 }
 0x286   :  { %v832_v8 = vpop.f32.mrb[4].mxu0  ;;  %v873_v11 = vpop.f32.mrb[36].mxu1 }
 0x287   :  { %v880_v13 = vadd.f32 %v832_v8, %v6543_v43  ;;  %v882_v14 = vadd.f32 %v873_v11, %v6577_v40  ;;  %v834_v17 = vpop.f32.mrb[5].mxu0  ;;  %v875_v18 = vpop.f32.mrb[37].mxu1  ;;  %v6686_v8 = vld [vmem:[#allocation3 + $0x60] ss:$16 sps:$4 sm:$0xff]   ;;  %v6690_v11 = vld [vmem:[#allocation3 + $0x84] ss:$16 sps:$4 sm:$0xff]  }
 0x288   :  { %v881_v21 = vadd.f32 %v834_v17, %v6545_v47  ;;  %v883_v22 = vadd.f32 %v875_v18, %v6579_v0  ;;  %v836_v25 = vpop.f32.mrb[6].mxu0  ;;  %v877_v26 = vpop.f32.mrb[38].mxu1  ;;  %v6702_v17 = vld [vmem:[#allocation3 + $0xa0] ss:$16 sps:$4 sm:$0xff]   ;;  %v6706_v18 = vld [vmem:[#allocation3 + $0xc4] ss:$16 sps:$4 sm:$0xff]  }
 0x289   :  { %v4851_v29 = vmul.f32 -1.442695, %v880_v13  ;;  %v837_v31 = vpop.f32.mrb[7].mxu0  ;;  %v878_v34 = vpop.f32.mrb[39].mxu1  ;;  %v6694_v13 = vld [vmem:[#allocation3 + $0x80] ss:$16 sps:$4 sm:$0xff]  }
 0x28a   :  { %v4852_v55 = vmul.f32 -1.442695, %v881_v21  ;;  %v4853_v61 = vmul.f32 -1.442695, %v883_v22  ;;  %v6710_v21 = vld [vmem:[#allocation3 + $0xc0] ss:$16 sps:$4 sm:$0xff]  }
 0x28b   :  { %5471 = vpow2.f32 %v4851_v29  ;;  %v6714_v22 = vld [vmem:[#allocation3 + $0xe4] ss:$16 sps:$4 sm:$0xff]   ;;  %v6718_v25 = vld [vmem:[#allocation3 + $0xe0] ss:$16 sps:$4 sm:$0xff]  }
 0x28c   :  { %5473 = vpow2.f32 %v4852_v55 }
 0x28d   :  { %5475 = vpow2.f32 %v4853_v61 }
 0x28e   :  { %5477 = vtanh.f32 %v882_v14  ;;  %v6698_v14 = vld [vmem:[#allocation3 + $0xa4] ss:$16 sps:$4 sm:$0xff]  }
 0x295   :  { %v5472_v27 = vpop.eup %5471 }
 0x296   :  { %v5474_v44 = vpop.eup %5473  ;;  %v887_v43 = vadd.f32 1.0, %v5472_v27 }
 0x297   :  { %v893_v40 = vadd.f32 1.0, %v5474_v44  ;;  %v5476_v47 = vpop.eup %5475 }
 0x298   :  { %5479 = vrcp.f32 %v887_v43  ;;  %v5478_v38 = vpop.eup %5477  ;;  %v900_v36 = vadd.f32 1.0, %v5476_v47 }
 0x299   :  { %5481 = vrcp.f32 %v893_v40 }
 0x29a   :  { %5483 = vrcp.f32 %v900_v36 }
 0x2a2   :  { %v5480_v0 = vpop.eup %5479 }
 0x2a3   :  { %v5482_v42 = vpop.eup %5481  ;;  %v904_v35 = vmul.f32 %v5480_v0, %v5478_v38 }
 0x2a4   :  { %v903_v28 = vmul.f32 %v5482_v42, %v6605_v57  ;;  %v5484_v53 = vpop.eup %5483  ;;  %v6670_v57 = vld [vmem:[#allocation3 + $0x20] ss:$16 sps:$4 sm:$0xff]  }
 0x2a6   :  { %v6655_v30 = vadd.f32 %v904_v35, %v903_v28 }
 0x2a8   :  { %5485 = vtanh.f32 %v6655_v30 }
 0x2b2   :  { %v5486_v37 = vpop.eup %5485 }
 0x2b3   :  { %v6658_v48 = vmul.f32 %v5486_v37, %v5484_v53 }
 0x2b5   :  { %v909_v32 = vpack.c.bf16 %v6658_v48, %v6658_v48 }
 0x2b7   :  { %943 = vmatmul.mubr.bf16.vlgmr.msra.gmra.mrb[8].mxu0 %v909_v32  ;;  %984 = vmatmul.mubr.bf16.vlgmr.msra.gmra.mrb[40].mxu1 %v909_v32 }
 0x2b8   :  { %1023 = vmatpush1.bf16.msra.mxu0 %v6612_v41  ;;  %1064 = vmatpush1.bf16.msra.mxu1 %v6462_v1 }
 0x2b9   :  { %1024 = vmatprep.subr.bf16.mxu0 %v6664_v59  ;;  %1065 = vmatprep.subr.bf16.mxu1 %v6465_v2 }
 0x2ba   :  { %1054 = vmatprep.mubr.bf16.mxu0 %v8467_v60  ;;  %1095 = vmatprep.mubr.bf16.mxu1 %v8467_v60 }
 0x2bc   :  { %1025 = vmatpush1.bf16.msra.mxu0 %v6670_v57  ;;  %1066 = vmatpush1.bf16.msra.mxu1 %v6469_v4 }
 0x2bd   :  { %1026 = vmatprep.subr.bf16.mxu0 %v6674_v45  ;;  %1067 = vmatprep.subr.bf16.mxu1 %v6473_v5 }
 0x2c0   :  { %1027 = vmatpush1.bf16.msra.mxu0 %v6678_v62  ;;  %1068 = vmatpush1.bf16.msra.mxu1 %v6479_v6 }
 0x2c1   :  { %1028 = vmatprep.subr.bf16.mxu0 %v6682_v39  ;;  %1069 = vmatprep.subr.bf16.mxu1 %v6481_v9 }
 0x2c4   :  { %1029 = vmatpush1.bf16.msra.mxu0 %v6686_v8  ;;  %1070 = vmatpush1.bf16.msra.mxu1 %v6485_v10 }
 0x2c5   :  { %1030 = vmatprep.subr.bf16.mxu0 %v6690_v11  ;;  %1071 = vmatprep.subr.bf16.mxu1 %v6488_v12 }
 0x2c8   :  { %1031 = vmatpush1.bf16.msra.mxu0 %v6694_v13  ;;  %1072 = vmatpush1.bf16.msra.mxu1 %v6493_v3 }
 0x2c9   :  { %1032 = vmatprep.subr.bf16.mxu0 %v6698_v14  ;;  %1073 = vmatprep.subr.bf16.mxu1 %v6495_v15 }
 0x2cc   :  { %1033 = vmatpush1.bf16.msra.mxu0 %v6702_v17  ;;  %1074 = vmatpush1.bf16.msra.mxu1 %v6499_v16 }
 0x2cd   :  { %1034 = vmatprep.subr.bf16.mxu0 %v6706_v18  ;;  %1075 = vmatprep.subr.bf16.mxu1 %v6501_v19 }
 0x2d0   :  { %1035 = vmatpush1.bf16.msra.mxu0 %v6710_v21  ;;  %1076 = vmatpush1.bf16.msra.mxu1 %v6506_v20 }
 0x2d1   :  { %1036 = vmatprep.subr.bf16.mxu0 %v6714_v22  ;;  %1077 = vmatprep.subr.bf16.mxu1 %v6508_v23 }
 0x2d4   :  { %1037 = vmatpush1.bf16.msra.mxu0 %v6718_v25  ;;  %1078 = vmatpush1.bf16.msra.mxu1 %v6512_v24 }
 0x2d5   :  { %1134 = vmatprep.subr.bf16.mxu0 %v6646_v7  ;;  %1175 = vmatprep.subr.bf16.mxu1 %v6458_v63 }
 0x38a   :  { %v944_v26 = vpop.f32.mrb[8].mxu0  ;;  %v985_v29 = vpop.f32.mrb[40].mxu1 }
 0x38b   :  { %v992_v31 = vadd.f32 %v944_v26, %v6547_v52  ;;  %v994_v34 = vadd.f32 %v985_v29, %v6581_v46  ;;  %v946_v55 = vpop.f32.mrb[9].mxu0  ;;  %v987_v61 = vpop.f32.mrb[41].mxu1 }
 0x38c   :  { %v993_v27 = vadd.f32 %v946_v55, %v6549_v54  ;;  %v995_v44 = vadd.f32 %v987_v61, %v6583_v50  ;;  %v948_v43 = vpop.f32.mrb[10].mxu0  ;;  %v989_v40 = vpop.f32.mrb[42].mxu1 }
 0x38d   :  { %v4854_v47 = vmul.f32 -1.442695, %v992_v31  ;;  %v949_v38 = vpop.f32.mrb[11].mxu0  ;;  %v990_v0 = vpop.f32.mrb[43].mxu1 }
 0x38e   :  { %v4855_v42 = vmul.f32 -1.442695, %v993_v27  ;;  %v4856_v35 = vmul.f32 -1.442695, %v995_v44 }
 0x38f   :  { %5487 = vpow2.f32 %v4854_v47 }
 0x390   :  { %5489 = vpow2.f32 %v4855_v42 }
 0x391   :  { %5491 = vpow2.f32 %v4856_v35 }
 0x392   :  { %5493 = vtanh.f32 %v994_v34 }
 0x399   :  { %v5488_v36 = vpop.eup %5487 }
 0x39a   :  { %v5490_v28 = vpop.eup %5489  ;;  %v999_v52 = vadd.f32 1.0, %v5488_v36 }
 0x39b   :  { %v1005_v46 = vadd.f32 1.0, %v5490_v28  ;;  %v5492_v54 = vpop.eup %5491 }
 0x39c   :  { %5495 = vrcp.f32 %v999_v52  ;;  %v5494_v53 = vpop.eup %5493  ;;  %v1012_v26 = vadd.f32 1.0, %v5492_v54 }
 0x39d   :  { %5497 = vrcp.f32 %v1005_v46 }
 0x39e   :  { %5499 = vrcp.f32 %v1012_v26 }
 0x3a6   :  { %v5496_v50 = vpop.eup %5495 }
 0x3a7   :  { %v5498_v37 = vpop.eup %5497  ;;  %v1016_v32 = vmul.f32 %v5496_v50, %v5494_v53 }
 0x3a8   :  { %v1015_v29 = vmul.f32 %v5498_v37, %v6655_v30  ;;  %v5500_v55 = vpop.eup %5499 }
 0x3aa   :  { %v6729_v31 = vadd.f32 %v1016_v32, %v1015_v29 }
 0x3ac   :  { %5501 = vtanh.f32 %v6729_v31 }
 0x3b6   :  { %v5502_v61 = vpop.eup %5501 }
 0x3b7   :  { %v6732_v27 = vmul.f32 %v5502_v61, %v5500_v55 }
 0x3b9   :  { %v1021_v34 = vpack.c.bf16 %v6732_v27, %v6732_v27 }
 0x3bb   :  { %1055 = vmatmul.mubr.bf16.vlgmr.msra.gmra.mrb[12].mxu0 %v1021_v34  ;;  %1096 = vmatmul.mubr.bf16.vlgmr.msra.gmra.mrb[44].mxu1 %v1021_v34 }
 0x3bc   :  { %1135 = vmatpush1.bf16.msra.mxu0 %v6612_v41  ;;  %1176 = vmatpush1.bf16.msra.mxu1 %v6462_v1 }
 0x3bd   :  { %1136 = vmatprep.subr.bf16.mxu0 %v6664_v59  ;;  %1177 = vmatprep.subr.bf16.mxu1 %v6465_v2 }
 0x3be   :  { %1166 = vmatprep.mubr.bf16.mxu0 %v8467_v60  ;;  %1207 = vmatprep.mubr.bf16.mxu1 %v8467_v60 }
 0x3c0   :  { %1137 = vmatpush1.bf16.msra.mxu0 %v6670_v57  ;;  %1178 = vmatpush1.bf16.msra.mxu1 %v6469_v4 }
 0x3c1   :  { %1138 = vmatprep.subr.bf16.mxu0 %v6674_v45  ;;  %1179 = vmatprep.subr.bf16.mxu1 %v6473_v5 }
 0x3c4   :  { %1139 = vmatpush1.bf16.msra.mxu0 %v6678_v62  ;;  %1180 = vmatpush1.bf16.msra.mxu1 %v6479_v6 }
 0x3c5   :  { %1140 = vmatprep.subr.bf16.mxu0 %v6682_v39  ;;  %1181 = vmatprep.subr.bf16.mxu1 %v6481_v9 }
 0x3c8   :  { %1141 = vmatpush1.bf16.msra.mxu0 %v6686_v8  ;;  %1182 = vmatpush1.bf16.msra.mxu1 %v6485_v10 }
 0x3c9   :  { %1142 = vmatprep.subr.bf16.mxu0 %v6690_v11  ;;  %1183 = vmatprep.subr.bf16.mxu1 %v6488_v12 }
 0x3cc   :  { %1143 = vmatpush1.bf16.msra.mxu0 %v6694_v13  ;;  %1184 = vmatpush1.bf16.msra.mxu1 %v6493_v3 }
 0x3cd   :  { %1144 = vmatprep.subr.bf16.mxu0 %v6698_v14  ;;  %1185 = vmatprep.subr.bf16.mxu1 %v6495_v15 }
 0x3d0   :  { %1145 = vmatpush1.bf16.msra.mxu0 %v6702_v17  ;;  %1186 = vmatpush1.bf16.msra.mxu1 %v6499_v16 }
 0x3d1   :  { %1146 = vmatprep.subr.bf16.mxu0 %v6706_v18  ;;  %1187 = vmatprep.subr.bf16.mxu1 %v6501_v19 }
 0x3d4   :  { %1147 = vmatpush1.bf16.msra.mxu0 %v6710_v21  ;;  %1188 = vmatpush1.bf16.msra.mxu1 %v6506_v20 }
 0x3d5   :  { %1148 = vmatprep.subr.bf16.mxu0 %v6714_v22  ;;  %1189 = vmatprep.subr.bf16.mxu1 %v6508_v23 }
 0x3d8   :  { %1149 = vmatpush1.bf16.msra.mxu0 %v6718_v25  ;;  %1190 = vmatpush1.bf16.msra.mxu1 %v6512_v24 }
 0x3d9   :  { %1246 = vmatprep.subr.bf16.mxu0 %v6646_v7  ;;  %1287 = vmatprep.subr.bf16.mxu1 %v6458_v63 }
 0x48e   :  { %v1056_v30 = vpop.f32.mrb[12].mxu0  ;;  %v1097_v44 = vpop.f32.mrb[44].mxu1 }
 0x48f   :  { %v1104_v43 = vadd.f32 %v1056_v30, %v6551_v56  ;;  %v1106_v40 = vadd.f32 %v1097_v44, %v6585_v33  ;;  %v1058_v47 = vpop.f32.mrb[13].mxu0  ;;  %v1099_v38 = vpop.f32.mrb[45].mxu1 }
 0x490   :  { %v1105_v0 = vadd.f32 %v1058_v47, %v6553_v58  ;;  %v1107_v42 = vadd.f32 %v1099_v38, %v6587_v51  ;;  %v1060_v35 = vpop.f32.mrb[14].mxu0  ;;  %v1101_v36 = vpop.f32.mrb[46].mxu1 }
 0x491   :  { %v4857_v28 = vmul.f32 -1.442695, %v1104_v43  ;;  %v1061_v52 = vpop.f32.mrb[15].mxu0  ;;  %v1102_v46 = vpop.f32.mrb[47].mxu1 }
 0x492   :  { %v4858_v54 = vmul.f32 -1.442695, %v1105_v0  ;;  %v4859_v63 = vmul.f32 -1.442695, %v1107_v42 }
 0x493   :  { %5503 = vpow2.f32 %v4857_v28 }
 0x494   :  { %5505 = vpow2.f32 %v4858_v54 }
 0x495   :  { %5507 = vpow2.f32 %v4859_v63 }
 0x496   :  { %5509 = vtanh.f32 %v1106_v40 }
 0x49d   :  { %v5504_v53 = vpop.eup %5503 }
 0x49e   :  { %v5506_v50 = vpop.eup %5505  ;;  %v1111_v56 = vadd.f32 1.0, %v5504_v53 }
 0x49f   :  { %v1117_v33 = vadd.f32 1.0, %v5506_v50  ;;  %v5508_v58 = vpop.eup %5507 }
 0x4a0   :  { %5511 = vrcp.f32 %v1111_v56  ;;  %v5510_v37 = vpop.eup %5509  ;;  %v1124_v29 = vadd.f32 1.0, %v5508_v58 }
 0x4a1   :  { %5513 = vrcp.f32 %v1117_v33 }
 0x4a2   :  { %5515 = vrcp.f32 %v1124_v29 }
 0x4aa   :  { %v5512_v51 = vpop.eup %5511 }
 0x4ab   :  { %v5514_v32 = vpop.eup %5513  ;;  %v1128_v26 = vmul.f32 %v5512_v51, %v5510_v37 }
 0x4ac   :  { %v1127_v55 = vmul.f32 %v5514_v32, %v6729_v31  ;;  %v5516_v34 = vpop.eup %5515  ;;  %v8471_v31 = vld [vmem:[#allocation34_spill] sm:$0xff] }
 0x4ae   :  { %v6775_v61 = vadd.f32 %v1128_v26, %v1127_v55 }
 0x4b0   :  { %5517 = vtanh.f32 %v6775_v61 }
 0x4ba   :  { %v5518_v30 = vpop.eup %5517 }
 0x4bb   :  { %v6778_v44 = vmul.f32 %v5518_v30, %v5516_v34  ;;  %v6831_v30 = vld [vmem:[#allocation3 + $0x8] ss:$16 sps:$4 sm:$0xff]  }
 0x4bd   :  { %v1133_v43 = vpack.c.bf16 %v6778_v44, %v6778_v44 }
 0x4bf   :  { %1167 = vmatmul.mubr.bf16.vlgmr.msra.gmra.mrb[16].mxu0 %v1133_v43  ;;  %1208 = vmatmul.mubr.bf16.vlgmr.msra.gmra.mrb[48].mxu1 %v1133_v43  ;;  %v6841_v43 = vld [vmem:[#allocation3 + $0x28] ss:$16 sps:$4 sm:$0xff]  }
 0x4c0   :  { %1247 = vmatpush1.bf16.msra.mxu0 %v6612_v41  ;;  %1288 = vmatpush1.bf16.msra.mxu1 %v6462_v1  ;;  %v6815_v1 = vld [vmem:[#allocation3 + $0xc] ss:$16 sps:$4 sm:$0xff]  }
 0x4c1   :  { %1248 = vmatprep.subr.bf16.mxu0 %v6664_v59  ;;  %1289 = vmatprep.subr.bf16.mxu1 %v6465_v2 }
 0x4c2   :  { %1278 = vmatprep.mubr.bf16.mxu0 %v8467_v60  ;;  %1319 = vmatprep.mubr.bf16.mxu1 %v8467_v60 }
 0x4c4   :  { %1249 = vmatpush1.bf16.msra.mxu0 %v6670_v57  ;;  %1290 = vmatpush1.bf16.msra.mxu1 %v6469_v4 }
 0x4c5   :  { %1250 = vmatprep.subr.bf16.mxu0 %v6674_v45  ;;  %1291 = vmatprep.subr.bf16.mxu1 %v6473_v5  ;;  %v8468_v5 = vld [vmem:[#allocation23_spill] sm:$0xff] }
 0x4c8   :  { %1251 = vmatpush1.bf16.msra.mxu0 %v6678_v62  ;;  %1292 = vmatpush1.bf16.msra.mxu1 %v6479_v6 }
 0x4c9   :  { %1252 = vmatprep.subr.bf16.mxu0 %v6682_v39  ;;  %1293 = vmatprep.subr.bf16.mxu1 %v6481_v9  ;;  %v8469_v9 = vld [vmem:[#allocation33_spill] sm:$0xff] }
 0x4cc   :  { %1253 = vmatpush1.bf16.msra.mxu0 %v6686_v8  ;;  %1294 = vmatpush1.bf16.msra.mxu1 %v6485_v10 }
 0x4cd   :  { %1254 = vmatprep.subr.bf16.mxu0 %v6690_v11  ;;  %1295 = vmatprep.subr.bf16.mxu1 %v6488_v12 }
 0x4d0   :  { %1255 = vmatpush1.bf16.msra.mxu0 %v6694_v13  ;;  %1296 = vmatpush1.bf16.msra.mxu1 %v6493_v3 }
 0x4d1   :  { %1256 = vmatprep.subr.bf16.mxu0 %v6698_v14  ;;  %1297 = vmatprep.subr.bf16.mxu1 %v6495_v15  ;;  %v8470_v15 = vld [vmem:[#allocation24_spill] sm:$0xff] }
 0x4d4   :  { %1257 = vmatpush1.bf16.msra.mxu0 %v6702_v17  ;;  %1298 = vmatpush1.bf16.msra.mxu1 %v6499_v16 }
 0x4d5   :  { %1258 = vmatprep.subr.bf16.mxu0 %v6706_v18  ;;  %1299 = vmatprep.subr.bf16.mxu1 %v6501_v19 }
 0x4d8   :  { %1259 = vmatpush1.bf16.msra.mxu0 %v6710_v21  ;;  %1300 = vmatpush1.bf16.msra.mxu1 %v6506_v20 }
 0x4d9   :  { %1260 = vmatprep.subr.bf16.mxu0 %v6714_v22  ;;  %1301 = vmatprep.subr.bf16.mxu1 %v6508_v23 }
 0x4dc   :  { %1261 = vmatpush1.bf16.msra.mxu0 %v6718_v25  ;;  %1302 = vmatpush1.bf16.msra.mxu1 %v6512_v24 }
 0x4dd   :  { %1358 = vmatprep.subr.bf16.mxu0 %v6646_v7  ;;  %1399 = vmatprep.subr.bf16.mxu1 %v6815_v1 }
 0x592   :  { %v1168_v2 = vpop.f32.mrb[16].mxu0  ;;  %v1209_v4 = vpop.f32.mrb[48].mxu1 }
 0x593   :  { %v1216_v6 = vadd.f32 %v1168_v2, %v8468_v5  ;;  %v1218_v10 = vadd.f32 %v1209_v4, %v8469_v9  ;;  %v1170_v12 = vpop.f32.mrb[17].mxu0  ;;  %v1211_v3 = vpop.f32.mrb[49].mxu1  ;;  %v6845_v2 = vld [vmem:[#allocation3 + $0x4c] ss:$16 sps:$4 sm:$0xff]   ;;  %v6849_v4 = vld [vmem:[#allocation3 + $0x48] ss:$16 sps:$4 sm:$0xff]  }
 0x594   :  { %v1217_v16 = vadd.f32 %v1170_v12, %v8470_v15  ;;  %v1219_v40 = vadd.f32 %v1211_v3, %v8471_v31  ;;  %v1172_v47 = vpop.f32.mrb[18].mxu0  ;;  %v1213_v38 = vpop.f32.mrb[50].mxu1  ;;  %v6853_v5 = vld [vmem:[#allocation3 + $0x6c] ss:$16 sps:$4 sm:$0xff]   ;;  %v6873_v3 = vld [vmem:[#allocation3 + $0xa8] ss:$16 sps:$4 sm:$0xff]  }
 0x595   :  { %v4860_v0 = vmul.f32 -1.442695, %v1216_v6  ;;  %v1173_v42 = vpop.f32.mrb[19].mxu0  ;;  %v1214_v35 = vpop.f32.mrb[51].mxu1  ;;  %v6857_v6 = vld [vmem:[#allocation3 + $0x68] ss:$16 sps:$4 sm:$0xff]  }
 0x596   :  { %v4861_v36 = vmul.f32 -1.442695, %v1217_v16  ;;  %v4862_v28 = vmul.f32 -1.442695, %v1219_v40  ;;  %v6861_v9 = vld [vmem:[#allocation3 + $0x8c] ss:$16 sps:$4 sm:$0xff]  }
 0x597   :  { %5519 = vpow2.f32 %v4860_v0  ;;  %v6869_v12 = vld [vmem:[#allocation3 + $0xac] ss:$16 sps:$4 sm:$0xff]   ;;  %v8474_v0 = vld [vmem:[#allocation26_spill] sm:$0xff]  ;;  %v8475_v35 = vld [vmem:[#allocation36_spill] sm:$0xff] }
 0x598   :  { %5521 = vpow2.f32 %v4861_v36  ;;  %v8472_v31 = vld [vmem:[#allocation25_spill] sm:$0xff]  ;;  %v8473_v40 = vld [vmem:[#allocation35_spill] sm:$0xff] }
 0x599   :  { %5523 = vpow2.f32 %v4862_v28 }
 0x59a   :  { %5525 = vtanh.f32 %v1218_v10  ;;  %v6865_v10 = vld [vmem:[#allocation3 + $0x88] ss:$16 sps:$4 sm:$0xff]  }
 0x5a1   :  { %v5520_v52 = vpop.eup %5519 }
 0x5a2   :  { %v5522_v46 = vpop.eup %5521  ;;  %v1223_v54 = vadd.f32 1.0, %v5520_v52 }
 0x5a3   :  { %v1229_v63 = vadd.f32 1.0, %v5522_v46  ;;  %v5524_v53 = vpop.eup %5523 }
 0x5a4   :  { %5527 = vrcp.f32 %v1223_v54  ;;  %v5526_v50 = vpop.eup %5525  ;;  %v1236_v37 = vadd.f32 1.0, %v5524_v53 }
 0x5a5   :  { %5529 = vrcp.f32 %v1229_v63 }
 0x5a6   :  { %5531 = vrcp.f32 %v1236_v37 }
 0x5ae   :  { %v5528_v56 = vpop.eup %5527 }
 0x5af   :  { %v5530_v33 = vpop.eup %5529  ;;  %v1240_v58 = vmul.f32 %v5528_v56, %v5526_v50 }
 0x5b0   :  { %v1239_v51 = vmul.f32 %v5530_v33, %v6775_v61  ;;  %v5532_v26 = vpop.eup %5531  ;;  %v6835_v61 = vld [vmem:[#allocation3 + $0x2c] ss:$16 sps:$4 sm:$0xff]  }
 0x5b2   :  { %v6823_v32 = vadd.f32 %v1240_v58, %v1239_v51 }
 0x5b4   :  { %5533 = vtanh.f32 %v6823_v32 }
 0x5be   :  { %v5534_v29 = vpop.eup %5533 }
 0x5bf   :  { %v6826_v55 = vmul.f32 %v5534_v29, %v5532_v26 }
 0x5c1   :  { %v1245_v34 = vpack.c.bf16 %v6826_v55, %v6826_v55 }
 0x5c3   :  { %1279 = vmatmul.mubr.bf16.vlgmr.msra.gmra.mrb[20].mxu0 %v1245_v34  ;;  %1320 = vmatmul.mubr.bf16.vlgmr.msra.gmra.mrb[52].mxu1 %v1245_v34 }
 0x5c4   :  { %1359 = vmatpush1.bf16.msra.mxu0 %v6612_v41  ;;  %1400 = vmatpush1.bf16.msra.mxu1 %v6831_v30 }
 0x5c5   :  { %1360 = vmatprep.subr.bf16.mxu0 %v6664_v59  ;;  %1401 = vmatprep.subr.bf16.mxu1 %v6835_v61 }
 0x5c6   :  { %1390 = vmatprep.mubr.bf16.mxu0 %v8467_v60  ;;  %1431 = vmatprep.mubr.bf16.mxu1 %v8467_v60 }
 0x5c8   :  { %1361 = vmatpush1.bf16.msra.mxu0 %v6670_v57  ;;  %1402 = vmatpush1.bf16.msra.mxu1 %v6841_v43 }
 0x5c9   :  { %1362 = vmatprep.subr.bf16.mxu0 %v6674_v45  ;;  %1403 = vmatprep.subr.bf16.mxu1 %v6845_v2 }
 0x5cc   :  { %1363 = vmatpush1.bf16.msra.mxu0 %v6678_v62  ;;  %1404 = vmatpush1.bf16.msra.mxu1 %v6849_v4 }
 0x5cd   :  { %1364 = vmatprep.subr.bf16.mxu0 %v6682_v39  ;;  %1405 = vmatprep.subr.bf16.mxu1 %v6853_v5 }
 0x5d0   :  { %1365 = vmatpush1.bf16.msra.mxu0 %v6686_v8  ;;  %1406 = vmatpush1.bf16.msra.mxu1 %v6857_v6 }
 0x5d1   :  { %1366 = vmatprep.subr.bf16.mxu0 %v6690_v11  ;;  %1407 = vmatprep.subr.bf16.mxu1 %v6861_v9 }
 0x5d4   :  { %1367 = vmatpush1.bf16.msra.mxu0 %v6694_v13  ;;  %1408 = vmatpush1.bf16.msra.mxu1 %v6865_v10 }
 0x5d5   :  { %1368 = vmatprep.subr.bf16.mxu0 %v6698_v14  ;;  %1409 = vmatprep.subr.bf16.mxu1 %v6869_v12 }
 0x5d8   :  { %1369 = vmatpush1.bf16.msra.mxu0 %v6702_v17  ;;  %1410 = vmatpush1.bf16.msra.mxu1 %v6873_v3 }
 0x5d9   :  { %1370 = vmatprep.subr.bf16.mxu0 %v6706_v18  ;;  %1411 = vmatprep.subr.bf16.mxu1 %v6501_v19 }
 0x5dc   :  { %1371 = vmatpush1.bf16.msra.mxu0 %v6710_v21  ;;  %1412 = vmatpush1.bf16.msra.mxu1 %v6506_v20 }
 0x5dd   :  { %1372 = vmatprep.subr.bf16.mxu0 %v6714_v22  ;;  %1413 = vmatprep.subr.bf16.mxu1 %v6508_v23 }
 0x5e0   :  { %1373 = vmatpush1.bf16.msra.mxu0 %v6718_v25  ;;  %1414 = vmatpush1.bf16.msra.mxu1 %v6512_v24 }
 0x5e1   :  { %1470 = vmatprep.subr.bf16.mxu0 %v6646_v7  ;;  %1511 = vmatprep.subr.bf16.mxu1 %v6815_v1 }
 0x696   :  { %v1280_v15 = vpop.f32.mrb[20].mxu0  ;;  %v1321_v16 = vpop.f32.mrb[52].mxu1 }
 0x697   :  { %v1328_v19 = vadd.f32 %v1280_v15, %v8472_v31  ;;  %v1330_v47 = vadd.f32 %v1321_v16, %v8473_v40  ;;  %v1282_v38 = vpop.f32.mrb[21].mxu0  ;;  %v1323_v20 = vpop.f32.mrb[53].mxu1 }
 0x698   :  { %v1329_v42 = vadd.f32 %v1282_v38, %v8474_v0  ;;  %v1331_v23 = vadd.f32 %v1323_v20, %v8475_v35  ;;  %v1284_v36 = vpop.f32.mrb[22].mxu0  ;;  %v1325_v28 = vpop.f32.mrb[54].mxu1 }
 0x699   :  { %v4863_v52 = vmul.f32 -1.442695, %v1328_v19  ;;  %v1285_v24 = vpop.f32.mrb[23].mxu0  ;;  %v1326_v46 = vpop.f32.mrb[55].mxu1 }
 0x69a   :  { %v4864_v7 = vmul.f32 -1.442695, %v1329_v42  ;;  %v4865_v1 = vmul.f32 -1.442695, %v1331_v23 }
 0x69b   :  { %5535 = vpow2.f32 %v4863_v52 }
 0x69c   :  { %5537 = vpow2.f32 %v4864_v7  ;;  %v5239_v7 = vld [vmem:[%s8427_s1 + $0x100] ss:$16 sps:$4 sm:$0xff]  }
 0x69d   :  { %5539 = vpow2.f32 %v4865_v1  ;;  %v5242_v1 = vld [vmem:[%s8427_s1 + $0x108] ss:$16 sps:$4 sm:$0xff]  }
 0x69e   :  { %5541 = vtanh.f32 %v1330_v47 }
 0x6a5   :  { %v5536_v54 = vpop.eup %5535 }
 0x6a6   :  { %v5538_v63 = vpop.eup %5537  ;;  %v1335_v53 = vadd.f32 1.0, %v5536_v54 }
 0x6a7   :  { %v1341_v50 = vadd.f32 1.0, %v5538_v63  ;;  %v5540_v56 = vpop.eup %5539  ;;  %v5247_v63 = vld [vmem:[%s8427_s1 + $0x124] ss:$16 sps:$4 sm:$0xff]  }
 0x6a8   :  { %5543 = vrcp.f32 %v1335_v53  ;;  %v5542_v33 = vpop.eup %5541  ;;  %v1348_v26 = vadd.f32 1.0, %v5540_v56  ;;  %v5250_v53 = vld [vmem:[%s8427_s1 + $0x12c] ss:$16 sps:$4 sm:$0xff]   ;;  %v5248_v56 = vld [vmem:[%s8427_s1 + $0x128] ss:$16 sps:$4 sm:$0xff]  }
 0x6a9   :  { %5545 = vrcp.f32 %v1341_v50  ;;  %v5245_v50 = vld [vmem:[%s8427_s1 + $0x120] ss:$16 sps:$4 sm:$0xff]  }
 0x6aa   :  { %5547 = vrcp.f32 %v1348_v26  ;;  %v5259_v26 = vld [vmem:[%s8427_s1 + $0x164] ss:$16 sps:$4 sm:$0xff]  }
 0x6b2   :  { %v5544_v58 = vpop.eup %5543 }
 0x6b3   :  { %v5546_v37 = vpop.eup %5545  ;;  %v1352_v51 = vmul.f32 %v5544_v58, %v5542_v33  ;;  %v5253_v33 = vld [vmem:[%s8427_s1 + $0x144] ss:$16 sps:$4 sm:$0xff]   ;;  %v5256_v58 = vld [vmem:[%s8427_s1 + $0x14c] ss:$16 sps:$4 sm:$0xff]  }
 0x6b4   :  { %v1351_v29 = vmul.f32 %v5546_v37, %v6823_v32  ;;  %v5548_v15 = vpop.eup %5547  ;;  %v5251_v37 = vld [vmem:[%s8427_s1 + $0x140] ss:$16 sps:$4 sm:$0xff]  }
 0x6b6   :  { %v6891_v34 = vadd.f32 %v1352_v51, %v1351_v29  ;;  %v5254_v51 = vld [vmem:[%s8427_s1 + $0x148] ss:$16 sps:$4 sm:$0xff]   ;;  %v5262_v29 = vld [vmem:[%s8427_s1 + $0x16c] ss:$16 sps:$4 sm:$0xff]  }
 0x6b8   :  { %5549 = vtanh.f32 %v6891_v34 }
 0x6c2   :  { %v5550_v16 = vpop.eup %5549 }
 0x6c3   :  { %v6894_v31 = vmul.f32 %v5550_v16, %v5548_v15  ;;  %v5260_v15 = vld [vmem:[%s8427_s1 + $0x168] ss:$16 sps:$4 sm:$0xff]   ;;  %v5265_v16 = vld [vmem:[%s8427_s1 + $0x184] ss:$16 sps:$4 sm:$0xff]  }
 0x6c5   :  { %v1357_v19 = vpack.c.bf16 %v6894_v31, %v6894_v31 }
 0x6c7   :  { %1391 = vmatmul.mubr.bf16.vlgmr.msra.gmra.mrb[24].mxu0 %v1357_v19  ;;  %1432 = vmatmul.mubr.bf16.vlgmr.msra.gmra.mrb[56].mxu1 %v1357_v19  ;;  %v5268_v19 = vld [vmem:[%s8427_s1 + $0x18c] ss:$16 sps:$4 sm:$0xff]  }
 0x6c8   :  { %1471 = vmatpush1.bf16.msra.mxu0 %v6612_v41  ;;  %1512 = vmatpush1.bf16.msra.mxu1 %v6831_v30  ;;  %v5867_v41 = vld [vmem:[#allocation3 + $0xcc] ss:$16 sps:$4 sm:$0xff]   ;;  %v8479_v30 = vld [vmem:[#allocation38_spill] sm:$0xff] }
 0x6c9   :  { %1472 = vmatprep.subr.bf16.mxu0 %v6664_v59  ;;  %1513 = vmatprep.subr.bf16.mxu1 %v6835_v61  ;;  %v5868_v59 = vld [vmem:[#allocation3 + $0xc8] ss:$16 sps:$4 sm:$0xff]  }
 0x6ca   :  { %1502 = vmatprep.mubr.bf16.mxu0 %v8467_v60  ;;  %1543 = vmatprep.mubr.bf16.mxu1 %v8467_v60 }
 0x6cc   :  { %1473 = vmatpush1.bf16.msra.mxu0 %v6670_v57  ;;  %1514 = vmatpush1.bf16.msra.mxu1 %v6841_v43  ;;  %v5869_v57 = vld [vmem:[#allocation3 + $0xec] ss:$16 sps:$4 sm:$0xff]  }
 0x6cd   :  { %1474 = vmatprep.subr.bf16.mxu0 %v6674_v45  ;;  %1515 = vmatprep.subr.bf16.mxu1 %v6845_v2  ;;  %v5870_v45 = vld [vmem:[#allocation3 + $0xe8] ss:$16 sps:$4 sm:$0xff]  }
 0x6d0   :  { %1475 = vmatpush1.bf16.msra.mxu0 %v6678_v62  ;;  %1516 = vmatpush1.bf16.msra.mxu1 %v6849_v4  ;;  %v5241_v62 = vld [vmem:[%s8427_s1 + $0x104] ss:$16 sps:$4 sm:$0xff]  }
 0x6d1   :  { %1476 = vmatprep.subr.bf16.mxu0 %v6682_v39  ;;  %1517 = vmatprep.subr.bf16.mxu1 %v6853_v5  ;;  %v5244_v39 = vld [vmem:[%s8427_s1 + $0x10c] ss:$16 sps:$4 sm:$0xff]  }
 0x6d4   :  { %1477 = vmatpush1.bf16.msra.mxu0 %v6686_v8  ;;  %1518 = vmatpush1.bf16.msra.mxu1 %v6857_v6 }
 0x6d5   :  { %1478 = vmatprep.subr.bf16.mxu0 %v6690_v11  ;;  %1519 = vmatprep.subr.bf16.mxu1 %v6861_v9 }
 0x6d8   :  { %1479 = vmatpush1.bf16.msra.mxu0 %v6694_v13  ;;  %1520 = vmatpush1.bf16.msra.mxu1 %v6865_v10  ;;  %v8476_v13 = vld [vmem:[#allocation27_spill] sm:$0xff] }
 0x6d9   :  { %1480 = vmatprep.subr.bf16.mxu0 %v6698_v14  ;;  %1521 = vmatprep.subr.bf16.mxu1 %v6869_v12 }
 0x6dc   :  { %1481 = vmatpush1.bf16.msra.mxu0 %v6702_v17  ;;  %1522 = vmatpush1.bf16.msra.mxu1 %v6873_v3  ;;  %v8477_v17 = vld [vmem:[#allocation37_spill] sm:$0xff] }
 0x6dd   :  { %1482 = vmatprep.subr.bf16.mxu0 %v6706_v18  ;;  %1523 = vmatprep.subr.bf16.mxu1 %v5867_v41  ;;  %v5263_v41 = vld [vmem:[%s8427_s1 + $0x180] ss:$16 sps:$4 sm:$0xff]  }
 0x6e0   :  { %1483 = vmatpush1.bf16.msra.mxu0 %v6710_v21  ;;  %1524 = vmatpush1.bf16.msra.mxu1 %v5868_v59  ;;  %v5266_v59 = vld [vmem:[%s8427_s1 + $0x188] ss:$16 sps:$4 sm:$0xff]  }
 0x6e1   :  { %1484 = vmatprep.subr.bf16.mxu0 %v6714_v22  ;;  %1525 = vmatprep.subr.bf16.mxu1 %v5869_v57  ;;  %v5271_v57 = vld [vmem:[%s8427_s1 + $0x1a4] ss:$16 sps:$4 sm:$0xff]  }
 0x6e4   :  { %1485 = vmatpush1.bf16.msra.mxu0 %v6718_v25  ;;  %1526 = vmatpush1.bf16.msra.mxu1 %v5870_v45  ;;  %v8478_v25 = vld [vmem:[#allocation28_spill] sm:$0xff]  ;;  %v5274_v45 = vld [vmem:[%s8427_s1 + $0x1ac] ss:$16 sps:$4 sm:$0xff]  }
 0x6e5   :  { %1844 = vmatprep.subr.bf16.mxu0 %v5241_v62  ;;  %1917 = vmatprep.subr.bf16.mxu1 %v5244_v39  ;;  %v5269_v62 = vld [vmem:[%s8427_s1 + $0x1a0] ss:$16 sps:$4 sm:$0xff]   ;;  %v5272_v39 = vld [vmem:[%s8427_s1 + $0x1a8] ss:$16 sps:$4 sm:$0xff]  }
 0x79a   :  { %v1392_v8 = vpop.f32.mrb[24].mxu0  ;;  %v1433_v11 = vpop.f32.mrb[56].mxu1 }
 0x79b   :  { %v1440_v14 = vadd.f32 %v1392_v8, %v8476_v13  ;;  %v1442_v18 = vadd.f32 %v1433_v11, %v8477_v17  ;;  %v1394_v21 = vpop.f32.mrb[25].mxu0  ;;  %v1435_v22 = vpop.f32.mrb[57].mxu1  ;;  %v5277_v8 = vld [vmem:[%s8427_s1 + $0x1c4] ss:$16 sps:$4 sm:$0xff]   ;;  %v5280_v11 = vld [vmem:[%s8427_s1 + $0x1cc] ss:$16 sps:$4 sm:$0xff]  }
 0x79c   :  { %v1441_v32 = vadd.f32 %v1394_v21, %v8478_v25  ;;  %v1443_v61 = vadd.f32 %v1435_v22, %v8479_v30  ;;  %v1396_v43 = vpop.f32.mrb[26].mxu0  ;;  %v1437_v2 = vpop.f32.mrb[58].mxu1  ;;  %v5275_v13 = vld [vmem:[%s8427_s1 + $0x1c0] ss:$16 sps:$4 sm:$0xff]   ;;  %v5283_v17 = vld [vmem:[%s8427_s1 + $0x1e4] ss:$16 sps:$4 sm:$0xff]   ;;  %v1657_v25 = vpack.c.bf16 %v6658_v48, %v6608_v49  ;;  %v1659_v30 = vpack.c.bf16 %v6894_v31, %v6826_v55 }
 0x79d   :  { %v4866_v4 = vmul.f32 -1.442695, %v1440_v14  ;;  %v1397_v5 = vpop.f32.mrb[27].mxu0  ;;  %v1438_v6 = vpop.f32.mrb[59].mxu1  ;;  %v5278_v14 = vld [vmem:[%s8427_s1 + $0x1c8] ss:$16 sps:$4 sm:$0xff]  }
 0x79e   :  { %v4867_v9 = vmul.f32 -1.442695, %v1441_v32  ;;  %v4868_v10 = vmul.f32 -1.442695, %v1443_v61  ;;  %v5281_v21 = vld [vmem:[%s8427_s1 + $0x1e0] ss:$16 sps:$4 sm:$0xff]   ;;  %v1658_v32 = vpack.c.bf16 %v6778_v44, %v6732_v27 }
 0x79f   :  { %5551 = vpow2.f32 %v4866_v4  ;;  %v5284_v22 = vld [vmem:[%s8427_s1 + $0x1e8] ss:$16 sps:$4 sm:$0xff]   ;;  %v7048_v49 = vld [vmem:[#allocation3 + $0x104] ss:$16 sps:$4 sm:$0xff]   ;;  %v7050_v48 = vld [vmem:[#allocation3 + $0x10c] ss:$16 sps:$4 sm:$0xff]  }
 0x7a0   :  { %5553 = vpow2.f32 %v4867_v9  ;;  %v7052_v27 = vld [vmem:[#allocation3 + $0x100] ss:$16 sps:$4 sm:$0xff]   ;;  %v7054_v44 = vld [vmem:[#allocation3 + $0x108] ss:$16 sps:$4 sm:$0xff]   ;;  %v7060_v55 = vld [vmem:[#allocation3 + $0x124] ss:$16 sps:$4 sm:$0xff]  }
 0x7a1   :  { %5555 = vpow2.f32 %v4868_v10  ;;  %v7062_v31 = vld [vmem:[#allocation3 + $0x12c] ss:$16 sps:$4 sm:$0xff]   ;;  %v7064_v61 = vld [vmem:[#allocation3 + $0x120] ss:$16 sps:$4 sm:$0xff]   ;;  %v7066_v43 = vld [vmem:[#allocation3 + $0x128] ss:$16 sps:$4 sm:$0xff]  }
 0x7a2   :  { %5557 = vtanh.f32 %v1442_v18  ;;  %v5286_v18 = vld [vmem:[%s8427_s1 + $0x1ec] ss:$16 sps:$4 sm:$0xff]   ;;  %v7072_v2 = vld [vmem:[#allocation3 + $0x144] ss:$16 sps:$4 sm:$0xff]   ;;  %v7076_v5 = vld [vmem:[#allocation3 + $0x140] ss:$16 sps:$4 sm:$0xff]  }
 0x7a3   :  { %v7074_v4 = vld [vmem:[#allocation3 + $0x14c] ss:$16 sps:$4 sm:$0xff]   ;;  %v7078_v6 = vld [vmem:[#allocation3 + $0x148] ss:$16 sps:$4 sm:$0xff]   ;;  %v7084_v9 = vld [vmem:[#allocation3 + $0x164] ss:$16 sps:$4 sm:$0xff]  }
 0x7a4   :  { %v7086_v10 = vld [vmem:[#allocation3 + $0x16c] ss:$16 sps:$4 sm:$0xff]  }
 0x7a9   :  { %v5552_v12 = vpop.eup %5551 }
 0x7aa   :  { %v5554_v3 = vpop.eup %5553  ;;  %v1447_v40 = vadd.f32 1.0, %v5552_v12  ;;  %v7088_v12 = vld [vmem:[#allocation3 + $0x160] ss:$16 sps:$4 sm:$0xff]  }
 0x7ab   :  { %v1453_v47 = vadd.f32 1.0, %v5554_v3  ;;  %v5556_v38 = vpop.eup %5555  ;;  %v7090_v3 = vld [vmem:[#allocation3 + $0x168] ss:$16 sps:$4 sm:$0xff]  }
 0x7ac   :  { %5559 = vrcp.f32 %v1447_v40  ;;  %v5558_v20 = vpop.eup %5557  ;;  %v1460_v23 = vadd.f32 1.0, %v5556_v38  ;;  %v7096_v40 = vld [vmem:[#allocation3 + $0x184] ss:$16 sps:$4 sm:$0xff]   ;;  %v7100_v38 = vld [vmem:[#allocation3 + $0x180] ss:$16 sps:$4 sm:$0xff]  }
 0x7ad   :  { %5561 = vrcp.f32 %v1453_v47  ;;  %v7098_v47 = vld [vmem:[#allocation3 + $0x18c] ss:$16 sps:$4 sm:$0xff]  }
 0x7ae   :  { %5563 = vrcp.f32 %v1460_v23  ;;  %v7114_v23 = vld [vmem:[#allocation3 + $0x1a8] ss:$16 sps:$4 sm:$0xff]  }
 0x7b6   :  { %v5560_v0 = vpop.eup %5559 }
 0x7b7   :  { %v5562_v42 = vpop.eup %5561  ;;  %v1464_v35 = vmul.f32 %v5560_v0, %v5558_v20  ;;  %v7102_v20 = vld [vmem:[#allocation3 + $0x188] ss:$16 sps:$4 sm:$0xff]   ;;  %v7108_v0 = vld [vmem:[#allocation3 + $0x1a4] ss:$16 sps:$4 sm:$0xff]  }
 0x7b8   :  { %v1463_v36 = vmul.f32 %v5562_v42, %v6891_v34  ;;  %v5564_v52 = vpop.eup %5563  ;;  %v5257_v34 = vld [vmem:[%s8427_s1 + $0x160] ss:$16 sps:$4 sm:$0xff]   ;;  %v7110_v42 = vld [vmem:[#allocation3 + $0x1ac] ss:$16 sps:$4 sm:$0xff]  }
 0x7ba   :  { %v6937_v28 = vadd.f32 %v1464_v35, %v1463_v36  ;;  %v7112_v35 = vld [vmem:[#allocation3 + $0x1a0] ss:$16 sps:$4 sm:$0xff]   ;;  %v7120_v36 = vld [vmem:[#allocation3 + $0x1c4] ss:$16 sps:$4 sm:$0xff]  }
 0x7bc   :  { %5565 = vtanh.f32 %v6937_v28 }
 0x7c6   :  { %v5566_v24 = vpop.eup %5565 }
 0x7c7   :  { %v6940_v46 = vmul.f32 %v5566_v24, %v5564_v52  ;;  %v7122_v52 = vld [vmem:[#allocation3 + $0x1cc] ss:$16 sps:$4 sm:$0xff]   ;;  %v7124_v24 = vld [vmem:[#allocation3 + $0x1c0] ss:$16 sps:$4 sm:$0xff]  }
 0x7c9   :  { %v1469_v54 = vpack.c.bf16 %v6940_v46, %v6940_v46 }
 0x7cb   :  { %1503 = vmatmul.mubr.bf16.vlgmr.msra.gmra.mrb[28].mxu0 %v1469_v54  ;;  %1544 = vmatmul.mubr.bf16.vlgmr.msra.gmra.mrb[60].mxu1 %v1469_v54  ;;  %v7134_v54 = vld [vmem:[#allocation3 + $0x1ec] ss:$16 sps:$4 sm:$0xff]  }
 0x7cc   :  { %1845 = vmatpush1.bf16.msra.mxu0 %v5239_v7  ;;  %1918 = vmatpush1.bf16.msra.mxu1 %v5242_v1  ;;  %v7126_v7 = vld [vmem:[#allocation3 + $0x1c8] ss:$16 sps:$4 sm:$0xff]   ;;  %v7132_v1 = vld [vmem:[#allocation3 + $0x1e4] ss:$16 sps:$4 sm:$0xff]  }
 0x7cd   :  { %1846 = vmatprep.subr.bf16.mxu0 %v5247_v63  ;;  %1919 = vmatprep.subr.bf16.mxu1 %v5250_v53  ;;  %v7136_v63 = vld [vmem:[#allocation3 + $0x1e0] ss:$16 sps:$4 sm:$0xff]   ;;  %v7138_v53 = vld [vmem:[#allocation3 + $0x1e8] ss:$16 sps:$4 sm:$0xff]  }
 0x7ce   :  { %1876 = vmatprep.mubr.bf16.mxu0 %v8467_v60  ;;  %1949 = vmatprep.mubr.bf16.mxu1 %v8467_v60 }
 0x7d0   :  { %1847 = vmatpush1.bf16.msra.mxu0 %v5245_v50  ;;  %1920 = vmatpush1.bf16.msra.mxu1 %v5248_v56 }
 0x7d1   :  { %1848 = vmatprep.subr.bf16.mxu0 %v5253_v33  ;;  %1921 = vmatprep.subr.bf16.mxu1 %v5256_v58  ;;  %v8480_v33 = vld [vmem:[#allocation29_spill] sm:$0xff] }
 0x7d4   :  { %1849 = vmatpush1.bf16.msra.mxu0 %v5251_v37  ;;  %1922 = vmatpush1.bf16.msra.mxu1 %v5254_v51  ;;  %v8481_v37 = vld [vmem:[#allocation39_spill] sm:$0xff] }
 0x7d5   :  { %1850 = vmatprep.subr.bf16.mxu0 %v5259_v26  ;;  %1923 = vmatprep.subr.bf16.mxu1 %v5262_v29 }
 0x7d8   :  { %1851 = vmatpush1.bf16.msra.mxu0 %v5257_v34  ;;  %1924 = vmatpush1.bf16.msra.mxu1 %v5260_v15  ;;  %v8482_v34 = vld [vmem:[#allocation30_spill] sm:$0xff] }
 0x7d9   :  { %1852 = vmatprep.subr.bf16.mxu0 %v5265_v16  ;;  %1925 = vmatprep.subr.bf16.mxu1 %v5268_v19  ;;  %v8483_v16 = vld [vmem:[#allocation40_spill] sm:$0xff] }
 0x7dc   :  { %1853 = vmatpush1.bf16.msra.mxu0 %v5263_v41  ;;  %1926 = vmatpush1.bf16.msra.mxu1 %v5266_v59 }
 0x7dd   :  { %1854 = vmatprep.subr.bf16.mxu0 %v5271_v57  ;;  %1927 = vmatprep.subr.bf16.mxu1 %v5274_v45 }
 0x7e0   :  { %1855 = vmatpush1.bf16.msra.mxu0 %v5269_v62  ;;  %1928 = vmatpush1.bf16.msra.mxu1 %v5272_v39 }
 0x7e1   :  { %1856 = vmatprep.subr.bf16.mxu0 %v5277_v8  ;;  %1929 = vmatprep.subr.bf16.mxu1 %v5280_v11 }
 0x7e4   :  { %1857 = vmatpush1.bf16.msra.mxu0 %v5275_v13  ;;  %1930 = vmatpush1.bf16.msra.mxu1 %v5278_v14 }
 0x7e5   :  { %1858 = vmatprep.subr.bf16.mxu0 %v5283_v17  ;;  %1931 = vmatprep.subr.bf16.mxu1 %v5286_v18 }
 0x7e8   :  { %1859 = vmatpush1.bf16.msra.mxu0 %v5281_v21  ;;  %1932 = vmatpush1.bf16.msra.mxu1 %v5284_v22 }
 0x7e9   :  { %2155 = vmatprep.subr.bf16.mxu0 %v7048_v49  ;;  %2196 = vmatprep.subr.bf16.mxu1 %v7050_v48 }
 0x7eb   :  { %1877 = vmatmul.mubr.bf16.vlgmr.msra.gmra.mrb[32].mxu0 %v1657_v25  ;;  %1950 = vmatmul.mubr.bf16.vlgmr.msra.gmra.mrb[64].mxu1 %v1657_v25 }
 0x7ec   :  { %1886 = vmatprep.mubr.bf16.mxu0 %v8467_v60  ;;  %1959 = vmatprep.mubr.bf16.mxu1 %v8467_v60 }
 0x7ed   :  { %2156 = vmatpush1.bf16.msra.mxu0 %v7052_v27  ;;  %2197 = vmatpush1.bf16.msra.mxu1 %v7054_v44 }
 0x7ee   :  { %2157 = vmatprep.subr.bf16.mxu0 %v7060_v55  ;;  %2198 = vmatprep.subr.bf16.mxu1 %v7062_v31 }
 0x7f1   :  { %2158 = vmatpush1.bf16.msra.mxu0 %v7064_v61  ;;  %2199 = vmatpush1.bf16.msra.mxu1 %v7066_v43 }
 0x7f2   :  { %2159 = vmatprep.subr.bf16.mxu0 %v7072_v2  ;;  %2200 = vmatprep.subr.bf16.mxu1 %v7074_v4 }
 0x7f3   :  { %1887 = vmatmul.mubr.bf16.gmra.mrb[36].mxu0 %v1658_v32  ;;  %1960 = vmatmul.mubr.bf16.gmra.mrb[68].mxu1 %v1658_v32 }
 0x7f4   :  { %1896 = vmatprep.mubr.bf16.mxu0 %v8467_v60  ;;  %1969 = vmatprep.mubr.bf16.mxu1 %v8467_v60 }
 0x7f5   :  { %2160 = vmatpush1.bf16.msra.mxu0 %v7076_v5  ;;  %2201 = vmatpush1.bf16.msra.mxu1 %v7078_v6 }
 0x7f6   :  { %2161 = vmatprep.subr.bf16.mxu0 %v7084_v9  ;;  %2202 = vmatprep.subr.bf16.mxu1 %v7086_v10 }
 0x7f9   :  { %2162 = vmatpush1.bf16.msra.mxu0 %v7088_v12  ;;  %2203 = vmatpush1.bf16.msra.mxu1 %v7090_v3 }
 0x7fa   :  { %2163 = vmatprep.subr.bf16.mxu0 %v7096_v40  ;;  %2204 = vmatprep.subr.bf16.mxu1 %v7098_v47 }
 0x7fb   :  { %1897 = vmatmul.mubr.bf16.gmra.mrb[40].mxu0 %v1659_v30  ;;  %1970 = vmatmul.mubr.bf16.gmra.mrb[72].mxu1 %v1659_v30 }
 0x7fc   :  { %1906 = vmatprep.mubr.bf16.mxu0 %v8467_v60  ;;  %1979 = vmatprep.mubr.bf16.mxu1 %v8467_v60 }
 0x7fd   :  { %2164 = vmatpush1.bf16.msra.mxu0 %v7100_v38  ;;  %2205 = vmatpush1.bf16.msra.mxu1 %v7102_v20 }
 0x7fe   :  { %2165 = vmatprep.subr.bf16.mxu0 %v7108_v0  ;;  %2206 = vmatprep.subr.bf16.mxu1 %v7110_v42 }
 0x801   :  { %2166 = vmatpush1.bf16.msra.mxu0 %v7112_v35  ;;  %2207 = vmatpush1.bf16.msra.mxu1 %v7114_v23 }
 0x802   :  { %2167 = vmatprep.subr.bf16.mxu0 %v7120_v36  ;;  %2208 = vmatprep.subr.bf16.mxu1 %v7122_v52 }
 0x805   :  { %2168 = vmatpush1.bf16.msra.mxu0 %v7124_v24  ;;  %2209 = vmatpush1.bf16.msra.mxu1 %v7126_v7 }
 0x806   :  { %2169 = vmatprep.subr.bf16.mxu0 %v7132_v1  ;;  %2210 = vmatprep.subr.bf16.mxu1 %v7134_v54 }
 0x809   :  { %2170 = vmatpush1.bf16.msra.mxu0 %v7136_v63  ;;  %2211 = vmatpush1.bf16.msra.mxu1 %v7138_v53 }
 0x80a   :  { %2267 = vmatprep.subr.bf16.mxu0 %v7048_v49  ;;  %2308 = vmatprep.subr.bf16.mxu1 %v7050_v48 }
 0x89e   :  { %v1504_v50 = vpop.f32.mrb[28].mxu0  ;;  %v1545_v56 = vpop.f32.mrb[60].mxu1 }
 0x89f   :  { %v1552_v58 = vadd.f32 %v1504_v50, %v8480_v33  ;;  %v1554_v51 = vadd.f32 %v1545_v56, %v8481_v37  ;;  %v1506_v26 = vpop.f32.mrb[29].mxu0  ;;  %v1547_v29 = vpop.f32.mrb[61].mxu1 }
 0x8a0   :  { %v1553_v15 = vadd.f32 %v1506_v26, %v8482_v34  ;;  %v1555_v19 = vadd.f32 %v1547_v29, %v8483_v16  ;;  %v1508_v41 = vpop.f32.mrb[30].mxu0  ;;  %v1549_v59 = vpop.f32.mrb[62].mxu1 }
 0x8a1   :  { %v4869_v57 = vmul.f32 -1.442695, %v1552_v58  ;;  %v1509_v45 = vpop.f32.mrb[31].mxu0  ;;  %v1550_v62 = vpop.f32.mrb[63].mxu1 }
 0x8a2   :  { %v4870_v39 = vmul.f32 -1.442695, %v1553_v15  ;;  %v4871_v8 = vmul.f32 -1.442695, %v1555_v19 }
 0x8a3   :  { %5567 = vpow2.f32 %v4869_v57 }
 0x8a4   :  { %5569 = vpow2.f32 %v4870_v39 }
 0x8a5   :  { %5571 = vpow2.f32 %v4871_v8 }
 0x8a6   :  { %5573 = vtanh.f32 %v1554_v51 }
 0x8ad   :  { %v5568_v11 = vpop.eup %5567 }
 0x8ae   :  { %v5570_v13 = vpop.eup %5569  ;;  %v1559_v14 = vadd.f32 1.0, %v5568_v11 }
 0x8af   :  { %v1565_v17 = vadd.f32 1.0, %v5570_v13  ;;  %v5572_v18 = vpop.eup %5571 }
 0x8b0   :  { %5575 = vrcp.f32 %v1559_v14  ;;  %v5574_v21 = vpop.eup %5573  ;;  %v1572_v30 = vadd.f32 1.0, %v5572_v18 }
 0x8b1   :  { %5577 = vrcp.f32 %v1565_v17 }
 0x8b2   :  { %5579 = vrcp.f32 %v1572_v30 }
 0x8ba   :  { %v5576_v22 = vpop.eup %5575 }
 0x8bb   :  { %v5578_v25 = vpop.eup %5577  ;;  %v1576_v32 = vmul.f32 %v5576_v22, %v5574_v21 }
 0x8bc   :  { %v1575_v50 = vmul.f32 %v5578_v25, %v6937_v28  ;;  %v5580_v45 = vpop.eup %5579 }
 0x8be   :  { %v1577_v56 = vadd.f32 %v1576_v32, %v1575_v50  ;;  %v7151_v33 = vpop.f32.mrb[32].mxu0  ;;  %v7153_v58 = vpop.f32.mrb[64].mxu1 }
 0x8bf   :  { %v7155_v37 = vpop.f32.mrb[33].mxu0  ;;  %v7157_v51 = vpop.f32.mrb[65].mxu1 }
 0x8c0   :  { %1582 = vst [vmem:[#allocation15] sm:$0xff] %v1577_v56  ;;  %v7159_v26 = vpop.f32.mrb[34].mxu0  ;;  %v7161_v29 = vpop.f32.mrb[66].mxu1  ;;  %5581 = vtanh.f32 %v1577_v56  ;;  %v1662_v56 = vld [vmem:[#allocation6 + $0x4] sm:$0xf] }
 0x8c1   :  { %v7163_v34 = vpop.f32.mrb[35].mxu0  ;;  %v7165_v15 = vpop.f32.mrb[67].mxu1 }
 0x8c6   :  { %v7167_v28 = vpop.f32.mrb[36].mxu0  ;;  %v7169_v16 = vpop.f32.mrb[68].mxu1 }
 0x8c7   :  { %8484 = vst [vmem:[#allocation23_spill] sm:$0xff] %v7169_v16  ;;  %v7171_v19 = vpop.f32.mrb[37].mxu0  ;;  %v7173_v41 = vpop.f32.mrb[69].mxu1 }
 0x8c8   :  { %8485 = vst [vmem:[#allocation33_spill] sm:$0xff] %v7171_v19  ;;  %8486 = vst [vmem:[#allocation24_spill] sm:$0xff] %v7173_v41  ;;  %v7175_v59 = vpop.f32.mrb[38].mxu0  ;;  %v7177_v57 = vpop.f32.mrb[70].mxu1 }
 0x8c9   :  { %8487 = vst [vmem:[#allocation34_spill] sm:$0xff] %v7175_v59  ;;  %8488 = vst [vmem:[#allocation25_spill] sm:$0xff] %v7177_v57  ;;  %v7179_v62 = vpop.f32.mrb[39].mxu0  ;;  %v7181_v39 = vpop.f32.mrb[71].mxu1 }
 0x8ca   :  { %8489 = vst [vmem:[#allocation35_spill] sm:$0xff] %v7179_v62  ;;  %8490 = vst [vmem:[#allocation26_spill] sm:$0xff] %v7181_v39  ;;  %v5582_v8 = vpop.eup %5581 }
 0x8cb   :  { %v1579_v11 = vmul.f32 %v5582_v8, %v5580_v45 }
 0x8cd   :  { %v1660_v13 = vpack.c.bf16 %v1579_v11, %v6940_v46  ;;  %1581 = vst [vmem:[#allocation13] sm:$0xff] %v1579_v11  ;;  %v1991_v46 = vld [vmem:[#allocation8 + $0x8] sm:$0xff] }
 0x8ce   :  { %v7184_v14 = vpop.f32.mrb[40].mxu0  ;;  %v7186_v17 = vpop.f32.mrb[72].mxu1  ;;  %v1994_v50 = vpack.c.bf16 %v1991_v46, %v1991_v46 }
 0x8cf   :  { %8491 = vst [vmem:[#allocation36_spill] sm:$0xff] %v7184_v14  ;;  %8492 = vst [vmem:[#allocation27_spill] sm:$0xff] %v7186_v17  ;;  %v7188_v18 = vpop.f32.mrb[41].mxu0  ;;  %v7190_v21 = vpop.f32.mrb[73].mxu1  ;;  %1907 = vmatmul.mubr.bf16.gmra.mrb[44].mxu0 %v1660_v13  ;;  %1980 = vmatmul.mubr.bf16.gmra.mrb[76].mxu1 %v1660_v13 }
 0x8d0   :  { %8493 = vst [vmem:[#allocation37_spill] sm:$0xff] %v7188_v18  ;;  %8494 = vst [vmem:[#allocation28_spill] sm:$0xff] %v7190_v21  ;;  %v7192_v22 = vpop.f32.mrb[42].mxu0  ;;  %v7194_v25 = vpop.f32.mrb[74].mxu1  ;;  %2187 = vmatprep.mubr.bf16.mxu0 %v8467_v60  ;;  %2228 = vmatprep.mubr.bf16.mxu1 %v8467_v60 }
 0x8d1   :  { %8495 = vst [vmem:[#allocation38_spill] sm:$0xff] %v7192_v22  ;;  %8496 = vst [vmem:[#allocation29_spill] sm:$0xff] %v7194_v25  ;;  %v7198_v32 = vpop.f32.mrb[43].mxu0  ;;  %v7200_v30 = vpop.f32.mrb[75].mxu1  ;;  %v8506_v25 = vld [vmem:[#allocation31_spill] sm:$0xff] }
 0x8d2   :  { %8497 = vst [vmem:[#allocation39_spill] sm:$0xff] %v7198_v32  ;;  %8498 = vst [vmem:[#allocation30_spill] sm:$0xff] %v7200_v30  ;;  %v8505_v30 = vld [vmem:[#allocation21_spill] sm:$0xff]  ;;  %v7252_v22 = vrot.slane %v1662_v56, %v8506_v25 }
 0x8d3   :  { %v7249_v32 = vrot.slane %v1662_v56, %v8505_v30 }
 0x8d4   :  { %v1952_v30 = vadd.f32 %v7153_v58, %v7252_v22 }
 0x8d7   :  { %2188 = vmatmul.mubr.bf16.vlgmr.msra.gmra.mrb[48].mxu0 %v1994_v50  ;;  %2229 = vmatmul.mubr.bf16.vlgmr.msra.gmra.mrb[80].mxu1 %v1994_v50 }
 0x8d8   :  { %2268 = vmatpush1.bf16.msra.mxu0 %v7052_v27  ;;  %2309 = vmatpush1.bf16.msra.mxu1 %v7054_v44 }
 0x8d9   :  { %2269 = vmatprep.subr.bf16.mxu0 %v7060_v55  ;;  %2310 = vmatprep.subr.bf16.mxu1 %v7062_v31 }
 0x8da   :  { %2299 = vmatprep.mubr.bf16.mxu0 %v8467_v60  ;;  %2340 = vmatprep.mubr.bf16.mxu1 %v8467_v60 }
 0x8dc   :  { %2270 = vmatpush1.bf16.msra.mxu0 %v7064_v61  ;;  %2311 = vmatpush1.bf16.msra.mxu1 %v7066_v43 }
 0x8dd   :  { %2271 = vmatprep.subr.bf16.mxu0 %v7072_v2  ;;  %2312 = vmatprep.subr.bf16.mxu1 %v7074_v4 }
 0x8e0   :  { %2272 = vmatpush1.bf16.msra.mxu0 %v7076_v5  ;;  %2313 = vmatpush1.bf16.msra.mxu1 %v7078_v6 }
 0x8e1   :  { %2273 = vmatprep.subr.bf16.mxu0 %v7084_v9  ;;  %2314 = vmatprep.subr.bf16.mxu1 %v7086_v10 }
 0x8e4   :  { %2274 = vmatpush1.bf16.msra.mxu0 %v7088_v12  ;;  %2315 = vmatpush1.bf16.msra.mxu1 %v7090_v3 }
 0x8e5   :  { %2275 = vmatprep.subr.bf16.mxu0 %v7096_v40  ;;  %2316 = vmatprep.subr.bf16.mxu1 %v7098_v47 }
 0x8e8   :  { %2276 = vmatpush1.bf16.msra.mxu0 %v7100_v38  ;;  %2317 = vmatpush1.bf16.msra.mxu1 %v7102_v20 }
 0x8e9   :  { %2277 = vmatprep.subr.bf16.mxu0 %v7108_v0  ;;  %2318 = vmatprep.subr.bf16.mxu1 %v7110_v42 }
 0x8ec   :  { %2278 = vmatpush1.bf16.msra.mxu0 %v7112_v35  ;;  %2319 = vmatpush1.bf16.msra.mxu1 %v7114_v23 }
 0x8ed   :  { %2279 = vmatprep.subr.bf16.mxu0 %v7120_v36  ;;  %2320 = vmatprep.subr.bf16.mxu1 %v7122_v52 }
 0x8f0   :  { %2280 = vmatpush1.bf16.msra.mxu0 %v7124_v24  ;;  %2321 = vmatpush1.bf16.msra.mxu1 %v7126_v7 }
 0x8f1   :  { %2281 = vmatprep.subr.bf16.mxu0 %v7132_v1  ;;  %2322 = vmatprep.subr.bf16.mxu1 %v7134_v54 }
 0x8f4   :  { %2282 = vmatpush1.bf16.msra.mxu0 %v7136_v63  ;;  %2323 = vmatpush1.bf16.msra.mxu1 %v7138_v53 }
 0x8f5   :  { %2379 = vmatprep.subr.bf16.mxu0 %v7048_v49  ;;  %2420 = vmatprep.subr.bf16.mxu1 %v7050_v48 }
 0x9a2   :  { %v7236_v45 = vpop.f32.mrb[44].mxu0  ;;  %v7238_v8 = vpop.f32.mrb[76].mxu1 }
 0x9a3   :  { %8499 = vst [vmem:[#allocation40_spill] sm:$0xff] %v7236_v45  ;;  %8500 = vst [vmem:[#allocation41_spill] sm:$0xff] %v7238_v8  ;;  %v7240_v11 = vpop.f32.mrb[45].mxu0  ;;  %v7242_v13 = vpop.f32.mrb[77].mxu1  ;;  %v8509_v45 = vld [vmem:[#allocation22_spill] sm:$0xff] }
 0x9a4   :  { %8501 = vst [vmem:[#allocation42_spill] sm:$0xff] %v7240_v11  ;;  %8502 = vst [vmem:[#allocation43_spill] sm:$0xff] %v7242_v13  ;;  %v7244_v46 = vpop.f32.mrb[46].mxu0  ;;  %v7246_v50 = vpop.f32.mrb[78].mxu1  ;;  %v7259_v8 = vrot.slane %v1662_v56, %v8509_v45  ;;  %v8510_v11 = vld [vmem:[#allocation32_spill] sm:$0xff] }
 0x9a5   :  { %8503 = vst [vmem:[#allocation44_spill] sm:$0xff] %v7244_v46  ;;  %8504 = vst [vmem:[#allocation45_spill] sm:$0xff] %v7246_v50  ;;  %v7254_v21 = vpop.f32.mrb[47].mxu0  ;;  %v7256_v18 = vpop.f32.mrb[79].mxu1  ;;  %v7262_v17 = vrot.slane %v1662_v56, %v8510_v11  ;;  %v1879_v46 = vadd.f32 %v7151_v33, %v7249_v32 }
 0x9a6   :  { %8507 = vst [vmem:[#allocation46_spill] sm:$0xff] %v7254_v21  ;;  %8508 = vst [vmem:[#allocation47_spill] sm:$0xff] %v7256_v18  ;;  %v1881_v25 = vadd.f32 %v7155_v37, %v7259_v8 }
 0x9a7   :  { %v1954_v21 = vadd.f32 %v7157_v51, %v7262_v17 }
 0x9aa   :  { %v2189_v50 = vpop.f32.mrb[48].mxu0  ;;  %v2230_v18 = vpop.f32.mrb[80].mxu1 }
 0x9ab   :  { %v2237_v13 = vadd.f32 %v2189_v50, %v1879_v46  ;;  %v2239_v45 = vadd.f32 %v2230_v18, %v1952_v30  ;;  %v2191_v14 = vpop.f32.mrb[49].mxu0  ;;  %v2232_v39 = vpop.f32.mrb[81].mxu1  ;;  %v1885_v50 = vadd.f32 %v7163_v34, %v7259_v8 }
 0x9ac   :  { %v2238_v56 = vadd.f32 %v2191_v14, %v1881_v25  ;;  %v2240_v11 = vadd.f32 %v2232_v39, %v1954_v21  ;;  %v2193_v62 = vpop.f32.mrb[50].mxu0  ;;  %v2234_v57 = vpop.f32.mrb[82].mxu1  ;;  %v1993_v39 = vld [vmem:[#allocation9 + $0x8] sm:$0xff] }
 0x9ad   :  { %v4968_v33 = vmul.f32 -1.442695, %v2237_v13  ;;  %v2194_v59 = vpop.f32.mrb[51].mxu0  ;;  %v2235_v41 = vpop.f32.mrb[83].mxu1  ;;  %v1956_v13 = vadd.f32 %v7161_v29, %v7252_v22 }
 0x9ae   :  { %v4969_v58 = vmul.f32 -1.442695, %v2238_v56  ;;  %v4970_v37 = vmul.f32 -1.442695, %v2240_v11  ;;  %v1958_v56 = vadd.f32 %v7165_v15, %v7262_v17 }
 0x9af   :  { %5583 = vpow2.f32 %v4968_v33 }
 0x9b0   :  { %5585 = vpow2.f32 %v4969_v58 }
 0x9b1   :  { %5587 = vpow2.f32 %v4970_v37 }
 0x9b2   :  { %5589 = vtanh.f32 %v2239_v45  ;;  %v1883_v45 = vadd.f32 %v7159_v26, %v7249_v32 }
 0x9b9   :  { %v5584_v19 = vpop.eup %5583 }
 0x9ba   :  { %v5586_v16 = vpop.eup %5585  ;;  %v2244_v51 = vadd.f32 1.0, %v5584_v19 }
 0x9bb   :  { %v2250_v46 = vadd.f32 1.0, %v5586_v16  ;;  %v5588_v18 = vpop.eup %5587 }
 0x9bc   :  { %5591 = vrcp.f32 %v2244_v51  ;;  %v5590_v14 = vpop.eup %5589  ;;  %v2257_v59 = vadd.f32 1.0, %v5588_v18 }
 0x9bd   :  { %5593 = vrcp.f32 %v2250_v46 }
 0x9be   :  { %5595 = vrcp.f32 %v2257_v59 }
 0x9c6   :  { %v5592_v62 = vpop.eup %5591 }
 0x9c7   :  { %v5594_v57 = vpop.eup %5593  ;;  %v2261_v21 = vmul.f32 %v5592_v62, %v5590_v14 }
 0x9c8   :  { %v2260_v41 = vmul.f32 %v5594_v57, %v1993_v39  ;;  %v5596_v30 = vpop.eup %5595 }
 0x9ca   :  { %v7272_v25 = vadd.f32 %v2261_v21, %v2260_v41 }
 0x9cc   :  { %5597 = vtanh.f32 %v7272_v25 }
 0x9d6   :  { %v5598_v19 = vpop.eup %5597 }
 0x9d7   :  { %v7275_v11 = vmul.f32 %v5598_v19, %v5596_v30 }
 0x9d9   :  { %v2266_v16 = vpack.c.bf16 %v7275_v11, %v7275_v11 }
 0x9db   :  { %2300 = vmatmul.mubr.bf16.vlgmr.msra.gmra.mrb[52].mxu0 %v2266_v16  ;;  %2341 = vmatmul.mubr.bf16.vlgmr.msra.gmra.mrb[84].mxu1 %v2266_v16 }
 0x9dc   :  { %2380 = vmatpush1.bf16.msra.mxu0 %v7052_v27  ;;  %2421 = vmatpush1.bf16.msra.mxu1 %v7054_v44 }
 0x9dd   :  { %2381 = vmatprep.subr.bf16.mxu0 %v7060_v55  ;;  %2422 = vmatprep.subr.bf16.mxu1 %v7062_v31 }
 0x9de   :  { %2411 = vmatprep.mubr.bf16.mxu0 %v8467_v60  ;;  %2452 = vmatprep.mubr.bf16.mxu1 %v8467_v60 }
 0x9e0   :  { %2382 = vmatpush1.bf16.msra.mxu0 %v7064_v61  ;;  %2423 = vmatpush1.bf16.msra.mxu1 %v7066_v43 }
 0x9e1   :  { %2383 = vmatprep.subr.bf16.mxu0 %v7072_v2  ;;  %2424 = vmatprep.subr.bf16.mxu1 %v7074_v4 }
 0x9e4   :  { %2384 = vmatpush1.bf16.msra.mxu0 %v7076_v5  ;;  %2425 = vmatpush1.bf16.msra.mxu1 %v7078_v6 }
 0x9e5   :  { %2385 = vmatprep.subr.bf16.mxu0 %v7084_v9  ;;  %2426 = vmatprep.subr.bf16.mxu1 %v7086_v10 }
 0x9e8   :  { %2386 = vmatpush1.bf16.msra.mxu0 %v7088_v12  ;;  %2427 = vmatpush1.bf16.msra.mxu1 %v7090_v3 }
 0x9e9   :  { %2387 = vmatprep.subr.bf16.mxu0 %v7096_v40  ;;  %2428 = vmatprep.subr.bf16.mxu1 %v7098_v47 }
 0x9ec   :  { %2388 = vmatpush1.bf16.msra.mxu0 %v7100_v38  ;;  %2429 = vmatpush1.bf16.msra.mxu1 %v7102_v20 }
 0x9ed   :  { %2389 = vmatprep.subr.bf16.mxu0 %v7108_v0  ;;  %2430 = vmatprep.subr.bf16.mxu1 %v7110_v42 }
 0x9f0   :  { %2390 = vmatpush1.bf16.msra.mxu0 %v7112_v35  ;;  %2431 = vmatpush1.bf16.msra.mxu1 %v7114_v23 }
 0x9f1   :  { %2391 = vmatprep.subr.bf16.mxu0 %v7120_v36  ;;  %2432 = vmatprep.subr.bf16.mxu1 %v7122_v52 }
 0x9f4   :  { %2392 = vmatpush1.bf16.msra.mxu0 %v7124_v24  ;;  %2433 = vmatpush1.bf16.msra.mxu1 %v7126_v7 }
 0x9f5   :  { %2393 = vmatprep.subr.bf16.mxu0 %v7132_v1  ;;  %2434 = vmatprep.subr.bf16.mxu1 %v7134_v54 }
 0x9f8   :  { %2394 = vmatpush1.bf16.msra.mxu0 %v7136_v63  ;;  %2435 = vmatpush1.bf16.msra.mxu1 %v7138_v53 }
 0x9f9   :  { %2491 = vmatprep.subr.bf16.mxu0 %v7048_v49  ;;  %2532 = vmatprep.subr.bf16.mxu1 %v7050_v48 }
 0xaae   :  { %v2301_v33 = vpop.f32.mrb[52].mxu0  ;;  %v2342_v58 = vpop.f32.mrb[84].mxu1 }
 0xaaf   :  { %v2349_v37 = vadd.f32 %v2301_v33, %v1883_v45  ;;  %v2351_v51 = vadd.f32 %v2342_v58, %v1956_v13  ;;  %v2303_v46 = vpop.f32.mrb[53].mxu0  ;;  %v2344_v18 = vpop.f32.mrb[85].mxu1 }
 0xab0   :  { %v2350_v14 = vadd.f32 %v2303_v46, %v1885_v50  ;;  %v2352_v39 = vadd.f32 %v2344_v18, %v1958_v56  ;;  %v2305_v62 = vpop.f32.mrb[54].mxu0  ;;  %v2346_v57 = vpop.f32.mrb[86].mxu1 }
 0xab1   :  { %v4971_v26 = vmul.f32 -1.442695, %v2349_v37  ;;  %v2306_v21 = vpop.f32.mrb[55].mxu0  ;;  %v2347_v59 = vpop.f32.mrb[87].mxu1  ;;  %v8512_v57 = vld [vmem:[#allocation33_spill] sm:$0xff] }
 0xab2   :  { %v4972_v29 = vmul.f32 -1.442695, %v2350_v14  ;;  %v4973_v34 = vmul.f32 -1.442695, %v2352_v39  ;;  %v8511_v39 = vld [vmem:[#allocation23_spill] sm:$0xff]  ;;  %v8513_v21 = vld [vmem:[#allocation24_spill] sm:$0xff] }
 0xab3   :  { %5599 = vpow2.f32 %v4971_v26  ;;  %v1962_v62 = vadd.f32 %v8511_v39, %v7252_v22  ;;  %v1891_v26 = vadd.f32 %v8512_v57, %v7259_v8  ;;  %v1964_v59 = vadd.f32 %v8513_v21, %v7262_v17 }
 0xab4   :  { %5601 = vpow2.f32 %v4972_v29 }
 0xab5   :  { %5603 = vpow2.f32 %v4973_v34 }
 0xab6   :  { %5605 = vtanh.f32 %v2351_v51 }
 0xabd   :  { %v5600_v41 = vpop.eup %5599 }
 0xabe   :  { %v5602_v30 = vpop.eup %5601  ;;  %v2356_v15 = vadd.f32 1.0, %v5600_v41 }
 0xabf   :  { %v2362_v19 = vadd.f32 1.0, %v5602_v30  ;;  %v5604_v16 = vpop.eup %5603 }
 0xac0   :  { %5607 = vrcp.f32 %v2356_v15  ;;  %v5606_v45 = vpop.eup %5605  ;;  %v2369_v33 = vadd.f32 1.0, %v5604_v16 }
 0xac1   :  { %5609 = vrcp.f32 %v2362_v19 }
 0xac2   :  { %5611 = vrcp.f32 %v2369_v33 }
 0xaca   :  { %v5608_v13 = vpop.eup %5607 }
 0xacb   :  { %v5610_v50 = vpop.eup %5609  ;;  %v2373_v56 = vmul.f32 %v5608_v13, %v5606_v45 }
 0xacc   :  { %v2372_v58 = vmul.f32 %v5610_v50, %v7272_v25  ;;  %v5612_v46 = vpop.eup %5611  ;;  %v1889_v25 = vadd.f32 %v7167_v28, %v7249_v32 }
 0xace   :  { %v7322_v37 = vadd.f32 %v2373_v56, %v2372_v58 }
 0xad0   :  { %5613 = vtanh.f32 %v7322_v37 }
 0xada   :  { %v5614_v18 = vpop.eup %5613 }
 0xadb   :  { %v7325_v14 = vmul.f32 %v5614_v18, %v5612_v46 }
 0xadd   :  { %v2378_v51 = vpack.c.bf16 %v7325_v14, %v7325_v14 }
 0xadf   :  { %2412 = vmatmul.mubr.bf16.vlgmr.msra.gmra.mrb[56].mxu0 %v2378_v51  ;;  %2453 = vmatmul.mubr.bf16.vlgmr.msra.gmra.mrb[88].mxu1 %v2378_v51 }
 0xae0   :  { %2492 = vmatpush1.bf16.msra.mxu0 %v7052_v27  ;;  %2533 = vmatpush1.bf16.msra.mxu1 %v7054_v44 }
 0xae1   :  { %2493 = vmatprep.subr.bf16.mxu0 %v7060_v55  ;;  %2534 = vmatprep.subr.bf16.mxu1 %v7062_v31 }
 0xae2   :  { %2523 = vmatprep.mubr.bf16.mxu0 %v8467_v60  ;;  %2564 = vmatprep.mubr.bf16.mxu1 %v8467_v60 }
 0xae4   :  { %2494 = vmatpush1.bf16.msra.mxu0 %v7064_v61  ;;  %2535 = vmatpush1.bf16.msra.mxu1 %v7066_v43 }
 0xae5   :  { %2495 = vmatprep.subr.bf16.mxu0 %v7072_v2  ;;  %2536 = vmatprep.subr.bf16.mxu1 %v7074_v4 }
 0xae8   :  { %2496 = vmatpush1.bf16.msra.mxu0 %v7076_v5  ;;  %2537 = vmatpush1.bf16.msra.mxu1 %v7078_v6 }
 0xae9   :  { %2497 = vmatprep.subr.bf16.mxu0 %v7084_v9  ;;  %2538 = vmatprep.subr.bf16.mxu1 %v7086_v10 }
 0xaec   :  { %2498 = vmatpush1.bf16.msra.mxu0 %v7088_v12  ;;  %2539 = vmatpush1.bf16.msra.mxu1 %v7090_v3 }
 0xaed   :  { %2499 = vmatprep.subr.bf16.mxu0 %v7096_v40  ;;  %2540 = vmatprep.subr.bf16.mxu1 %v7098_v47 }
 0xaf0   :  { %2500 = vmatpush1.bf16.msra.mxu0 %v7100_v38  ;;  %2541 = vmatpush1.bf16.msra.mxu1 %v7102_v20 }
 0xaf1   :  { %2501 = vmatprep.subr.bf16.mxu0 %v7108_v0  ;;  %2542 = vmatprep.subr.bf16.mxu1 %v7110_v42 }
 0xaf4   :  { %2502 = vmatpush1.bf16.msra.mxu0 %v7112_v35  ;;  %2543 = vmatpush1.bf16.msra.mxu1 %v7114_v23 }
 0xaf5   :  { %2503 = vmatprep.subr.bf16.mxu0 %v7120_v36  ;;  %2544 = vmatprep.subr.bf16.mxu1 %v7122_v52 }
 0xaf8   :  { %2504 = vmatpush1.bf16.msra.mxu0 %v7124_v24  ;;  %2545 = vmatpush1.bf16.msra.mxu1 %v7126_v7 }
 0xaf9   :  { %2505 = vmatprep.subr.bf16.mxu0 %v7132_v1  ;;  %2546 = vmatprep.subr.bf16.mxu1 %v7134_v54 }
 0xafc   :  { %2506 = vmatpush1.bf16.msra.mxu0 %v7136_v63  ;;  %2547 = vmatpush1.bf16.msra.mxu1 %v7138_v53 }
 0xafd   :  { %2603 = vmatprep.subr.bf16.mxu0 %v7048_v49  ;;  %2644 = vmatprep.subr.bf16.mxu1 %v7050_v48 }
 0xbb2   :  { %v2413_v29 = vpop.f32.mrb[56].mxu0  ;;  %v2454_v34 = vpop.f32.mrb[88].mxu1 }
 0xbb3   :  { %v2461_v41 = vadd.f32 %v2413_v29, %v1889_v25  ;;  %v2463_v30 = vadd.f32 %v2454_v34, %v1962_v62  ;;  %v2415_v15 = vpop.f32.mrb[57].mxu0  ;;  %v2456_v19 = vpop.f32.mrb[89].mxu1 }
 0xbb4   :  { %v2462_v16 = vadd.f32 %v2415_v15, %v1891_v26  ;;  %v2464_v45 = vadd.f32 %v2456_v19, %v1964_v59  ;;  %v2417_v13 = vpop.f32.mrb[58].mxu0  ;;  %v2458_v50 = vpop.f32.mrb[90].mxu1 }
 0xbb5   :  { %v4974_v28 = vmul.f32 -1.442695, %v2461_v41  ;;  %v2418_v56 = vpop.f32.mrb[59].mxu0  ;;  %v2459_v33 = vpop.f32.mrb[91].mxu1  ;;  %v8515_v13 = vld [vmem:[#allocation25_spill] sm:$0xff] }
 0xbb6   :  { %v4975_v58 = vmul.f32 -1.442695, %v2462_v16  ;;  %v4976_v46 = vmul.f32 -1.442695, %v2464_v45  ;;  %v1966_v50 = vadd.f32 %v8515_v13, %v7252_v22  ;;  %v8517_v33 = vld [vmem:[#allocation26_spill] sm:$0xff] }
 0xbb7   :  { %5615 = vpow2.f32 %v4974_v28  ;;  %v8516_v28 = vld [vmem:[#allocation35_spill] sm:$0xff] }
 0xbb8   :  { %5617 = vpow2.f32 %v4975_v58  ;;  %v1895_v56 = vadd.f32 %v8516_v28, %v7259_v8  ;;  %v1968_v58 = vadd.f32 %v8517_v33, %v7262_v17 }
 0xbb9   :  { %5619 = vpow2.f32 %v4976_v46 }
 0xbba   :  { %5621 = vtanh.f32 %v2463_v30 }
 0xbc1   :  { %v5616_v18 = vpop.eup %5615 }
 0xbc2   :  { %v5618_v51 = vpop.eup %5617  ;;  %v2468_v39 = vadd.f32 1.0, %v5616_v18 }
 0xbc3   :  { %v2474_v25 = vadd.f32 1.0, %v5618_v51  ;;  %v5620_v62 = vpop.eup %5619 }
 0xbc4   :  { %5623 = vrcp.f32 %v2468_v39  ;;  %v5622_v57 = vpop.eup %5621  ;;  %v2481_v29 = vadd.f32 1.0, %v5620_v62 }
 0xbc5   :  { %5625 = vrcp.f32 %v2474_v25 }
 0xbc6   :  { %5627 = vrcp.f32 %v2481_v29 }
 0xbce   :  { %v5624_v26 = vpop.eup %5623 }
 0xbcf   :  { %v5626_v21 = vpop.eup %5625  ;;  %v2485_v59 = vmul.f32 %v5624_v26, %v5622_v57 }
 0xbd0   :  { %v2484_v34 = vmul.f32 %v5626_v21, %v7322_v37  ;;  %v5628_v15 = vpop.eup %5627  ;;  %v8514_v37 = vld [vmem:[#allocation34_spill] sm:$0xff] }
 0xbd1   :  { %v1893_v45 = vadd.f32 %v8514_v37, %v7249_v32 }
 0xbd2   :  { %v7372_v41 = vadd.f32 %v2485_v59, %v2484_v34 }
 0xbd4   :  { %5629 = vtanh.f32 %v7372_v41 }
 0xbde   :  { %v5630_v19 = vpop.eup %5629 }
 0xbdf   :  { %v7375_v16 = vmul.f32 %v5630_v19, %v5628_v15 }
 0xbe1   :  { %v2490_v30 = vpack.c.bf16 %v7375_v16, %v7375_v16 }
 0xbe3   :  { %2524 = vmatmul.mubr.bf16.vlgmr.msra.gmra.mrb[60].mxu0 %v2490_v30  ;;  %2565 = vmatmul.mubr.bf16.vlgmr.msra.gmra.mrb[92].mxu1 %v2490_v30 }
 0xbe4   :  { %2604 = vmatpush1.bf16.msra.mxu0 %v7052_v27  ;;  %2645 = vmatpush1.bf16.msra.mxu1 %v7054_v44 }
 0xbe5   :  { %2605 = vmatprep.subr.bf16.mxu0 %v7060_v55  ;;  %2646 = vmatprep.subr.bf16.mxu1 %v7062_v31 }
 0xbe6   :  { %2635 = vmatprep.mubr.bf16.mxu0 %v8467_v60  ;;  %2676 = vmatprep.mubr.bf16.mxu1 %v8467_v60 }
 0xbe8   :  { %2606 = vmatpush1.bf16.msra.mxu0 %v7064_v61  ;;  %2647 = vmatpush1.bf16.msra.mxu1 %v7066_v43 }
 0xbe9   :  { %2607 = vmatprep.subr.bf16.mxu0 %v7072_v2  ;;  %2648 = vmatprep.subr.bf16.mxu1 %v7074_v4 }
 0xbec   :  { %2608 = vmatpush1.bf16.msra.mxu0 %v7076_v5  ;;  %2649 = vmatpush1.bf16.msra.mxu1 %v7078_v6 }
 0xbed   :  { %2609 = vmatprep.subr.bf16.mxu0 %v7084_v9  ;;  %2650 = vmatprep.subr.bf16.mxu1 %v7086_v10 }
 0xbf0   :  { %2610 = vmatpush1.bf16.msra.mxu0 %v7088_v12  ;;  %2651 = vmatpush1.bf16.msra.mxu1 %v7090_v3 }
 0xbf1   :  { %2611 = vmatprep.subr.bf16.mxu0 %v7096_v40  ;;  %2652 = vmatprep.subr.bf16.mxu1 %v7098_v47 }
 0xbf4   :  { %2612 = vmatpush1.bf16.msra.mxu0 %v7100_v38  ;;  %2653 = vmatpush1.bf16.msra.mxu1 %v7102_v20 }
 0xbf5   :  { %2613 = vmatprep.subr.bf16.mxu0 %v7108_v0  ;;  %2654 = vmatprep.subr.bf16.mxu1 %v7110_v42 }
 0xbf8   :  { %2614 = vmatpush1.bf16.msra.mxu0 %v7112_v35  ;;  %2655 = vmatpush1.bf16.msra.mxu1 %v7114_v23 }
 0xbf9   :  { %2615 = vmatprep.subr.bf16.mxu0 %v7120_v36  ;;  %2656 = vmatprep.subr.bf16.mxu1 %v7122_v52 }
 0xbfc   :  { %2616 = vmatpush1.bf16.msra.mxu0 %v7124_v24  ;;  %2657 = vmatpush1.bf16.msra.mxu1 %v7126_v7 }
 0xbfd   :  { %2617 = vmatprep.subr.bf16.mxu0 %v7132_v1  ;;  %2658 = vmatprep.subr.bf16.mxu1 %v7134_v54 }
 0xc00   :  { %2618 = vmatpush1.bf16.msra.mxu0 %v7136_v63  ;;  %2659 = vmatpush1.bf16.msra.mxu1 %v7138_v53 }
 0xc01   :  { %2715 = vmatprep.subr.bf16.mxu0 %v7048_v49  ;;  %2756 = vmatprep.subr.bf16.mxu1 %v7050_v48 }
 0xcb6   :  { %v2525_v46 = vpop.f32.mrb[60].mxu0  ;;  %v2566_v18 = vpop.f32.mrb[92].mxu1 }
 0xcb7   :  { %v2573_v51 = vadd.f32 %v2525_v46, %v1893_v45  ;;  %v2575_v39 = vadd.f32 %v2566_v18, %v1966_v50  ;;  %v2527_v25 = vpop.f32.mrb[61].mxu0  ;;  %v2568_v62 = vpop.f32.mrb[93].mxu1 }
 0xcb8   :  { %v2574_v57 = vadd.f32 %v2527_v25, %v1895_v56  ;;  %v2576_v26 = vadd.f32 %v2568_v62, %v1968_v58  ;;  %v2529_v21 = vpop.f32.mrb[62].mxu0  ;;  %v2570_v59 = vpop.f32.mrb[94].mxu1 }
 0xcb9   :  { %v4977_v29 = vmul.f32 -1.442695, %v2573_v51  ;;  %v2530_v34 = vpop.f32.mrb[63].mxu0  ;;  %v2571_v15 = vpop.f32.mrb[95].mxu1 }
 0xcba   :  { %v4978_v19 = vmul.f32 -1.442695, %v2574_v57  ;;  %v4979_v30 = vmul.f32 -1.442695, %v2576_v26 }
 0xcbb   :  { %5631 = vpow2.f32 %v4977_v29 }
 0xcbc   :  { %5633 = vpow2.f32 %v4978_v19 }
 0xcbd   :  { %5635 = vpow2.f32 %v4979_v30  ;;  %v7479_v30 = vld [vmem:[#allocation3 + $0x100] ss:$16 sps:$4 sm:$0xff]  }
 0xcbe   :  { %5637 = vtanh.f32 %v2575_v39 }
 0xcc5   :  { %v5632_v37 = vpop.eup %5631 }
 0xcc6   :  { %v5634_v13 = vpop.eup %5633  ;;  %v2580_v28 = vadd.f32 1.0, %v5632_v37  ;;  %v7482_v37 = vld [vmem:[#allocation3 + $0x108] ss:$16 sps:$4 sm:$0xff]  }
 0xcc7   :  { %v2586_v45 = vadd.f32 1.0, %v5634_v13  ;;  %v5636_v50 = vpop.eup %5635  ;;  %v7485_v13 = vld [vmem:[#allocation3 + $0x124] ss:$16 sps:$4 sm:$0xff]  }
 0xcc8   :  { %5639 = vrcp.f32 %v2580_v28  ;;  %v5638_v56 = vpop.eup %5637  ;;  %v2593_v18 = vadd.f32 1.0, %v5636_v50  ;;  %v7488_v28 = vld [vmem:[#allocation3 + $0x12c] ss:$16 sps:$4 sm:$0xff]   ;;  %v7496_v50 = vld [vmem:[#allocation3 + $0x128] ss:$16 sps:$4 sm:$0xff]  }
 0xcc9   :  { %5641 = vrcp.f32 %v2586_v45  ;;  %v7493_v45 = vld [vmem:[#allocation3 + $0x120] ss:$16 sps:$4 sm:$0xff]  }
 0xcca   :  { %5643 = vrcp.f32 %v2593_v18  ;;  %v7511_v18 = vld [vmem:[#allocation3 + $0x164] ss:$16 sps:$4 sm:$0xff]  }
 0xcd2   :  { %v5640_v33 = vpop.eup %5639 }
 0xcd3   :  { %v5642_v58 = vpop.eup %5641  ;;  %v2597_v46 = vmul.f32 %v5640_v33, %v5638_v56  ;;  %v7499_v56 = vld [vmem:[#allocation3 + $0x144] ss:$16 sps:$4 sm:$0xff]   ;;  %v7502_v33 = vld [vmem:[#allocation3 + $0x14c] ss:$16 sps:$4 sm:$0xff]  }
 0xcd4   :  { %v2596_v51 = vmul.f32 %v5642_v58, %v7372_v41  ;;  %v5644_v62 = vpop.eup %5643  ;;  %v7505_v58 = vld [vmem:[#allocation3 + $0x140] ss:$16 sps:$4 sm:$0xff]  }
 0xcd6   :  { %v7422_v25 = vadd.f32 %v2597_v46, %v2596_v51  ;;  %v7508_v46 = vld [vmem:[#allocation3 + $0x148] ss:$16 sps:$4 sm:$0xff]   ;;  %v7514_v51 = vld [vmem:[#allocation3 + $0x16c] ss:$16 sps:$4 sm:$0xff]  }
 0xcd8   :  { %5645 = vtanh.f32 %v7422_v25 }
 0xce2   :  { %v5646_v57 = vpop.eup %5645 }
 0xce3   :  { %v7425_v26 = vmul.f32 %v5646_v57, %v5644_v62  ;;  %v7520_v62 = vld [vmem:[#allocation3 + $0x168] ss:$16 sps:$4 sm:$0xff]   ;;  %v7523_v57 = vld [vmem:[#allocation3 + $0x184] ss:$16 sps:$4 sm:$0xff]  }
 0xce5   :  { %v2602_v39 = vpack.c.bf16 %v7425_v26, %v7425_v26 }
 0xce7   :  { %2636 = vmatmul.mubr.bf16.vlgmr.msra.gmra.mrb[64].mxu0 %v2602_v39  ;;  %2677 = vmatmul.mubr.bf16.vlgmr.msra.gmra.mrb[96].mxu1 %v2602_v39  ;;  %v7526_v39 = vld [vmem:[#allocation3 + $0x18c] ss:$16 sps:$4 sm:$0xff]  }
 0xce8   :  { %2716 = vmatpush1.bf16.msra.mxu0 %v7052_v27  ;;  %2757 = vmatpush1.bf16.msra.mxu1 %v7054_v44  ;;  %v8518_v27 = vld [vmem:[#allocation36_spill] sm:$0xff] }
 0xce9   :  { %2717 = vmatprep.subr.bf16.mxu0 %v7060_v55  ;;  %2758 = vmatprep.subr.bf16.mxu1 %v7062_v31  ;;  %v1899_v44 = vadd.f32 %v8518_v27, %v7249_v32  ;;  %v8519_v55 = vld [vmem:[#allocation27_spill] sm:$0xff] }
 0xcea   :  { %2747 = vmatprep.mubr.bf16.mxu0 %v8467_v60  ;;  %2788 = vmatprep.mubr.bf16.mxu1 %v8467_v60  ;;  %v1972_v31 = vadd.f32 %v8519_v55, %v7252_v22  ;;  %v7529_v27 = vld [vmem:[#allocation3 + $0x180] ss:$16 sps:$4 sm:$0xff]   ;;  %v7535_v55 = vld [vmem:[#allocation3 + $0x1a4] ss:$16 sps:$4 sm:$0xff]  }
 0xcec   :  { %2718 = vmatpush1.bf16.msra.mxu0 %v7064_v61  ;;  %2759 = vmatpush1.bf16.msra.mxu1 %v7066_v43  ;;  %v8520_v61 = vld [vmem:[#allocation37_spill] sm:$0xff] }
 0xced   :  { %2719 = vmatprep.subr.bf16.mxu0 %v7072_v2  ;;  %2760 = vmatprep.subr.bf16.mxu1 %v7074_v4  ;;  %v1901_v43 = vadd.f32 %v8520_v61, %v7259_v8  ;;  %v8521_v2 = vld [vmem:[#allocation28_spill] sm:$0xff]  ;;  %v7541_v61 = vld [vmem:[#allocation3 + $0x1a0] ss:$16 sps:$4 sm:$0xff]  }
 0xcee   :  { %v1974_v4 = vadd.f32 %v8521_v2, %v7262_v17  ;;  %v7547_v2 = vld [vmem:[#allocation3 + $0x1c4] ss:$16 sps:$4 sm:$0xff]  }
 0xcf0   :  { %2720 = vmatpush1.bf16.msra.mxu0 %v7076_v5  ;;  %2761 = vmatpush1.bf16.msra.mxu1 %v7078_v6 }
 0xcf1   :  { %2721 = vmatprep.subr.bf16.mxu0 %v7084_v9  ;;  %2762 = vmatprep.subr.bf16.mxu1 %v7086_v10 }
 0xcf4   :  { %2722 = vmatpush1.bf16.msra.mxu0 %v7088_v12  ;;  %2763 = vmatpush1.bf16.msra.mxu1 %v7090_v3 }
 0xcf5   :  { %2723 = vmatprep.subr.bf16.mxu0 %v7096_v40  ;;  %2764 = vmatprep.subr.bf16.mxu1 %v7098_v47 }
 0xcf8   :  { %2724 = vmatpush1.bf16.msra.mxu0 %v7100_v38  ;;  %2765 = vmatpush1.bf16.msra.mxu1 %v7102_v20 }
 0xcf9   :  { %2725 = vmatprep.subr.bf16.mxu0 %v7108_v0  ;;  %2766 = vmatprep.subr.bf16.mxu1 %v7110_v42 }
 0xcfc   :  { %2726 = vmatpush1.bf16.msra.mxu0 %v7112_v35  ;;  %2767 = vmatpush1.bf16.msra.mxu1 %v7114_v23 }
 0xcfd   :  { %2727 = vmatprep.subr.bf16.mxu0 %v7120_v36  ;;  %2768 = vmatprep.subr.bf16.mxu1 %v7122_v52 }
 0xd00   :  { %2728 = vmatpush1.bf16.msra.mxu0 %v7124_v24  ;;  %2769 = vmatpush1.bf16.msra.mxu1 %v7126_v7 }
 0xd01   :  { %2729 = vmatprep.subr.bf16.mxu0 %v7132_v1  ;;  %2770 = vmatprep.subr.bf16.mxu1 %v7134_v54 }
 0xd04   :  { %2730 = vmatpush1.bf16.msra.mxu0 %v7136_v63  ;;  %2771 = vmatpush1.bf16.msra.mxu1 %v7138_v53 }
 0xd05   :  { %2827 = vmatprep.subr.bf16.mxu0 %v7048_v49  ;;  %2868 = vmatprep.subr.bf16.mxu1 %v7050_v48 }
 0xdba   :  { %v2637_v5 = vpop.f32.mrb[64].mxu0  ;;  %v2678_v6 = vpop.f32.mrb[96].mxu1 }
 0xdbb   :  { %v2685_v9 = vadd.f32 %v2637_v5, %v1899_v44  ;;  %v2687_v10 = vadd.f32 %v2678_v6, %v1972_v31  ;;  %v2639_v12 = vpop.f32.mrb[65].mxu0  ;;  %v2680_v49 = vpop.f32.mrb[97].mxu1  ;;  %v7532_v44 = vld [vmem:[#allocation3 + $0x188] ss:$16 sps:$4 sm:$0xff]   ;;  %v7538_v31 = vld [vmem:[#allocation3 + $0x1ac] ss:$16 sps:$4 sm:$0xff]  }
 0xdbc   :  { %v2686_v3 = vadd.f32 %v2639_v12, %v1901_v43  ;;  %v2688_v48 = vadd.f32 %v2680_v49, %v1974_v4  ;;  %v2641_v40 = vpop.f32.mrb[66].mxu0  ;;  %v2682_v47 = vpop.f32.mrb[98].mxu1  ;;  %v7544_v43 = vld [vmem:[#allocation3 + $0x1a8] ss:$16 sps:$4 sm:$0xff]   ;;  %v7550_v4 = vld [vmem:[#allocation3 + $0x1cc] ss:$16 sps:$4 sm:$0xff]  }
 0xdbd   :  { %v4980_v38 = vmul.f32 -1.442695, %v2685_v9  ;;  %v2642_v20 = vpop.f32.mrb[67].mxu0  ;;  %v2683_v0 = vpop.f32.mrb[99].mxu1  ;;  %v7553_v5 = vld [vmem:[#allocation3 + $0x1c0] ss:$16 sps:$4 sm:$0xff]  }
 0xdbe   :  { %v4981_v42 = vmul.f32 -1.442695, %v2686_v3  ;;  %v4982_v35 = vmul.f32 -1.442695, %v2688_v48  ;;  %v7556_v6 = vld [vmem:[#allocation3 + $0x1c8] ss:$16 sps:$4 sm:$0xff]  }
 0xdbf   :  { %5647 = vpow2.f32 %v4980_v38  ;;  %v7559_v9 = vld [vmem:[#allocation3 + $0x1e4] ss:$16 sps:$4 sm:$0xff]   ;;  %v7565_v12 = vld [vmem:[#allocation3 + $0x1e0] ss:$16 sps:$4 sm:$0xff]   ;;  %v7568_v49 = vld [vmem:[#allocation3 + $0x1e8] ss:$16 sps:$4 sm:$0xff]  }
 0xdc0   :  { %5649 = vpow2.f32 %v4981_v42  ;;  %v5901_v3 = vld [vmem:[#allocation3 + $0x104] ss:$16 sps:$4 sm:$0xff]   ;;  %v5902_v48 = vld [vmem:[#allocation3 + $0x10c] ss:$16 sps:$4 sm:$0xff]  }
 0xdc1   :  { %5651 = vpow2.f32 %v4982_v35  ;;  %v8522_v40 = vld [vmem:[#allocation38_spill] sm:$0xff]  ;;  %v8523_v38 = vld [vmem:[#allocation29_spill] sm:$0xff]  ;;  %v8524_v0 = vld [vmem:[#allocation39_spill] sm:$0xff] }
 0xdc2   :  { %5653 = vtanh.f32 %v2687_v10  ;;  %v7562_v10 = vld [vmem:[#allocation3 + $0x1ec] ss:$16 sps:$4 sm:$0xff]   ;;  %v1903_v47 = vadd.f32 %v8522_v40, %v7249_v32  ;;  %v1976_v20 = vadd.f32 %v8523_v38, %v7252_v22  ;;  %v1905_v42 = vadd.f32 %v8524_v0, %v7259_v8  ;;  %v8525_v35 = vld [vmem:[#allocation30_spill] sm:$0xff] }
 0xdc9   :  { %v5648_v23 = vpop.eup %5647 }
 0xdca   :  { %v5650_v36 = vpop.eup %5649  ;;  %v2692_v52 = vadd.f32 1.0, %v5648_v23  ;;  %v1978_v23 = vadd.f32 %v8525_v35, %v7262_v17 }
 0xdcb   :  { %v2698_v24 = vadd.f32 1.0, %v5650_v36  ;;  %v5652_v7 = vpop.eup %5651 }
 0xdcc   :  { %5655 = vrcp.f32 %v2692_v52  ;;  %v5654_v1 = vpop.eup %5653  ;;  %v2705_v41 = vadd.f32 1.0, %v5652_v7 }
 0xdcd   :  { %5657 = vrcp.f32 %v2698_v24 }
 0xdce   :  { %5659 = vrcp.f32 %v2705_v41 }
 0xdd6   :  { %v5656_v54 = vpop.eup %5655 }
 0xdd7   :  { %v5658_v63 = vpop.eup %5657  ;;  %v2709_v53 = vmul.f32 %v5656_v54, %v5654_v1 }
 0xdd8   :  { %v2708_v21 = vmul.f32 %v5658_v63, %v7422_v25  ;;  %v5660_v29 = vpop.eup %5659  ;;  %v7517_v25 = vld [vmem:[#allocation3 + $0x160] ss:$16 sps:$4 sm:$0xff]  }
 0xdda   :  { %v7472_v59 = vadd.f32 %v2709_v53, %v2708_v21 }
 0xddc   :  { %5661 = vtanh.f32 %v7472_v59 }
 0xde6   :  { %v5662_v34 = vpop.eup %5661 }
 0xde7   :  { %v7475_v15 = vmul.f32 %v5662_v34, %v5660_v29 }
 0xde9   :  { %v2714_v19 = vpack.c.bf16 %v7475_v15, %v7475_v15 }
 0xdeb   :  { %2748 = vmatmul.mubr.bf16.vlgmr.msra.gmra.mrb[68].mxu0 %v2714_v19  ;;  %2789 = vmatmul.mubr.bf16.vlgmr.msra.gmra.mrb[100].mxu1 %v2714_v19 }
 0xdec   :  { %2828 = vmatpush1.bf16.msra.mxu0 %v7479_v30  ;;  %2869 = vmatpush1.bf16.msra.mxu1 %v7482_v37 }
 0xded   :  { %2829 = vmatprep.subr.bf16.mxu0 %v7485_v13  ;;  %2870 = vmatprep.subr.bf16.mxu1 %v7488_v28 }
 0xdee   :  { %2859 = vmatprep.mubr.bf16.mxu0 %v8467_v60  ;;  %2900 = vmatprep.mubr.bf16.mxu1 %v8467_v60 }
 0xdf0   :  { %2830 = vmatpush1.bf16.msra.mxu0 %v7493_v45  ;;  %2871 = vmatpush1.bf16.msra.mxu1 %v7496_v50 }
 0xdf1   :  { %2831 = vmatprep.subr.bf16.mxu0 %v7499_v56  ;;  %2872 = vmatprep.subr.bf16.mxu1 %v7502_v33 }
 0xdf4   :  { %2832 = vmatpush1.bf16.msra.mxu0 %v7505_v58  ;;  %2873 = vmatpush1.bf16.msra.mxu1 %v7508_v46 }
 0xdf5   :  { %2833 = vmatprep.subr.bf16.mxu0 %v7511_v18  ;;  %2874 = vmatprep.subr.bf16.mxu1 %v7514_v51 }
 0xdf8   :  { %2834 = vmatpush1.bf16.msra.mxu0 %v7517_v25  ;;  %2875 = vmatpush1.bf16.msra.mxu1 %v7520_v62 }
 0xdf9   :  { %2835 = vmatprep.subr.bf16.mxu0 %v7523_v57  ;;  %2876 = vmatprep.subr.bf16.mxu1 %v7526_v39 }
 0xdfc   :  { %2836 = vmatpush1.bf16.msra.mxu0 %v7529_v27  ;;  %2877 = vmatpush1.bf16.msra.mxu1 %v7532_v44 }
 0xdfd   :  { %2837 = vmatprep.subr.bf16.mxu0 %v7535_v55  ;;  %2878 = vmatprep.subr.bf16.mxu1 %v7538_v31 }
 0xe00   :  { %2838 = vmatpush1.bf16.msra.mxu0 %v7541_v61  ;;  %2879 = vmatpush1.bf16.msra.mxu1 %v7544_v43 }
 0xe01   :  { %2839 = vmatprep.subr.bf16.mxu0 %v7547_v2  ;;  %2880 = vmatprep.subr.bf16.mxu1 %v7550_v4 }
 0xe04   :  { %2840 = vmatpush1.bf16.msra.mxu0 %v7553_v5  ;;  %2881 = vmatpush1.bf16.msra.mxu1 %v7556_v6 }
 0xe05   :  { %2841 = vmatprep.subr.bf16.mxu0 %v7559_v9  ;;  %2882 = vmatprep.subr.bf16.mxu1 %v7562_v10 }
 0xe08   :  { %2842 = vmatpush1.bf16.msra.mxu0 %v7565_v12  ;;  %2883 = vmatpush1.bf16.msra.mxu1 %v7568_v49 }
 0xe09   :  { %2939 = vmatprep.subr.bf16.mxu0 %v5901_v3  ;;  %2980 = vmatprep.subr.bf16.mxu1 %v5902_v48 }
 0xebe   :  { %v2749_v36 = vpop.f32.mrb[68].mxu0  ;;  %v2790_v52 = vpop.f32.mrb[100].mxu1 }
 0xebf   :  { %v2797_v24 = vadd.f32 %v2749_v36, %v1903_v47  ;;  %v2799_v7 = vadd.f32 %v2790_v52, %v1976_v20  ;;  %v2751_v1 = vpop.f32.mrb[69].mxu0  ;;  %v2792_v54 = vpop.f32.mrb[101].mxu1 }
 0xec0   :  { %v2798_v63 = vadd.f32 %v2751_v1, %v1905_v42  ;;  %v2800_v53 = vadd.f32 %v2792_v54, %v1978_v23  ;;  %v2753_v41 = vpop.f32.mrb[70].mxu0  ;;  %v2794_v21 = vpop.f32.mrb[102].mxu1 }
 0xec1   :  { %v4983_v29 = vmul.f32 -1.442695, %v2797_v24  ;;  %v2754_v34 = vpop.f32.mrb[71].mxu0  ;;  %v2795_v19 = vpop.f32.mrb[103].mxu1 }
 0xec2   :  { %v4984_v3 = vmul.f32 -1.442695, %v2798_v63  ;;  %v4985_v48 = vmul.f32 -1.442695, %v2800_v53 }
 0xec3   :  { %5663 = vpow2.f32 %v4983_v29 }
 0xec4   :  { %5665 = vpow2.f32 %v4984_v3 }
 0xec5   :  { %5667 = vpow2.f32 %v4985_v48 }
 0xec6   :  { %5669 = vtanh.f32 %v2799_v7 }
 0xecd   :  { %v5664_v40 = vpop.eup %5663 }
 0xece   :  { %v5666_v38 = vpop.eup %5665  ;;  %v2804_v0 = vadd.f32 1.0, %v5664_v40 }
 0xecf   :  { %v2810_v47 = vadd.f32 1.0, %v5666_v38  ;;  %v5668_v20 = vpop.eup %5667 }
 0xed0   :  { %5671 = vrcp.f32 %v2804_v0  ;;  %v5670_v42 = vpop.eup %5669  ;;  %v2817_v52 = vadd.f32 1.0, %v5668_v20  ;;  %v5335_v0 = vld [vmem:[%s8427_s1 + $0x200] ss:$16 sps:$4 sm:$0xff]  }
 0xed1   :  { %5673 = vrcp.f32 %v2810_v47  ;;  %v5338_v47 = vld [vmem:[%s8427_s1 + $0x208] ss:$16 sps:$4 sm:$0xff]  }
 0xed2   :  { %5675 = vrcp.f32 %v2817_v52  ;;  %v5349_v52 = vld [vmem:[%s8427_s1 + $0x244] ss:$16 sps:$4 sm:$0xff]  }
 0xeda   :  { %v5672_v35 = vpop.eup %5671 }
 0xedb   :  { %v5674_v23 = vpop.eup %5673  ;;  %v2821_v36 = vmul.f32 %v5672_v35, %v5670_v42  ;;  %v5343_v42 = vld [vmem:[%s8427_s1 + $0x224] ss:$16 sps:$4 sm:$0xff]   ;;  %v5346_v35 = vld [vmem:[%s8427_s1 + $0x22c] ss:$16 sps:$4 sm:$0xff]  }
 0xedc   :  { %v2820_v24 = vmul.f32 %v5674_v23, %v7472_v59  ;;  %v5676_v54 = vpop.eup %5675  ;;  %v5337_v59 = vld [vmem:[%s8427_s1 + $0x204] ss:$16 sps:$4 sm:$0xff]   ;;  %v5341_v23 = vld [vmem:[%s8427_s1 + $0x220] ss:$16 sps:$4 sm:$0xff]  }
 0xede   :  { %v7580_v1 = vadd.f32 %v2821_v36, %v2820_v24  ;;  %v5344_v36 = vld [vmem:[%s8427_s1 + $0x228] ss:$16 sps:$4 sm:$0xff]   ;;  %v5352_v24 = vld [vmem:[%s8427_s1 + $0x24c] ss:$16 sps:$4 sm:$0xff]  }
 0xee0   :  { %5677 = vtanh.f32 %v7580_v1 }
 0xeea   :  { %v5678_v63 = vpop.eup %5677 }
 0xeeb   :  { %v7583_v53 = vmul.f32 %v5678_v63, %v5676_v54  ;;  %v5350_v54 = vld [vmem:[%s8427_s1 + $0x248] ss:$16 sps:$4 sm:$0xff]   ;;  %v5355_v63 = vld [vmem:[%s8427_s1 + $0x264] ss:$16 sps:$4 sm:$0xff]  }
 0xeed   :  { %v2826_v7 = vpack.c.bf16 %v7583_v53, %v7583_v53 }
 0xeef   :  { %2860 = vmatmul.mubr.bf16.vlgmr.msra.gmra.mrb[72].mxu0 %v2826_v7  ;;  %2901 = vmatmul.mubr.bf16.vlgmr.msra.gmra.mrb[104].mxu1 %v2826_v7  ;;  %v5358_v7 = vld [vmem:[%s8427_s1 + $0x26c] ss:$16 sps:$4 sm:$0xff]  }
 0xef0   :  { %2940 = vmatpush1.bf16.msra.mxu0 %v7479_v30  ;;  %2981 = vmatpush1.bf16.msra.mxu1 %v7482_v37  ;;  %v5340_v30 = vld [vmem:[%s8427_s1 + $0x20c] ss:$16 sps:$4 sm:$0xff]   ;;  %v8526_v37 = vld [vmem:[#allocation40_spill] sm:$0xff] }
 0xef1   :  { %2941 = vmatprep.subr.bf16.mxu0 %v7485_v13  ;;  %2982 = vmatprep.subr.bf16.mxu1 %v7488_v28  ;;  %v1909_v13 = vadd.f32 %v8526_v37, %v7249_v32  ;;  %v8527_v28 = vld [vmem:[#allocation41_spill] sm:$0xff]  ;;  %v5361_v37 = vld [vmem:[%s8427_s1 + $0x284] ss:$16 sps:$4 sm:$0xff]  }
 0xef2   :  { %2971 = vmatprep.mubr.bf16.mxu0 %v8467_v60  ;;  %3012 = vmatprep.mubr.bf16.mxu1 %v8467_v60 }
 0xef4   :  { %2942 = vmatpush1.bf16.msra.mxu0 %v7493_v45  ;;  %2983 = vmatpush1.bf16.msra.mxu1 %v7496_v50  ;;  %v1982_v45 = vadd.f32 %v8527_v28, %v7252_v22  ;;  %v8528_v50 = vld [vmem:[#allocation42_spill] sm:$0xff]  ;;  %v5359_v28 = vld [vmem:[%s8427_s1 + $0x280] ss:$16 sps:$4 sm:$0xff]  }
 0xef5   :  { %2943 = vmatprep.subr.bf16.mxu0 %v7499_v56  ;;  %2984 = vmatprep.subr.bf16.mxu1 %v7502_v33  ;;  %v1911_v56 = vadd.f32 %v8528_v50, %v7259_v8  ;;  %v8529_v33 = vld [vmem:[#allocation43_spill] sm:$0xff]  ;;  %v5367_v50 = vld [vmem:[%s8427_s1 + $0x2a4] ss:$16 sps:$4 sm:$0xff]  }
 0xef8   :  { %2944 = vmatpush1.bf16.msra.mxu0 %v7505_v58  ;;  %2985 = vmatpush1.bf16.msra.mxu1 %v7508_v46  ;;  %v1984_v58 = vadd.f32 %v8529_v33, %v7262_v17  ;;  %v5365_v33 = vld [vmem:[%s8427_s1 + $0x2a0] ss:$16 sps:$4 sm:$0xff]  }
 0xef9   :  { %2945 = vmatprep.subr.bf16.mxu0 %v7511_v18  ;;  %2986 = vmatprep.subr.bf16.mxu1 %v7514_v51 }
 0xefc   :  { %2946 = vmatpush1.bf16.msra.mxu0 %v7517_v25  ;;  %2987 = vmatpush1.bf16.msra.mxu1 %v7520_v62 }
 0xefd   :  { %2947 = vmatprep.subr.bf16.mxu0 %v7523_v57  ;;  %2988 = vmatprep.subr.bf16.mxu1 %v7526_v39 }
 0xf00   :  { %2948 = vmatpush1.bf16.msra.mxu0 %v7529_v27  ;;  %2989 = vmatpush1.bf16.msra.mxu1 %v7532_v44 }
 0xf01   :  { %2949 = vmatprep.subr.bf16.mxu0 %v7535_v55  ;;  %2990 = vmatprep.subr.bf16.mxu1 %v7538_v31 }
 0xf04   :  { %2950 = vmatpush1.bf16.msra.mxu0 %v7541_v61  ;;  %2991 = vmatpush1.bf16.msra.mxu1 %v7544_v43 }
 0xf05   :  { %2951 = vmatprep.subr.bf16.mxu0 %v7547_v2  ;;  %2992 = vmatprep.subr.bf16.mxu1 %v7550_v4 }
 0xf08   :  { %2952 = vmatpush1.bf16.msra.mxu0 %v7553_v5  ;;  %2993 = vmatpush1.bf16.msra.mxu1 %v7556_v6 }
 0xf09   :  { %2953 = vmatprep.subr.bf16.mxu0 %v7559_v9  ;;  %2994 = vmatprep.subr.bf16.mxu1 %v7562_v10 }
 0xf0c   :  { %2954 = vmatpush1.bf16.msra.mxu0 %v7565_v12  ;;  %2995 = vmatpush1.bf16.msra.mxu1 %v7568_v49 }
 0xf0d   :  { %3315 = vmatprep.subr.bf16.mxu0 %v5337_v59  ;;  %3388 = vmatprep.subr.bf16.mxu1 %v5340_v30  ;;  %v5353_v59 = vld [vmem:[%s8427_s1 + $0x260] ss:$16 sps:$4 sm:$0xff]   ;;  %v5356_v30 = vld [vmem:[%s8427_s1 + $0x268] ss:$16 sps:$4 sm:$0xff]  }
 0xfc2   :  { %v2861_v46 = vpop.f32.mrb[72].mxu0  ;;  %v2902_v18 = vpop.f32.mrb[104].mxu1 }
 0xfc3   :  { %v2909_v51 = vadd.f32 %v2861_v46, %v1909_v13  ;;  %v2911_v25 = vadd.f32 %v2902_v18, %v1982_v45  ;;  %v2863_v62 = vpop.f32.mrb[73].mxu0  ;;  %v2904_v57 = vpop.f32.mrb[105].mxu1  ;;  %v5364_v13 = vld [vmem:[%s8427_s1 + $0x28c] ss:$16 sps:$4 sm:$0xff]   ;;  %v5362_v45 = vld [vmem:[%s8427_s1 + $0x288] ss:$16 sps:$4 sm:$0xff]  }
 0xfc4   :  { %v2910_v39 = vadd.f32 %v2863_v62, %v1911_v56  ;;  %v2912_v27 = vadd.f32 %v2904_v57, %v1984_v58  ;;  %v2865_v44 = vpop.f32.mrb[74].mxu0  ;;  %v2906_v55 = vpop.f32.mrb[106].mxu1  ;;  %v5370_v56 = vld [vmem:[%s8427_s1 + $0x2ac] ss:$16 sps:$4 sm:$0xff]   ;;  %v5368_v58 = vld [vmem:[%s8427_s1 + $0x2a8] ss:$16 sps:$4 sm:$0xff]  }
 0xfc5   :  { %v4986_v31 = vmul.f32 -1.442695, %v2909_v51  ;;  %v2866_v61 = vpop.f32.mrb[75].mxu0  ;;  %v2907_v43 = vpop.f32.mrb[107].mxu1  ;;  %v5373_v46 = vld [vmem:[%s8427_s1 + $0x2c4] ss:$16 sps:$4 sm:$0xff]   ;;  %v3128_v44 = vpack.c.bf16 %v7325_v14, %v7275_v11  ;;  %v3129_v55 = vpack.c.bf16 %v7425_v26, %v7375_v16 }
 0xfc6   :  { %v4987_v2 = vmul.f32 -1.442695, %v2910_v39  ;;  %v4988_v4 = vmul.f32 -1.442695, %v2912_v27  ;;  %v5376_v18 = vld [vmem:[%s8427_s1 + $0x2cc] ss:$16 sps:$4 sm:$0xff]  }
 0xfc7   :  { %5679 = vpow2.f32 %v4986_v31  ;;  %v5371_v51 = vld [vmem:[%s8427_s1 + $0x2c0] ss:$16 sps:$4 sm:$0xff]   ;;  %v5379_v62 = vld [vmem:[%s8427_s1 + $0x2e4] ss:$16 sps:$4 sm:$0xff]   ;;  %v5382_v57 = vld [vmem:[%s8427_s1 + $0x2ec] ss:$16 sps:$4 sm:$0xff]   ;;  %v3130_v31 = vpack.c.bf16 %v7583_v53, %v7475_v15 }
 0xfc8   :  { %5681 = vpow2.f32 %v4987_v2  ;;  %v5377_v39 = vld [vmem:[%s8427_s1 + $0x2e0] ss:$16 sps:$4 sm:$0xff]   ;;  %v5380_v27 = vld [vmem:[%s8427_s1 + $0x2e8] ss:$16 sps:$4 sm:$0xff]   ;;  %v7745_v11 = vld [vmem:[#allocation3 + $0x204] ss:$16 sps:$4 sm:$0xff]  }
 0xfc9   :  { %5683 = vpow2.f32 %v4988_v4  ;;  %v7747_v14 = vld [vmem:[#allocation3 + $0x20c] ss:$16 sps:$4 sm:$0xff]   ;;  %v7749_v16 = vld [vmem:[#allocation3 + $0x200] ss:$16 sps:$4 sm:$0xff]   ;;  %v7751_v26 = vld [vmem:[#allocation3 + $0x208] ss:$16 sps:$4 sm:$0xff]  }
 0xfca   :  { %5685 = vtanh.f32 %v2911_v25  ;;  %v5374_v25 = vld [vmem:[%s8427_s1 + $0x2c8] ss:$16 sps:$4 sm:$0xff]   ;;  %v7757_v15 = vld [vmem:[#allocation3 + $0x224] ss:$16 sps:$4 sm:$0xff]   ;;  %v7759_v53 = vld [vmem:[#allocation3 + $0x22c] ss:$16 sps:$4 sm:$0xff]  }
 0xfcb   :  { %v7761_v61 = vld [vmem:[#allocation3 + $0x220] ss:$16 sps:$4 sm:$0xff]   ;;  %v7763_v43 = vld [vmem:[#allocation3 + $0x228] ss:$16 sps:$4 sm:$0xff]   ;;  %v7769_v2 = vld [vmem:[#allocation3 + $0x244] ss:$16 sps:$4 sm:$0xff]  }
 0xfcc   :  { %v7771_v4 = vld [vmem:[#allocation3 + $0x24c] ss:$16 sps:$4 sm:$0xff]  }
 0xfd1   :  { %v5680_v5 = vpop.eup %5679 }
 0xfd2   :  { %v5682_v6 = vpop.eup %5681  ;;  %v2916_v9 = vadd.f32 1.0, %v5680_v5  ;;  %v7773_v5 = vld [vmem:[#allocation3 + $0x240] ss:$16 sps:$4 sm:$0xff]  }
 0xfd3   :  { %v2922_v10 = vadd.f32 1.0, %v5682_v6  ;;  %v5684_v12 = vpop.eup %5683  ;;  %v7775_v6 = vld [vmem:[#allocation3 + $0x248] ss:$16 sps:$4 sm:$0xff]  }
 0xfd4   :  { %5687 = vrcp.f32 %v2916_v9  ;;  %v5686_v49 = vpop.eup %5685  ;;  %v2929_v34 = vadd.f32 1.0, %v5684_v12  ;;  %v7781_v9 = vld [vmem:[#allocation3 + $0x264] ss:$16 sps:$4 sm:$0xff]   ;;  %v7785_v12 = vld [vmem:[#allocation3 + $0x260] ss:$16 sps:$4 sm:$0xff]  }
 0xfd5   :  { %5689 = vrcp.f32 %v2922_v10  ;;  %v7783_v10 = vld [vmem:[#allocation3 + $0x26c] ss:$16 sps:$4 sm:$0xff]  }
 0xfd6   :  { %5691 = vrcp.f32 %v2929_v34  ;;  %v7799_v34 = vld [vmem:[#allocation3 + $0x288] ss:$16 sps:$4 sm:$0xff]  }
 0xfde   :  { %v5688_v41 = vpop.eup %5687 }
 0xfdf   :  { %v5690_v21 = vpop.eup %5689  ;;  %v2933_v29 = vmul.f32 %v5688_v41, %v5686_v49  ;;  %v7787_v49 = vld [vmem:[#allocation3 + $0x268] ss:$16 sps:$4 sm:$0xff]   ;;  %v7793_v41 = vld [vmem:[#allocation3 + $0x284] ss:$16 sps:$4 sm:$0xff]  }
 0xfe0   :  { %v2932_v19 = vmul.f32 %v5690_v21, %v7580_v1  ;;  %v5692_v48 = vpop.eup %5691  ;;  %v5347_v1 = vld [vmem:[%s8427_s1 + $0x240] ss:$16 sps:$4 sm:$0xff]   ;;  %v7795_v21 = vld [vmem:[#allocation3 + $0x28c] ss:$16 sps:$4 sm:$0xff]  }
 0xfe2   :  { %v7634_v3 = vadd.f32 %v2933_v29, %v2932_v19  ;;  %v7797_v29 = vld [vmem:[#allocation3 + $0x280] ss:$16 sps:$4 sm:$0xff]   ;;  %v7805_v19 = vld [vmem:[#allocation3 + $0x2a4] ss:$16 sps:$4 sm:$0xff]  }
 0xfe4   :  { %5693 = vtanh.f32 %v7634_v3 }
 0xfee   :  { %v5694_v40 = vpop.eup %5693 }
 0xfef   :  { %v7637_v38 = vmul.f32 %v5694_v40, %v5692_v48  ;;  %v7807_v48 = vld [vmem:[#allocation3 + $0x2ac] ss:$16 sps:$4 sm:$0xff]   ;;  %v7809_v40 = vld [vmem:[#allocation3 + $0x2a0] ss:$16 sps:$4 sm:$0xff]  }
 0xff1   :  { %v2938_v20 = vpack.c.bf16 %v7637_v38, %v7637_v38 }
 0xff3   :  { %2972 = vmatmul.mubr.bf16.vlgmr.msra.gmra.mrb[76].mxu0 %v2938_v20  ;;  %3013 = vmatmul.mubr.bf16.vlgmr.msra.gmra.mrb[108].mxu1 %v2938_v20  ;;  %v7819_v20 = vld [vmem:[#allocation3 + $0x2cc] ss:$16 sps:$4 sm:$0xff]  }
 0xff4   :  { %3316 = vmatpush1.bf16.msra.mxu0 %v5335_v0  ;;  %3389 = vmatpush1.bf16.msra.mxu1 %v5338_v47  ;;  %v7811_v0 = vld [vmem:[#allocation3 + $0x2a8] ss:$16 sps:$4 sm:$0xff]   ;;  %v7817_v47 = vld [vmem:[#allocation3 + $0x2c4] ss:$16 sps:$4 sm:$0xff]  }
 0xff5   :  { %3317 = vmatprep.subr.bf16.mxu0 %v5343_v42  ;;  %3390 = vmatprep.subr.bf16.mxu1 %v5346_v35  ;;  %v7821_v42 = vld [vmem:[#allocation3 + $0x2c0] ss:$16 sps:$4 sm:$0xff]   ;;  %v7823_v35 = vld [vmem:[#allocation3 + $0x2c8] ss:$16 sps:$4 sm:$0xff]  }
 0xff6   :  { %3347 = vmatprep.mubr.bf16.mxu0 %v8467_v60  ;;  %3420 = vmatprep.mubr.bf16.mxu1 %v8467_v60 }
 0xff8   :  { %3318 = vmatpush1.bf16.msra.mxu0 %v5341_v23  ;;  %3391 = vmatpush1.bf16.msra.mxu1 %v5344_v36  ;;  %v7829_v23 = vld [vmem:[#allocation3 + $0x2e4] ss:$16 sps:$4 sm:$0xff]   ;;  %v7831_v36 = vld [vmem:[#allocation3 + $0x2ec] ss:$16 sps:$4 sm:$0xff]  }
 0xff9   :  { %3319 = vmatprep.subr.bf16.mxu0 %v5349_v52  ;;  %3392 = vmatprep.subr.bf16.mxu1 %v5352_v24  ;;  %v7833_v52 = vld [vmem:[#allocation3 + $0x2e0] ss:$16 sps:$4 sm:$0xff]   ;;  %v7835_v24 = vld [vmem:[#allocation3 + $0x2e8] ss:$16 sps:$4 sm:$0xff]  }
 0xffc   :  { %3320 = vmatpush1.bf16.msra.mxu0 %v5347_v1  ;;  %3393 = vmatpush1.bf16.msra.mxu1 %v5350_v54  ;;  %v8530_v1 = vld [vmem:[#allocation44_spill] sm:$0xff] }
 0xffd   :  { %3321 = vmatprep.subr.bf16.mxu0 %v5355_v63  ;;  %3394 = vmatprep.subr.bf16.mxu1 %v5358_v7  ;;  %v1913_v54 = vadd.f32 %v8530_v1, %v7249_v32  ;;  %v8531_v63 = vld [vmem:[#allocation45_spill] sm:$0xff] }
 0xffe   :  { %v1986_v7 = vadd.f32 %v8531_v63, %v7252_v22 }
0x1000   :  { %3322 = vmatpush1.bf16.msra.mxu0 %v5353_v59  ;;  %3395 = vmatpush1.bf16.msra.mxu1 %v5356_v30  ;;  %v8532_v59 = vld [vmem:[#allocation46_spill] sm:$0xff] }
0x1001   :  { %3323 = vmatprep.subr.bf16.mxu0 %v5361_v37  ;;  %3396 = vmatprep.subr.bf16.mxu1 %v5364_v13  ;;  %v1915_v30 = vadd.f32 %v8532_v59, %v7259_v8  ;;  %v8533_v37 = vld [vmem:[#allocation47_spill] sm:$0xff] }
0x1002   :  { %v1988_v13 = vadd.f32 %v8533_v37, %v7262_v17 }
0x1004   :  { %3324 = vmatpush1.bf16.msra.mxu0 %v5359_v28  ;;  %3397 = vmatpush1.bf16.msra.mxu1 %v5362_v45 }
0x1005   :  { %3325 = vmatprep.subr.bf16.mxu0 %v5367_v50  ;;  %3398 = vmatprep.subr.bf16.mxu1 %v5370_v56 }
0x1008   :  { %3326 = vmatpush1.bf16.msra.mxu0 %v5365_v33  ;;  %3399 = vmatpush1.bf16.msra.mxu1 %v5368_v58 }
0x1009   :  { %3327 = vmatprep.subr.bf16.mxu0 %v5373_v46  ;;  %3400 = vmatprep.subr.bf16.mxu1 %v5376_v18 }
0x100c   :  { %3328 = vmatpush1.bf16.msra.mxu0 %v5371_v51  ;;  %3401 = vmatpush1.bf16.msra.mxu1 %v5374_v25 }
0x100d   :  { %3329 = vmatprep.subr.bf16.mxu0 %v5379_v62  ;;  %3402 = vmatprep.subr.bf16.mxu1 %v5382_v57 }
0x1010   :  { %3330 = vmatpush1.bf16.msra.mxu0 %v5377_v39  ;;  %3403 = vmatpush1.bf16.msra.mxu1 %v5380_v27 }
0x1011   :  { %3626 = vmatprep.subr.bf16.mxu0 %v7745_v11  ;;  %3667 = vmatprep.subr.bf16.mxu1 %v7747_v14 }
0x1013   :  { %3348 = vmatmul.mubr.bf16.vlgmr.msra.gmra.mrb[80].mxu0 %v3128_v44  ;;  %3421 = vmatmul.mubr.bf16.vlgmr.msra.gmra.mrb[112].mxu1 %v3128_v44 }
0x1014   :  { %3357 = vmatprep.mubr.bf16.mxu0 %v8467_v60  ;;  %3430 = vmatprep.mubr.bf16.mxu1 %v8467_v60 }
0x1015   :  { %3627 = vmatpush1.bf16.msra.mxu0 %v7749_v16  ;;  %3668 = vmatpush1.bf16.msra.mxu1 %v7751_v26 }
0x1016   :  { %3628 = vmatprep.subr.bf16.mxu0 %v7757_v15  ;;  %3669 = vmatprep.subr.bf16.mxu1 %v7759_v53 }
0x1019   :  { %3629 = vmatpush1.bf16.msra.mxu0 %v7761_v61  ;;  %3670 = vmatpush1.bf16.msra.mxu1 %v7763_v43 }
0x101a   :  { %3630 = vmatprep.subr.bf16.mxu0 %v7769_v2  ;;  %3671 = vmatprep.subr.bf16.mxu1 %v7771_v4 }
0x101b   :  { %3358 = vmatmul.mubr.bf16.gmra.mrb[84].mxu0 %v3129_v55  ;;  %3431 = vmatmul.mubr.bf16.gmra.mrb[116].mxu1 %v3129_v55 }
0x101c   :  { %3367 = vmatprep.mubr.bf16.mxu0 %v8467_v60  ;;  %3440 = vmatprep.mubr.bf16.mxu1 %v8467_v60 }
0x101d   :  { %3631 = vmatpush1.bf16.msra.mxu0 %v7773_v5  ;;  %3672 = vmatpush1.bf16.msra.mxu1 %v7775_v6 }
0x101e   :  { %3632 = vmatprep.subr.bf16.mxu0 %v7781_v9  ;;  %3673 = vmatprep.subr.bf16.mxu1 %v7783_v10 }
0x1021   :  { %3633 = vmatpush1.bf16.msra.mxu0 %v7785_v12  ;;  %3674 = vmatpush1.bf16.msra.mxu1 %v7787_v49 }
0x1022   :  { %3634 = vmatprep.subr.bf16.mxu0 %v7793_v41  ;;  %3675 = vmatprep.subr.bf16.mxu1 %v7795_v21 }
0x1023   :  { %3368 = vmatmul.mubr.bf16.gmra.mrb[88].mxu0 %v3130_v31  ;;  %3441 = vmatmul.mubr.bf16.gmra.mrb[120].mxu1 %v3130_v31 }
0x1024   :  { %3377 = vmatprep.mubr.bf16.mxu0 %v8467_v60  ;;  %3450 = vmatprep.mubr.bf16.mxu1 %v8467_v60 }
0x1025   :  { %3635 = vmatpush1.bf16.msra.mxu0 %v7797_v29  ;;  %3676 = vmatpush1.bf16.msra.mxu1 %v7799_v34 }
0x1026   :  { %3636 = vmatprep.subr.bf16.mxu0 %v7805_v19  ;;  %3677 = vmatprep.subr.bf16.mxu1 %v7807_v48 }
0x1029   :  { %3637 = vmatpush1.bf16.msra.mxu0 %v7809_v40  ;;  %3678 = vmatpush1.bf16.msra.mxu1 %v7811_v0 }
0x102a   :  { %3638 = vmatprep.subr.bf16.mxu0 %v7817_v47  ;;  %3679 = vmatprep.subr.bf16.mxu1 %v7819_v20 }
0x102d   :  { %3639 = vmatpush1.bf16.msra.mxu0 %v7821_v42  ;;  %3680 = vmatpush1.bf16.msra.mxu1 %v7823_v35 }
0x102e   :  { %3640 = vmatprep.subr.bf16.mxu0 %v7829_v23  ;;  %3681 = vmatprep.subr.bf16.mxu1 %v7831_v36 }
0x1031   :  { %3641 = vmatpush1.bf16.msra.mxu0 %v7833_v52  ;;  %3682 = vmatpush1.bf16.msra.mxu1 %v7835_v24 }
0x1032   :  { %3738 = vmatprep.subr.bf16.mxu0 %v7745_v11  ;;  %3779 = vmatprep.subr.bf16.mxu1 %v7747_v14 }
0x10c6   :  { %v2973_v28 = vpop.f32.mrb[76].mxu0  ;;  %v3014_v45 = vpop.f32.mrb[108].mxu1 }
0x10c7   :  { %v3021_v50 = vadd.f32 %v2973_v28, %v1913_v54  ;;  %v3023_v56 = vadd.f32 %v3014_v45, %v1986_v7  ;;  %v2975_v33 = vpop.f32.mrb[77].mxu0  ;;  %v3016_v58 = vpop.f32.mrb[109].mxu1 }
0x10c8   :  { %v3022_v46 = vadd.f32 %v2975_v33, %v1915_v30  ;;  %v3024_v18 = vadd.f32 %v3016_v58, %v1988_v13  ;;  %v2977_v51 = vpop.f32.mrb[78].mxu0  ;;  %v3018_v25 = vpop.f32.mrb[110].mxu1 }
0x10c9   :  { %v4989_v32 = vmul.f32 -1.442695, %v3021_v50  ;;  %v2978_v62 = vpop.f32.mrb[79].mxu0  ;;  %v3019_v57 = vpop.f32.mrb[111].mxu1 }
0x10ca   :  { %v4990_v22 = vmul.f32 -1.442695, %v3022_v46  ;;  %v4991_v8 = vmul.f32 -1.442695, %v3024_v18 }
0x10cb   :  { %5695 = vpow2.f32 %v4989_v32 }
0x10cc   :  { %5697 = vpow2.f32 %v4990_v22 }
0x10cd   :  { %5699 = vpow2.f32 %v4991_v8 }
0x10ce   :  { %5701 = vtanh.f32 %v3023_v56 }
0x10d5   :  { %v5696_v39 = vpop.eup %5695 }
0x10d6   :  { %v5698_v27 = vpop.eup %5697  ;;  %v3028_v17 = vadd.f32 1.0, %v5696_v39 }
0x10d7   :  { %v3034_v44 = vadd.f32 1.0, %v5698_v27  ;;  %v5700_v55 = vpop.eup %5699 }
0x10d8   :  { %5703 = vrcp.f32 %v3028_v17  ;;  %v5702_v31 = vpop.eup %5701  ;;  %v3041_v7 = vadd.f32 1.0, %v5700_v55 }
0x10d9   :  { %5705 = vrcp.f32 %v3034_v44 }
0x10da   :  { %5707 = vrcp.f32 %v3041_v7 }
0x10e2   :  { %v5704_v1 = vpop.eup %5703 }
0x10e3   :  { %v5706_v54 = vpop.eup %5705  ;;  %v3045_v63 = vmul.f32 %v5704_v1, %v5702_v31 }
0x10e4   :  { %v3044_v59 = vmul.f32 %v5706_v54, %v7634_v3  ;;  %v5708_v62 = vpop.eup %5707 }
0x10e6   :  { %v3046_v30 = vadd.f32 %v3045_v63, %v3044_v59  ;;  %v7852_v37 = vpop.f32.mrb[80].mxu0  ;;  %v7854_v13 = vpop.f32.mrb[112].mxu1 }
0x10e7   :  { %v7856_v28 = vpop.f32.mrb[81].mxu0  ;;  %v7858_v45 = vpop.f32.mrb[113].mxu1 }
0x10e8   :  { %3053 = vst [vmem:[#allocation15 + $0x8] sm:$0xff] %v3046_v30  ;;  %v7860_v50 = vpop.f32.mrb[82].mxu0  ;;  %v7862_v56 = vpop.f32.mrb[114].mxu1  ;;  %5709 = vtanh.f32 %v3046_v30  ;;  %v3133_v30 = vld [vmem:[#allocation6 + $0x8] sm:$0xf] }
0x10e9   :  { %v7864_v33 = vpop.f32.mrb[83].mxu0  ;;  %v7866_v58 = vpop.f32.mrb[115].mxu1 }
0x10ee   :  { %v7868_v3 = vpop.f32.mrb[84].mxu0  ;;  %v7870_v46 = vpop.f32.mrb[116].mxu1 }
0x10ef   :  { %8534 = vst [vmem:[#allocation23_spill] sm:$0xff] %v7870_v46  ;;  %v7872_v18 = vpop.f32.mrb[85].mxu0  ;;  %v7874_v51 = vpop.f32.mrb[117].mxu1 }
0x10f0   :  { %8535 = vst [vmem:[#allocation33_spill] sm:$0xff] %v7872_v18  ;;  %8536 = vst [vmem:[#allocation24_spill] sm:$0xff] %v7874_v51  ;;  %v7876_v25 = vpop.f32.mrb[86].mxu0  ;;  %v7878_v32 = vpop.f32.mrb[118].mxu1 }
0x10f1   :  { %8537 = vst [vmem:[#allocation34_spill] sm:$0xff] %v7876_v25  ;;  %8538 = vst [vmem:[#allocation25_spill] sm:$0xff] %v7878_v32  ;;  %v7880_v57 = vpop.f32.mrb[87].mxu0  ;;  %v7882_v22 = vpop.f32.mrb[119].mxu1 }
0x10f2   :  { %8539 = vst [vmem:[#allocation35_spill] sm:$0xff] %v7880_v57  ;;  %8540 = vst [vmem:[#allocation26_spill] sm:$0xff] %v7882_v22  ;;  %v5710_v8 = vpop.eup %5709 }
0x10f3   :  { %v3048_v39 = vmul.f32 %v5710_v8, %v5708_v62 }
0x10f5   :  { %v3131_v27 = vpack.c.bf16 %v3048_v39, %v7637_v38  ;;  %3051 = vst [vmem:[#allocation13 + $0x8] sm:$0xff] %v3048_v39  ;;  %v3462_v38 = vld [vmem:[#allocation8 + $0x10] sm:$0xff] }
0x10f6   :  { %v7885_v17 = vpop.f32.mrb[88].mxu0  ;;  %v7887_v44 = vpop.f32.mrb[120].mxu1  ;;  %v3465_v59 = vpack.c.bf16 %v3462_v38, %v3462_v38 }
0x10f7   :  { %8541 = vst [vmem:[#allocation36_spill] sm:$0xff] %v7885_v17  ;;  %8542 = vst [vmem:[#allocation27_spill] sm:$0xff] %v7887_v44  ;;  %v7889_v55 = vpop.f32.mrb[89].mxu0  ;;  %v7891_v31 = vpop.f32.mrb[121].mxu1  ;;  %3378 = vmatmul.mubr.bf16.gmra.mrb[92].mxu0 %v3131_v27  ;;  %3451 = vmatmul.mubr.bf16.gmra.mrb[124].mxu1 %v3131_v27 }
0x10f8   :  { %8543 = vst [vmem:[#allocation37_spill] sm:$0xff] %v7889_v55  ;;  %8544 = vst [vmem:[#allocation28_spill] sm:$0xff] %v7891_v31  ;;  %v7893_v1 = vpop.f32.mrb[90].mxu0  ;;  %v7895_v54 = vpop.f32.mrb[122].mxu1  ;;  %3658 = vmatprep.mubr.bf16.mxu0 %v8467_v60  ;;  %3699 = vmatprep.mubr.bf16.mxu1 %v8467_v60 }
0x10f9   :  { %8545 = vst [vmem:[#allocation38_spill] sm:$0xff] %v7893_v1  ;;  %8546 = vst [vmem:[#allocation29_spill] sm:$0xff] %v7895_v54  ;;  %v7899_v63 = vpop.f32.mrb[91].mxu0  ;;  %v7901_v7 = vpop.f32.mrb[123].mxu1  ;;  %v8556_v54 = vld [vmem:[#allocation31_spill] sm:$0xff] }
0x10fa   :  { %8547 = vst [vmem:[#allocation39_spill] sm:$0xff] %v7899_v63  ;;  %8548 = vst [vmem:[#allocation30_spill] sm:$0xff] %v7901_v7  ;;  %v8555_v7 = vld [vmem:[#allocation21_spill] sm:$0xff]  ;;  %v7953_v1 = vrot.slane %v3133_v30, %v8556_v54 }
0x10fb   :  { %v7950_v63 = vrot.slane %v3133_v30, %v8555_v7 }
0x10fc   :  { %v3423_v7 = vadd.f32 %v7854_v13, %v7953_v1 }
0x10ff   :  { %3659 = vmatmul.mubr.bf16.vlgmr.msra.gmra.mrb[96].mxu0 %v3465_v59  ;;  %3700 = vmatmul.mubr.bf16.vlgmr.msra.gmra.mrb[128].mxu1 %v3465_v59 }
0x1100   :  { %3739 = vmatpush1.bf16.msra.mxu0 %v7749_v16  ;;  %3780 = vmatpush1.bf16.msra.mxu1 %v7751_v26 }
0x1101   :  { %3740 = vmatprep.subr.bf16.mxu0 %v7757_v15  ;;  %3781 = vmatprep.subr.bf16.mxu1 %v7759_v53 }
0x1102   :  { %3770 = vmatprep.mubr.bf16.mxu0 %v8467_v60  ;;  %3811 = vmatprep.mubr.bf16.mxu1 %v8467_v60 }
0x1104   :  { %3741 = vmatpush1.bf16.msra.mxu0 %v7761_v61  ;;  %3782 = vmatpush1.bf16.msra.mxu1 %v7763_v43 }
0x1105   :  { %3742 = vmatprep.subr.bf16.mxu0 %v7769_v2  ;;  %3783 = vmatprep.subr.bf16.mxu1 %v7771_v4 }
0x1108   :  { %3743 = vmatpush1.bf16.msra.mxu0 %v7773_v5  ;;  %3784 = vmatpush1.bf16.msra.mxu1 %v7775_v6 }
0x1109   :  { %3744 = vmatprep.subr.bf16.mxu0 %v7781_v9  ;;  %3785 = vmatprep.subr.bf16.mxu1 %v7783_v10 }
0x110c   :  { %3745 = vmatpush1.bf16.msra.mxu0 %v7785_v12  ;;  %3786 = vmatpush1.bf16.msra.mxu1 %v7787_v49 }
0x110d   :  { %3746 = vmatprep.subr.bf16.mxu0 %v7793_v41  ;;  %3787 = vmatprep.subr.bf16.mxu1 %v7795_v21 }
0x1110   :  { %3747 = vmatpush1.bf16.msra.mxu0 %v7797_v29  ;;  %3788 = vmatpush1.bf16.msra.mxu1 %v7799_v34 }
0x1111   :  { %3748 = vmatprep.subr.bf16.mxu0 %v7805_v19  ;;  %3789 = vmatprep.subr.bf16.mxu1 %v7807_v48 }
0x1114   :  { %3749 = vmatpush1.bf16.msra.mxu0 %v7809_v40  ;;  %3790 = vmatpush1.bf16.msra.mxu1 %v7811_v0 }
0x1115   :  { %3750 = vmatprep.subr.bf16.mxu0 %v7817_v47  ;;  %3791 = vmatprep.subr.bf16.mxu1 %v7819_v20 }
0x1118   :  { %3751 = vmatpush1.bf16.msra.mxu0 %v7821_v42  ;;  %3792 = vmatpush1.bf16.msra.mxu1 %v7823_v35 }
0x1119   :  { %3752 = vmatprep.subr.bf16.mxu0 %v7829_v23  ;;  %3793 = vmatprep.subr.bf16.mxu1 %v7831_v36 }
0x111c   :  { %3753 = vmatpush1.bf16.msra.mxu0 %v7833_v52  ;;  %3794 = vmatpush1.bf16.msra.mxu1 %v7835_v24 }
0x111d   :  { %3850 = vmatprep.subr.bf16.mxu0 %v7745_v11  ;;  %3891 = vmatprep.subr.bf16.mxu1 %v7747_v14 }
0x11ca   :  { %v7937_v62 = vpop.f32.mrb[92].mxu0  ;;  %v7939_v8 = vpop.f32.mrb[124].mxu1 }
0x11cb   :  { %8549 = vst [vmem:[#allocation40_spill] sm:$0xff] %v7937_v62  ;;  %8550 = vst [vmem:[#allocation41_spill] sm:$0xff] %v7939_v8  ;;  %v7941_v39 = vpop.f32.mrb[93].mxu0  ;;  %v7943_v27 = vpop.f32.mrb[125].mxu1  ;;  %v8559_v62 = vld [vmem:[#allocation22_spill] sm:$0xff] }
0x11cc   :  { %8551 = vst [vmem:[#allocation42_spill] sm:$0xff] %v7941_v39  ;;  %8552 = vst [vmem:[#allocation43_spill] sm:$0xff] %v7943_v27  ;;  %v7945_v38 = vpop.f32.mrb[94].mxu0  ;;  %v7947_v59 = vpop.f32.mrb[126].mxu1  ;;  %v7960_v8 = vrot.slane %v3133_v30, %v8559_v62  ;;  %v8560_v39 = vld [vmem:[#allocation32_spill] sm:$0xff] }
0x11cd   :  { %8553 = vst [vmem:[#allocation44_spill] sm:$0xff] %v7945_v38  ;;  %8554 = vst [vmem:[#allocation45_spill] sm:$0xff] %v7947_v59  ;;  %v7955_v31 = vpop.f32.mrb[95].mxu0  ;;  %v7957_v55 = vpop.f32.mrb[127].mxu1  ;;  %v7963_v44 = vrot.slane %v3133_v30, %v8560_v39  ;;  %v3350_v38 = vadd.f32 %v7852_v37, %v7950_v63 }
0x11ce   :  { %8557 = vst [vmem:[#allocation46_spill] sm:$0xff] %v7955_v31  ;;  %8558 = vst [vmem:[#allocation47_spill] sm:$0xff] %v7957_v55  ;;  %v3352_v54 = vadd.f32 %v7856_v28, %v7960_v8 }
0x11cf   :  { %v3425_v31 = vadd.f32 %v7858_v45, %v7963_v44 }
0x11d2   :  { %v3660_v59 = vpop.f32.mrb[96].mxu0  ;;  %v3701_v55 = vpop.f32.mrb[128].mxu1 }
0x11d3   :  { %v3708_v27 = vadd.f32 %v3660_v59, %v3350_v38  ;;  %v3710_v62 = vadd.f32 %v3701_v55, %v3423_v7  ;;  %v3662_v17 = vpop.f32.mrb[97].mxu0  ;;  %v3703_v22 = vpop.f32.mrb[129].mxu1 }
0x11d4   :  { %v3709_v30 = vadd.f32 %v3662_v17, %v3352_v54  ;;  %v3711_v39 = vadd.f32 %v3703_v22, %v3425_v31  ;;  %v3664_v57 = vpop.f32.mrb[98].mxu0  ;;  %v3705_v32 = vpop.f32.mrb[130].mxu1  ;;  %v3464_v22 = vld [vmem:[#allocation9 + $0x10] sm:$0xff]  ;;  %v3427_v54 = vadd.f32 %v7862_v56, %v7953_v1 }
0x11d5   :  { %v5088_v37 = vmul.f32 -1.442695, %v3708_v27  ;;  %v3665_v25 = vpop.f32.mrb[99].mxu0  ;;  %v3706_v51 = vpop.f32.mrb[131].mxu1 }
0x11d6   :  { %v5089_v13 = vmul.f32 -1.442695, %v3709_v30  ;;  %v5090_v28 = vmul.f32 -1.442695, %v3711_v39  ;;  %v3356_v30 = vadd.f32 %v7864_v33, %v7960_v8  ;;  %v3429_v39 = vadd.f32 %v7866_v58, %v7963_v44 }
0x11d7   :  { %5711 = vpow2.f32 %v5088_v37 }
0x11d8   :  { %5713 = vpow2.f32 %v5089_v13 }
0x11d9   :  { %5715 = vpow2.f32 %v5090_v28 }
0x11da   :  { %5717 = vtanh.f32 %v3710_v62  ;;  %v3354_v62 = vadd.f32 %v7860_v50, %v7950_v63 }
0x11e1   :  { %v5712_v18 = vpop.eup %5711 }
0x11e2   :  { %v5714_v46 = vpop.eup %5713  ;;  %v3715_v45 = vadd.f32 1.0, %v5712_v18 }
0x11e3   :  { %v3721_v38 = vadd.f32 1.0, %v5714_v46  ;;  %v5716_v55 = vpop.eup %5715 }
0x11e4   :  { %5719 = vrcp.f32 %v3715_v45  ;;  %v5718_v17 = vpop.eup %5717  ;;  %v3728_v25 = vadd.f32 1.0, %v5716_v55 }
0x11e5   :  { %5721 = vrcp.f32 %v3721_v38 }
0x11e6   :  { %5723 = vrcp.f32 %v3728_v25 }
0x11ee   :  { %v5720_v57 = vpop.eup %5719 }
0x11ef   :  { %v5722_v32 = vpop.eup %5721  ;;  %v3732_v31 = vmul.f32 %v5720_v57, %v5718_v17 }
0x11f0   :  { %v3731_v51 = vmul.f32 %v5722_v32, %v3464_v22  ;;  %v5724_v27 = vpop.eup %5723 }
0x11f2   :  { %v7973_v7 = vadd.f32 %v3732_v31, %v3731_v51 }
0x11f4   :  { %5725 = vtanh.f32 %v7973_v7 }
0x11fe   :  { %v5726_v18 = vpop.eup %5725 }
0x11ff   :  { %v7976_v59 = vmul.f32 %v5726_v18, %v5724_v27 }
0x1201   :  { %v3737_v46 = vpack.c.bf16 %v7976_v59, %v7976_v59 }
0x1203   :  { %3771 = vmatmul.mubr.bf16.vlgmr.msra.gmra.mrb[100].mxu0 %v3737_v46  ;;  %3812 = vmatmul.mubr.bf16.vlgmr.msra.gmra.mrb[132].mxu1 %v3737_v46 }
0x1204   :  { %3851 = vmatpush1.bf16.msra.mxu0 %v7749_v16  ;;  %3892 = vmatpush1.bf16.msra.mxu1 %v7751_v26 }
0x1205   :  { %3852 = vmatprep.subr.bf16.mxu0 %v7757_v15  ;;  %3893 = vmatprep.subr.bf16.mxu1 %v7759_v53 }
0x1206   :  { %3882 = vmatprep.mubr.bf16.mxu0 %v8467_v60  ;;  %3923 = vmatprep.mubr.bf16.mxu1 %v8467_v60 }
0x1208   :  { %3853 = vmatpush1.bf16.msra.mxu0 %v7761_v61  ;;  %3894 = vmatpush1.bf16.msra.mxu1 %v7763_v43 }
0x1209   :  { %3854 = vmatprep.subr.bf16.mxu0 %v7769_v2  ;;  %3895 = vmatprep.subr.bf16.mxu1 %v7771_v4 }
0x120c   :  { %3855 = vmatpush1.bf16.msra.mxu0 %v7773_v5  ;;  %3896 = vmatpush1.bf16.msra.mxu1 %v7775_v6 }
0x120d   :  { %3856 = vmatprep.subr.bf16.mxu0 %v7781_v9  ;;  %3897 = vmatprep.subr.bf16.mxu1 %v7783_v10 }
0x1210   :  { %3857 = vmatpush1.bf16.msra.mxu0 %v7785_v12  ;;  %3898 = vmatpush1.bf16.msra.mxu1 %v7787_v49 }
0x1211   :  { %3858 = vmatprep.subr.bf16.mxu0 %v7793_v41  ;;  %3899 = vmatprep.subr.bf16.mxu1 %v7795_v21 }
0x1214   :  { %3859 = vmatpush1.bf16.msra.mxu0 %v7797_v29  ;;  %3900 = vmatpush1.bf16.msra.mxu1 %v7799_v34 }
0x1215   :  { %3860 = vmatprep.subr.bf16.mxu0 %v7805_v19  ;;  %3901 = vmatprep.subr.bf16.mxu1 %v7807_v48 }
0x1218   :  { %3861 = vmatpush1.bf16.msra.mxu0 %v7809_v40  ;;  %3902 = vmatpush1.bf16.msra.mxu1 %v7811_v0 }
0x1219   :  { %3862 = vmatprep.subr.bf16.mxu0 %v7817_v47  ;;  %3903 = vmatprep.subr.bf16.mxu1 %v7819_v20 }
0x121c   :  { %3863 = vmatpush1.bf16.msra.mxu0 %v7821_v42  ;;  %3904 = vmatpush1.bf16.msra.mxu1 %v7823_v35 }
0x121d   :  { %3864 = vmatprep.subr.bf16.mxu0 %v7829_v23  ;;  %3905 = vmatprep.subr.bf16.mxu1 %v7831_v36 }
0x1220   :  { %3865 = vmatpush1.bf16.msra.mxu0 %v7833_v52  ;;  %3906 = vmatpush1.bf16.msra.mxu1 %v7835_v24 }
0x1221   :  { %3962 = vmatprep.subr.bf16.mxu0 %v7745_v11  ;;  %4003 = vmatprep.subr.bf16.mxu1 %v7747_v14 }
0x12d6   :  { %v3772_v37 = vpop.f32.mrb[100].mxu0  ;;  %v3813_v13 = vpop.f32.mrb[132].mxu1 }
0x12d7   :  { %v3820_v28 = vadd.f32 %v3772_v37, %v3354_v62  ;;  %v3822_v45 = vadd.f32 %v3813_v13, %v3427_v54  ;;  %v3774_v38 = vpop.f32.mrb[101].mxu0  ;;  %v3815_v55 = vpop.f32.mrb[133].mxu1 }
0x12d8   :  { %v3821_v17 = vadd.f32 %v3774_v38, %v3356_v30  ;;  %v3823_v22 = vadd.f32 %v3815_v55, %v3429_v39  ;;  %v3776_v57 = vpop.f32.mrb[102].mxu0  ;;  %v3817_v32 = vpop.f32.mrb[134].mxu1 }
0x12d9   :  { %v5091_v50 = vmul.f32 -1.442695, %v3820_v28  ;;  %v3777_v31 = vpop.f32.mrb[103].mxu0  ;;  %v3818_v25 = vpop.f32.mrb[135].mxu1  ;;  %v8562_v32 = vld [vmem:[#allocation33_spill] sm:$0xff] }
0x12da   :  { %v5092_v56 = vmul.f32 -1.442695, %v3821_v17  ;;  %v5093_v33 = vmul.f32 -1.442695, %v3823_v22  ;;  %v8561_v22 = vld [vmem:[#allocation23_spill] sm:$0xff]  ;;  %v8563_v31 = vld [vmem:[#allocation24_spill] sm:$0xff] }
0x12db   :  { %5727 = vpow2.f32 %v5091_v50  ;;  %v3433_v57 = vadd.f32 %v8561_v22, %v7953_v1  ;;  %v3362_v50 = vadd.f32 %v8562_v32, %v7960_v8  ;;  %v3435_v25 = vadd.f32 %v8563_v31, %v7963_v44 }
0x12dc   :  { %5729 = vpow2.f32 %v5092_v56 }
0x12dd   :  { %5731 = vpow2.f32 %v5093_v33 }
0x12de   :  { %5733 = vtanh.f32 %v3822_v45 }
0x12e5   :  { %v5728_v51 = vpop.eup %5727 }
0x12e6   :  { %v5730_v27 = vpop.eup %5729  ;;  %v3827_v58 = vadd.f32 1.0, %v5728_v51 }
0x12e7   :  { %v3833_v18 = vadd.f32 1.0, %v5730_v27  ;;  %v5732_v46 = vpop.eup %5731 }
0x12e8   :  { %5735 = vrcp.f32 %v3827_v58  ;;  %v5734_v62 = vpop.eup %5733  ;;  %v3840_v37 = vadd.f32 1.0, %v5732_v46 }
0x12e9   :  { %5737 = vrcp.f32 %v3833_v18 }
0x12ea   :  { %5739 = vrcp.f32 %v3840_v37 }
0x12f2   :  { %v5736_v54 = vpop.eup %5735 }
0x12f3   :  { %v5738_v30 = vpop.eup %5737  ;;  %v3844_v39 = vmul.f32 %v5736_v54, %v5734_v62 }
0x12f4   :  { %v3843_v13 = vmul.f32 %v5738_v30, %v7973_v7  ;;  %v5740_v38 = vpop.eup %5739  ;;  %v3360_v7 = vadd.f32 %v7868_v3, %v7950_v63 }
0x12f6   :  { %v8023_v28 = vadd.f32 %v3844_v39, %v3843_v13 }
0x12f8   :  { %5741 = vtanh.f32 %v8023_v28 }
0x1302   :  { %v5742_v55 = vpop.eup %5741 }
0x1303   :  { %v8026_v17 = vmul.f32 %v5742_v55, %v5740_v38 }
0x1305   :  { %v3849_v45 = vpack.c.bf16 %v8026_v17, %v8026_v17 }
0x1307   :  { %3883 = vmatmul.mubr.bf16.vlgmr.msra.gmra.mrb[104].mxu0 %v3849_v45  ;;  %3924 = vmatmul.mubr.bf16.vlgmr.msra.gmra.mrb[136].mxu1 %v3849_v45 }
0x1308   :  { %3963 = vmatpush1.bf16.msra.mxu0 %v7749_v16  ;;  %4004 = vmatpush1.bf16.msra.mxu1 %v7751_v26 }
0x1309   :  { %3964 = vmatprep.subr.bf16.mxu0 %v7757_v15  ;;  %4005 = vmatprep.subr.bf16.mxu1 %v7759_v53 }
0x130a   :  { %3994 = vmatprep.mubr.bf16.mxu0 %v8467_v60  ;;  %4035 = vmatprep.mubr.bf16.mxu1 %v8467_v60 }
0x130c   :  { %3965 = vmatpush1.bf16.msra.mxu0 %v7761_v61  ;;  %4006 = vmatpush1.bf16.msra.mxu1 %v7763_v43 }
0x130d   :  { %3966 = vmatprep.subr.bf16.mxu0 %v7769_v2  ;;  %4007 = vmatprep.subr.bf16.mxu1 %v7771_v4 }
0x1310   :  { %3967 = vmatpush1.bf16.msra.mxu0 %v7773_v5  ;;  %4008 = vmatpush1.bf16.msra.mxu1 %v7775_v6 }
0x1311   :  { %3968 = vmatprep.subr.bf16.mxu0 %v7781_v9  ;;  %4009 = vmatprep.subr.bf16.mxu1 %v7783_v10 }
0x1314   :  { %3969 = vmatpush1.bf16.msra.mxu0 %v7785_v12  ;;  %4010 = vmatpush1.bf16.msra.mxu1 %v7787_v49 }
0x1315   :  { %3970 = vmatprep.subr.bf16.mxu0 %v7793_v41  ;;  %4011 = vmatprep.subr.bf16.mxu1 %v7795_v21 }
0x1318   :  { %3971 = vmatpush1.bf16.msra.mxu0 %v7797_v29  ;;  %4012 = vmatpush1.bf16.msra.mxu1 %v7799_v34 }
0x1319   :  { %3972 = vmatprep.subr.bf16.mxu0 %v7805_v19  ;;  %4013 = vmatprep.subr.bf16.mxu1 %v7807_v48 }
0x131c   :  { %3973 = vmatpush1.bf16.msra.mxu0 %v7809_v40  ;;  %4014 = vmatpush1.bf16.msra.mxu1 %v7811_v0 }
0x131d   :  { %3974 = vmatprep.subr.bf16.mxu0 %v7817_v47  ;;  %4015 = vmatprep.subr.bf16.mxu1 %v7819_v20 }
0x1320   :  { %3975 = vmatpush1.bf16.msra.mxu0 %v7821_v42  ;;  %4016 = vmatpush1.bf16.msra.mxu1 %v7823_v35 }
0x1321   :  { %3976 = vmatprep.subr.bf16.mxu0 %v7829_v23  ;;  %4017 = vmatprep.subr.bf16.mxu1 %v7831_v36 }
0x1324   :  { %3977 = vmatpush1.bf16.msra.mxu0 %v7833_v52  ;;  %4018 = vmatpush1.bf16.msra.mxu1 %v7835_v24 }
0x1325   :  { %4074 = vmatprep.subr.bf16.mxu0 %v7745_v11  ;;  %4115 = vmatprep.subr.bf16.mxu1 %v7747_v14 }
0x13da   :  { %v3884_v56 = vpop.f32.mrb[104].mxu0  ;;  %v3925_v33 = vpop.f32.mrb[136].mxu1 }
0x13db   :  { %v3932_v51 = vadd.f32 %v3884_v56, %v3360_v7  ;;  %v3934_v27 = vadd.f32 %v3925_v33, %v3433_v57  ;;  %v3886_v58 = vpop.f32.mrb[105].mxu0  ;;  %v3927_v18 = vpop.f32.mrb[137].mxu1 }
0x13dc   :  { %v3933_v46 = vadd.f32 %v3886_v58, %v3362_v50  ;;  %v3935_v62 = vadd.f32 %v3927_v18, %v3435_v25  ;;  %v3888_v54 = vpop.f32.mrb[106].mxu0  ;;  %v3929_v30 = vpop.f32.mrb[138].mxu1 }
0x13dd   :  { %v5094_v3 = vmul.f32 -1.442695, %v3932_v51  ;;  %v3889_v39 = vpop.f32.mrb[107].mxu0  ;;  %v3930_v37 = vpop.f32.mrb[139].mxu1  ;;  %v8565_v54 = vld [vmem:[#allocation25_spill] sm:$0xff] }
0x13de   :  { %v5095_v13 = vmul.f32 -1.442695, %v3933_v46  ;;  %v5096_v38 = vmul.f32 -1.442695, %v3935_v62  ;;  %v3437_v30 = vadd.f32 %v8565_v54, %v7953_v1  ;;  %v8567_v37 = vld [vmem:[#allocation26_spill] sm:$0xff] }
0x13df   :  { %5743 = vpow2.f32 %v5094_v3  ;;  %v8566_v3 = vld [vmem:[#allocation35_spill] sm:$0xff] }
0x13e0   :  { %5745 = vpow2.f32 %v5095_v13  ;;  %v3366_v39 = vadd.f32 %v8566_v3, %v7960_v8  ;;  %v3439_v13 = vadd.f32 %v8567_v37, %v7963_v44 }
0x13e1   :  { %5747 = vpow2.f32 %v5096_v38 }
0x13e2   :  { %5749 = vtanh.f32 %v3934_v27 }
0x13e9   :  { %v5744_v55 = vpop.eup %5743 }
0x13ea   :  { %v5746_v45 = vpop.eup %5745  ;;  %v3939_v22 = vadd.f32 1.0, %v5744_v55 }
0x13eb   :  { %v3945_v7 = vadd.f32 1.0, %v5746_v45  ;;  %v5748_v57 = vpop.eup %5747 }
0x13ec   :  { %5751 = vrcp.f32 %v3939_v22  ;;  %v5750_v32 = vpop.eup %5749  ;;  %v3952_v56 = vadd.f32 1.0, %v5748_v57 }
0x13ed   :  { %5753 = vrcp.f32 %v3945_v7 }
0x13ee   :  { %5755 = vrcp.f32 %v3952_v56 }
0x13f6   :  { %v5752_v50 = vpop.eup %5751 }
0x13f7   :  { %v5754_v31 = vpop.eup %5753  ;;  %v3956_v25 = vmul.f32 %v5752_v50, %v5750_v32 }
0x13f8   :  { %v3955_v33 = vmul.f32 %v5754_v31, %v8023_v28  ;;  %v5756_v58 = vpop.eup %5755  ;;  %v8564_v28 = vld [vmem:[#allocation34_spill] sm:$0xff] }
0x13f9   :  { %v3364_v62 = vadd.f32 %v8564_v28, %v7950_v63 }
0x13fa   :  { %v8073_v51 = vadd.f32 %v3956_v25, %v3955_v33 }
0x13fc   :  { %5757 = vtanh.f32 %v8073_v51 }
0x1406   :  { %v5758_v18 = vpop.eup %5757 }
0x1407   :  { %v8076_v46 = vmul.f32 %v5758_v18, %v5756_v58 }
0x1409   :  { %v3961_v27 = vpack.c.bf16 %v8076_v46, %v8076_v46 }
0x140b   :  { %3995 = vmatmul.mubr.bf16.vlgmr.msra.gmra.mrb[108].mxu0 %v3961_v27  ;;  %4036 = vmatmul.mubr.bf16.vlgmr.msra.gmra.mrb[140].mxu1 %v3961_v27 }
0x140c   :  { %4075 = vmatpush1.bf16.msra.mxu0 %v7749_v16  ;;  %4116 = vmatpush1.bf16.msra.mxu1 %v7751_v26 }
0x140d   :  { %4076 = vmatprep.subr.bf16.mxu0 %v7757_v15  ;;  %4117 = vmatprep.subr.bf16.mxu1 %v7759_v53 }
0x140e   :  { %4106 = vmatprep.mubr.bf16.mxu0 %v8467_v60  ;;  %4147 = vmatprep.mubr.bf16.mxu1 %v8467_v60 }
0x1410   :  { %4077 = vmatpush1.bf16.msra.mxu0 %v7761_v61  ;;  %4118 = vmatpush1.bf16.msra.mxu1 %v7763_v43 }
0x1411   :  { %4078 = vmatprep.subr.bf16.mxu0 %v7769_v2  ;;  %4119 = vmatprep.subr.bf16.mxu1 %v7771_v4 }
0x1414   :  { %4079 = vmatpush1.bf16.msra.mxu0 %v7773_v5  ;;  %4120 = vmatpush1.bf16.msra.mxu1 %v7775_v6 }
0x1415   :  { %4080 = vmatprep.subr.bf16.mxu0 %v7781_v9  ;;  %4121 = vmatprep.subr.bf16.mxu1 %v7783_v10 }
0x1418   :  { %4081 = vmatpush1.bf16.msra.mxu0 %v7785_v12  ;;  %4122 = vmatpush1.bf16.msra.mxu1 %v7787_v49 }
0x1419   :  { %4082 = vmatprep.subr.bf16.mxu0 %v7793_v41  ;;  %4123 = vmatprep.subr.bf16.mxu1 %v7795_v21 }
0x141c   :  { %4083 = vmatpush1.bf16.msra.mxu0 %v7797_v29  ;;  %4124 = vmatpush1.bf16.msra.mxu1 %v7799_v34 }
0x141d   :  { %4084 = vmatprep.subr.bf16.mxu0 %v7805_v19  ;;  %4125 = vmatprep.subr.bf16.mxu1 %v7807_v48 }
0x1420   :  { %4085 = vmatpush1.bf16.msra.mxu0 %v7809_v40  ;;  %4126 = vmatpush1.bf16.msra.mxu1 %v7811_v0 }
0x1421   :  { %4086 = vmatprep.subr.bf16.mxu0 %v7817_v47  ;;  %4127 = vmatprep.subr.bf16.mxu1 %v7819_v20 }
0x1424   :  { %4087 = vmatpush1.bf16.msra.mxu0 %v7821_v42  ;;  %4128 = vmatpush1.bf16.msra.mxu1 %v7823_v35 }
0x1425   :  { %4088 = vmatprep.subr.bf16.mxu0 %v7829_v23  ;;  %4129 = vmatprep.subr.bf16.mxu1 %v7831_v36 }
0x1428   :  { %4089 = vmatpush1.bf16.msra.mxu0 %v7833_v52  ;;  %4130 = vmatpush1.bf16.msra.mxu1 %v7835_v24 }
0x1429   :  { %4186 = vmatprep.subr.bf16.mxu0 %v7745_v11  ;;  %4227 = vmatprep.subr.bf16.mxu1 %v7747_v14 }
0x14de   :  { %v3996_v38 = vpop.f32.mrb[108].mxu0  ;;  %v4037_v55 = vpop.f32.mrb[140].mxu1 }
0x14df   :  { %v4044_v45 = vadd.f32 %v3996_v38, %v3364_v62  ;;  %v4046_v22 = vadd.f32 %v4037_v55, %v3437_v30  ;;  %v3998_v7 = vpop.f32.mrb[109].mxu0  ;;  %v4039_v57 = vpop.f32.mrb[141].mxu1 }
0x14e0   :  { %v4045_v32 = vadd.f32 %v3998_v7, %v3366_v39  ;;  %v4047_v50 = vadd.f32 %v4039_v57, %v3439_v13  ;;  %v4000_v31 = vpop.f32.mrb[110].mxu0  ;;  %v4041_v25 = vpop.f32.mrb[142].mxu1 }
0x14e1   :  { %v5097_v56 = vmul.f32 -1.442695, %v4044_v45  ;;  %v4001_v33 = vpop.f32.mrb[111].mxu0  ;;  %v4042_v58 = vpop.f32.mrb[143].mxu1 }
0x14e2   :  { %v5098_v18 = vmul.f32 -1.442695, %v4045_v32  ;;  %v5099_v27 = vmul.f32 -1.442695, %v4047_v50 }
0x14e3   :  { %5759 = vpow2.f32 %v5097_v56 }
0x14e4   :  { %5761 = vpow2.f32 %v5098_v18 }
0x14e5   :  { %5763 = vpow2.f32 %v5099_v27  ;;  %v8180_v27 = vld [vmem:[#allocation3 + $0x200] ss:$16 sps:$4 sm:$0xff]  }
0x14e6   :  { %5765 = vtanh.f32 %v4046_v22 }
0x14ed   :  { %v5760_v28 = vpop.eup %5759 }
0x14ee   :  { %v5762_v54 = vpop.eup %5761  ;;  %v4051_v3 = vadd.f32 1.0, %v5760_v28  ;;  %v8183_v28 = vld [vmem:[#allocation3 + $0x208] ss:$16 sps:$4 sm:$0xff]  }
0x14ef   :  { %v4057_v62 = vadd.f32 1.0, %v5762_v54  ;;  %v5764_v30 = vpop.eup %5763  ;;  %v8186_v54 = vld [vmem:[#allocation3 + $0x224] ss:$16 sps:$4 sm:$0xff]  }
0x14f0   :  { %5767 = vrcp.f32 %v4051_v3  ;;  %v5766_v39 = vpop.eup %5765  ;;  %v4064_v55 = vadd.f32 1.0, %v5764_v30  ;;  %v8189_v3 = vld [vmem:[#allocation3 + $0x22c] ss:$16 sps:$4 sm:$0xff]   ;;  %v8197_v30 = vld [vmem:[#allocation3 + $0x228] ss:$16 sps:$4 sm:$0xff]  }
0x14f1   :  { %5769 = vrcp.f32 %v4057_v62  ;;  %v8194_v62 = vld [vmem:[#allocation3 + $0x220] ss:$16 sps:$4 sm:$0xff]  }
0x14f2   :  { %5771 = vrcp.f32 %v4064_v55  ;;  %v8212_v55 = vld [vmem:[#allocation3 + $0x264] ss:$16 sps:$4 sm:$0xff]  }
0x14fa   :  { %v5768_v37 = vpop.eup %5767 }
0x14fb   :  { %v5770_v13 = vpop.eup %5769  ;;  %v4068_v38 = vmul.f32 %v5768_v37, %v5766_v39  ;;  %v8200_v39 = vld [vmem:[#allocation3 + $0x244] ss:$16 sps:$4 sm:$0xff]   ;;  %v8203_v37 = vld [vmem:[#allocation3 + $0x24c] ss:$16 sps:$4 sm:$0xff]  }
0x14fc   :  { %v4067_v45 = vmul.f32 %v5770_v13, %v8073_v51  ;;  %v5772_v57 = vpop.eup %5771  ;;  %v8206_v13 = vld [vmem:[#allocation3 + $0x240] ss:$16 sps:$4 sm:$0xff]  }
0x14fe   :  { %v8123_v7 = vadd.f32 %v4068_v38, %v4067_v45  ;;  %v8209_v38 = vld [vmem:[#allocation3 + $0x248] ss:$16 sps:$4 sm:$0xff]   ;;  %v8215_v45 = vld [vmem:[#allocation3 + $0x26c] ss:$16 sps:$4 sm:$0xff]  }
0x1500   :  { %5773 = vtanh.f32 %v8123_v7 }
0x150a   :  { %v5774_v32 = vpop.eup %5773 }
0x150b   :  { %v8126_v50 = vmul.f32 %v5774_v32, %v5772_v57  ;;  %v8221_v57 = vld [vmem:[#allocation3 + $0x268] ss:$16 sps:$4 sm:$0xff]   ;;  %v8224_v32 = vld [vmem:[#allocation3 + $0x284] ss:$16 sps:$4 sm:$0xff]  }
0x150d   :  { %v4073_v22 = vpack.c.bf16 %v8126_v50, %v8126_v50 }
0x150f   :  { %4107 = vmatmul.mubr.bf16.vlgmr.msra.gmra.mrb[112].mxu0 %v4073_v22  ;;  %4148 = vmatmul.mubr.bf16.vlgmr.msra.gmra.mrb[144].mxu1 %v4073_v22  ;;  %v8227_v22 = vld [vmem:[#allocation3 + $0x28c] ss:$16 sps:$4 sm:$0xff]  }
0x1510   :  { %4187 = vmatpush1.bf16.msra.mxu0 %v7749_v16  ;;  %4228 = vmatpush1.bf16.msra.mxu1 %v7751_v26  ;;  %v8568_v16 = vld [vmem:[#allocation36_spill] sm:$0xff] }
0x1511   :  { %4188 = vmatprep.subr.bf16.mxu0 %v7757_v15  ;;  %4229 = vmatprep.subr.bf16.mxu1 %v7759_v53  ;;  %v3370_v26 = vadd.f32 %v8568_v16, %v7950_v63  ;;  %v8569_v15 = vld [vmem:[#allocation27_spill] sm:$0xff] }
0x1512   :  { %4218 = vmatprep.mubr.bf16.mxu0 %v8467_v60  ;;  %4259 = vmatprep.mubr.bf16.mxu1 %v8467_v60  ;;  %v3443_v53 = vadd.f32 %v8569_v15, %v7953_v1  ;;  %v8230_v16 = vld [vmem:[#allocation3 + $0x280] ss:$16 sps:$4 sm:$0xff]   ;;  %v8236_v15 = vld [vmem:[#allocation3 + $0x2a4] ss:$16 sps:$4 sm:$0xff]  }
0x1514   :  { %4189 = vmatpush1.bf16.msra.mxu0 %v7761_v61  ;;  %4230 = vmatpush1.bf16.msra.mxu1 %v7763_v43  ;;  %v8570_v61 = vld [vmem:[#allocation37_spill] sm:$0xff] }
0x1515   :  { %4190 = vmatprep.subr.bf16.mxu0 %v7769_v2  ;;  %4231 = vmatprep.subr.bf16.mxu1 %v7771_v4  ;;  %v3372_v43 = vadd.f32 %v8570_v61, %v7960_v8  ;;  %v8571_v2 = vld [vmem:[#allocation28_spill] sm:$0xff]  ;;  %v8242_v61 = vld [vmem:[#allocation3 + $0x2a0] ss:$16 sps:$4 sm:$0xff]  }
0x1516   :  { %v3445_v4 = vadd.f32 %v8571_v2, %v7963_v44  ;;  %v8248_v2 = vld [vmem:[#allocation3 + $0x2c4] ss:$16 sps:$4 sm:$0xff]  }
0x1518   :  { %4191 = vmatpush1.bf16.msra.mxu0 %v7773_v5  ;;  %4232 = vmatpush1.bf16.msra.mxu1 %v7775_v6 }
0x1519   :  { %4192 = vmatprep.subr.bf16.mxu0 %v7781_v9  ;;  %4233 = vmatprep.subr.bf16.mxu1 %v7783_v10 }
0x151c   :  { %4193 = vmatpush1.bf16.msra.mxu0 %v7785_v12  ;;  %4234 = vmatpush1.bf16.msra.mxu1 %v7787_v49 }
0x151d   :  { %4194 = vmatprep.subr.bf16.mxu0 %v7793_v41  ;;  %4235 = vmatprep.subr.bf16.mxu1 %v7795_v21 }
0x1520   :  { %4195 = vmatpush1.bf16.msra.mxu0 %v7797_v29  ;;  %4236 = vmatpush1.bf16.msra.mxu1 %v7799_v34 }
0x1521   :  { %4196 = vmatprep.subr.bf16.mxu0 %v7805_v19  ;;  %4237 = vmatprep.subr.bf16.mxu1 %v7807_v48 }
0x1524   :  { %4197 = vmatpush1.bf16.msra.mxu0 %v7809_v40  ;;  %4238 = vmatpush1.bf16.msra.mxu1 %v7811_v0 }
0x1525   :  { %4198 = vmatprep.subr.bf16.mxu0 %v7817_v47  ;;  %4239 = vmatprep.subr.bf16.mxu1 %v7819_v20 }
0x1528   :  { %4199 = vmatpush1.bf16.msra.mxu0 %v7821_v42  ;;  %4240 = vmatpush1.bf16.msra.mxu1 %v7823_v35 }
0x1529   :  { %4200 = vmatprep.subr.bf16.mxu0 %v7829_v23  ;;  %4241 = vmatprep.subr.bf16.mxu1 %v7831_v36 }
0x152c   :  { %4201 = vmatpush1.bf16.msra.mxu0 %v7833_v52  ;;  %4242 = vmatpush1.bf16.msra.mxu1 %v7835_v24 }
0x152d   :  { %4298 = vmatprep.subr.bf16.mxu0 %v7745_v11  ;;  %4339 = vmatprep.subr.bf16.mxu1 %v7747_v14 }
0x15e2   :  { %v4108_v5 = vpop.f32.mrb[112].mxu0  ;;  %v4149_v6 = vpop.f32.mrb[144].mxu1 }
0x15e3   :  { %v4156_v9 = vadd.f32 %v4108_v5, %v3370_v26  ;;  %v4158_v10 = vadd.f32 %v4149_v6, %v3443_v53  ;;  %v4110_v12 = vpop.f32.mrb[113].mxu0  ;;  %v4151_v11 = vpop.f32.mrb[145].mxu1  ;;  %v8233_v26 = vld [vmem:[#allocation3 + $0x288] ss:$16 sps:$4 sm:$0xff]   ;;  %v8239_v53 = vld [vmem:[#allocation3 + $0x2ac] ss:$16 sps:$4 sm:$0xff]  }
0x15e4   :  { %v4157_v49 = vadd.f32 %v4110_v12, %v3372_v43  ;;  %v4159_v14 = vadd.f32 %v4151_v11, %v3445_v4  ;;  %v4112_v41 = vpop.f32.mrb[114].mxu0  ;;  %v4153_v21 = vpop.f32.mrb[146].mxu1  ;;  %v8245_v43 = vld [vmem:[#allocation3 + $0x2a8] ss:$16 sps:$4 sm:$0xff]   ;;  %v8251_v4 = vld [vmem:[#allocation3 + $0x2cc] ss:$16 sps:$4 sm:$0xff]  }
0x15e5   :  { %v5100_v29 = vmul.f32 -1.442695, %v4156_v9  ;;  %v4113_v34 = vpop.f32.mrb[115].mxu0  ;;  %v4154_v19 = vpop.f32.mrb[147].mxu1  ;;  %v8254_v5 = vld [vmem:[#allocation3 + $0x2c0] ss:$16 sps:$4 sm:$0xff]  }
0x15e6   :  { %v5101_v48 = vmul.f32 -1.442695, %v4157_v49  ;;  %v5102_v40 = vmul.f32 -1.442695, %v4159_v14  ;;  %v8257_v6 = vld [vmem:[#allocation3 + $0x2c8] ss:$16 sps:$4 sm:$0xff]  }
0x15e7   :  { %5775 = vpow2.f32 %v5100_v29  ;;  %v8260_v9 = vld [vmem:[#allocation3 + $0x2e4] ss:$16 sps:$4 sm:$0xff]   ;;  %v8266_v12 = vld [vmem:[#allocation3 + $0x2e0] ss:$16 sps:$4 sm:$0xff]   ;;  %v8269_v11 = vld [vmem:[#allocation3 + $0x2e8] ss:$16 sps:$4 sm:$0xff]  }
0x15e8   :  { %5777 = vpow2.f32 %v5101_v48  ;;  %v5933_v49 = vld [vmem:[#allocation3 + $0x204] ss:$16 sps:$4 sm:$0xff]   ;;  %v5934_v14 = vld [vmem:[#allocation3 + $0x20c] ss:$16 sps:$4 sm:$0xff]  }
0x15e9   :  { %5779 = vpow2.f32 %v5102_v40  ;;  %v8572_v41 = vld [vmem:[#allocation38_spill] sm:$0xff]  ;;  %v8573_v29 = vld [vmem:[#allocation29_spill] sm:$0xff]  ;;  %v8574_v19 = vld [vmem:[#allocation39_spill] sm:$0xff] }
0x15ea   :  { %5781 = vtanh.f32 %v4158_v10  ;;  %v8263_v10 = vld [vmem:[#allocation3 + $0x2ec] ss:$16 sps:$4 sm:$0xff]   ;;  %v3374_v21 = vadd.f32 %v8572_v41, %v7950_v63  ;;  %v3447_v34 = vadd.f32 %v8573_v29, %v7953_v1  ;;  %v3376_v48 = vadd.f32 %v8574_v19, %v7960_v8  ;;  %v8575_v40 = vld [vmem:[#allocation30_spill] sm:$0xff] }
0x15f1   :  { %v5776_v0 = vpop.eup %5775 }
0x15f2   :  { %v5778_v47 = vpop.eup %5777  ;;  %v4163_v20 = vadd.f32 1.0, %v5776_v0  ;;  %v3449_v0 = vadd.f32 %v8575_v40, %v7963_v44 }
0x15f3   :  { %v4169_v42 = vadd.f32 1.0, %v5778_v47  ;;  %v5780_v35 = vpop.eup %5779 }
0x15f4   :  { %5783 = vrcp.f32 %v4163_v20  ;;  %v5782_v23 = vpop.eup %5781  ;;  %v4176_v51 = vadd.f32 1.0, %v5780_v35 }
0x15f5   :  { %5785 = vrcp.f32 %v4169_v42 }
0x15f6   :  { %5787 = vrcp.f32 %v4176_v51 }
0x15fe   :  { %v5784_v36 = vpop.eup %5783 }
0x15ff   :  { %v5786_v52 = vpop.eup %5785  ;;  %v4180_v24 = vmul.f32 %v5784_v36, %v5782_v23 }
0x1600   :  { %v4179_v31 = vmul.f32 %v5786_v52, %v8123_v7  ;;  %v5788_v56 = vpop.eup %5787  ;;  %v8218_v7 = vld [vmem:[#allocation3 + $0x260] ss:$16 sps:$4 sm:$0xff]  }
0x1602   :  { %v8173_v25 = vadd.f32 %v4180_v24, %v4179_v31 }
0x1604   :  { %5789 = vtanh.f32 %v8173_v25 }
0x160e   :  { %v5790_v33 = vpop.eup %5789 }
0x160f   :  { %v8176_v58 = vmul.f32 %v5790_v33, %v5788_v56 }
0x1611   :  { %v4185_v18 = vpack.c.bf16 %v8176_v58, %v8176_v58 }
0x1613   :  { %4219 = vmatmul.mubr.bf16.vlgmr.msra.gmra.mrb[116].mxu0 %v4185_v18  ;;  %4260 = vmatmul.mubr.bf16.vlgmr.msra.gmra.mrb[148].mxu1 %v4185_v18 }
0x1614   :  { %4299 = vmatpush1.bf16.msra.mxu0 %v8180_v27  ;;  %4340 = vmatpush1.bf16.msra.mxu1 %v8183_v28 }
0x1615   :  { %4300 = vmatprep.subr.bf16.mxu0 %v8186_v54  ;;  %4341 = vmatprep.subr.bf16.mxu1 %v8189_v3 }
0x1616   :  { %4330 = vmatprep.mubr.bf16.mxu0 %v8467_v60  ;;  %4371 = vmatprep.mubr.bf16.mxu1 %v8467_v60 }
0x1618   :  { %4301 = vmatpush1.bf16.msra.mxu0 %v8194_v62  ;;  %4342 = vmatpush1.bf16.msra.mxu1 %v8197_v30 }
0x1619   :  { %4302 = vmatprep.subr.bf16.mxu0 %v8200_v39  ;;  %4343 = vmatprep.subr.bf16.mxu1 %v8203_v37 }
0x161c   :  { %4303 = vmatpush1.bf16.msra.mxu0 %v8206_v13  ;;  %4344 = vmatpush1.bf16.msra.mxu1 %v8209_v38 }
0x161d   :  { %4304 = vmatprep.subr.bf16.mxu0 %v8212_v55  ;;  %4345 = vmatprep.subr.bf16.mxu1 %v8215_v45 }
0x1620   :  { %4305 = vmatpush1.bf16.msra.mxu0 %v8218_v7  ;;  %4346 = vmatpush1.bf16.msra.mxu1 %v8221_v57 }
0x1621   :  { %4306 = vmatprep.subr.bf16.mxu0 %v8224_v32  ;;  %4347 = vmatprep.subr.bf16.mxu1 %v8227_v22 }
0x1624   :  { %4307 = vmatpush1.bf16.msra.mxu0 %v8230_v16  ;;  %4348 = vmatpush1.bf16.msra.mxu1 %v8233_v26 }
0x1625   :  { %4308 = vmatprep.subr.bf16.mxu0 %v8236_v15  ;;  %4349 = vmatprep.subr.bf16.mxu1 %v8239_v53 }
0x1628   :  { %4309 = vmatpush1.bf16.msra.mxu0 %v8242_v61  ;;  %4350 = vmatpush1.bf16.msra.mxu1 %v8245_v43 }
0x1629   :  { %4310 = vmatprep.subr.bf16.mxu0 %v8248_v2  ;;  %4351 = vmatprep.subr.bf16.mxu1 %v8251_v4 }
0x162c   :  { %4311 = vmatpush1.bf16.msra.mxu0 %v8254_v5  ;;  %4352 = vmatpush1.bf16.msra.mxu1 %v8257_v6 }
0x162d   :  { %4312 = vmatprep.subr.bf16.mxu0 %v8260_v9  ;;  %4353 = vmatprep.subr.bf16.mxu1 %v8263_v10 }
0x1630   :  { %4313 = vmatpush1.bf16.msra.mxu0 %v8266_v12  ;;  %4354 = vmatpush1.bf16.msra.mxu1 %v8269_v11 }
0x1631   :  { %4410 = vmatprep.subr.bf16.mxu0 %v5933_v49  ;;  %4451 = vmatprep.subr.bf16.mxu1 %v5934_v14 }
0x16e6   :  { %v4220_v47 = vpop.f32.mrb[116].mxu0  ;;  %v4261_v20 = vpop.f32.mrb[148].mxu1 }
0x16e7   :  { %v4268_v42 = vadd.f32 %v4220_v47, %v3374_v21  ;;  %v4270_v35 = vadd.f32 %v4261_v20, %v3447_v34  ;;  %v4222_v23 = vpop.f32.mrb[117].mxu0  ;;  %v4263_v36 = vpop.f32.mrb[149].mxu1 }
0x16e8   :  { %v4269_v52 = vadd.f32 %v4222_v23, %v3376_v48  ;;  %v4271_v24 = vadd.f32 %v4263_v36, %v3449_v0  ;;  %v4224_v51 = vpop.f32.mrb[118].mxu0  ;;  %v4265_v31 = vpop.f32.mrb[150].mxu1 }
0x16e9   :  { %v5103_v56 = vmul.f32 -1.442695, %v4268_v42  ;;  %v4225_v33 = vpop.f32.mrb[119].mxu0  ;;  %v4266_v18 = vpop.f32.mrb[151].mxu1 }
0x16ea   :  { %v5104_v49 = vmul.f32 -1.442695, %v4269_v52  ;;  %v5105_v14 = vmul.f32 -1.442695, %v4271_v24 }
0x16eb   :  { %5791 = vpow2.f32 %v5103_v56 }
0x16ec   :  { %5793 = vpow2.f32 %v5104_v49 }
0x16ed   :  { %5795 = vpow2.f32 %v5105_v14 }
0x16ee   :  { %5797 = vtanh.f32 %v4270_v35 }
0x16f5   :  { %v5792_v41 = vpop.eup %5791 }
0x16f6   :  { %v5794_v29 = vpop.eup %5793  ;;  %v4275_v19 = vadd.f32 1.0, %v5792_v41 }
0x16f7   :  { %v4281_v21 = vadd.f32 1.0, %v5794_v29  ;;  %v5796_v34 = vpop.eup %5795  ;;  %v5431_v29 = vld [vmem:[#allocation11] ss:$8 sps:$4 sm:$0xff]  }
0x16f8   :  { %5799 = vrcp.f32 %v4275_v19  ;;  %v5798_v48 = vpop.eup %5797  ;;  %v4288_v20 = vadd.f32 1.0, %v5796_v34  ;;  %v5434_v34 = vld [vmem:[#allocation11 + $0x10] ss:$8 sps:$4 sm:$0xff]  }
0x16f9   :  { %5801 = vrcp.f32 %v4281_v21  ;;  %v5436_v21 = vld [vmem:[#allocation11 + $0x14] ss:$8 sps:$4 sm:$0xff]  }
0x16fa   :  { %5803 = vrcp.f32 %v4288_v20  ;;  %v5445_v20 = vld [vmem:[#allocation11 + $0x44] ss:$8 sps:$4 sm:$0xff]  }
0x1702   :  { %v5800_v40 = vpop.eup %5799 }
0x1703   :  { %v5802_v0 = vpop.eup %5801  ;;  %v4292_v47 = vmul.f32 %v5800_v40, %v5798_v48  ;;  %v5439_v48 = vld [vmem:[#allocation11 + $0x24] ss:$8 sps:$4 sm:$0xff]   ;;  %v5437_v40 = vld [vmem:[#allocation11 + $0x20] ss:$8 sps:$4 sm:$0xff]  }
0x1704   :  { %v4291_v42 = vmul.f32 %v5802_v0, %v8173_v25  ;;  %v5804_v36 = vpop.eup %5803  ;;  %v5433_v25 = vld [vmem:[#allocation11 + $0x4] ss:$8 sps:$4 sm:$0xff]   ;;  %v5442_v0 = vld [vmem:[#allocation11 + $0x34] ss:$8 sps:$4 sm:$0xff]  }
0x1706   :  { %v8281_v23 = vadd.f32 %v4292_v47, %v4291_v42  ;;  %v5440_v47 = vld [vmem:[#allocation11 + $0x30] ss:$8 sps:$4 sm:$0xff]   ;;  %v5443_v42 = vld [vmem:[#allocation11 + $0x40] ss:$8 sps:$4 sm:$0xff]  }
0x1708   :  { %5805 = vtanh.f32 %v8281_v23 }
0x1712   :  { %v5806_v52 = vpop.eup %5805 }
0x1713   :  { %v8284_v24 = vmul.f32 %v5806_v52, %v5804_v36  ;;  %v5446_v36 = vld [vmem:[#allocation11 + $0x50] ss:$8 sps:$4 sm:$0xff]   ;;  %v5451_v52 = vld [vmem:[#allocation11 + $0x64] ss:$8 sps:$4 sm:$0xff]  }
0x1715   :  { %v4297_v35 = vpack.c.bf16 %v8284_v24, %v8284_v24 }
0x1717   :  { %4331 = vmatmul.mubr.bf16.vlgmr.msra.gmra.mrb[120].mxu0 %v4297_v35  ;;  %4372 = vmatmul.mubr.bf16.vlgmr.msra.gmra.mrb[152].mxu1 %v4297_v35  ;;  %v5449_v35 = vld [vmem:[#allocation11 + $0x60] ss:$8 sps:$4 sm:$0xff]  }
0x1718   :  { %4411 = vmatpush1.bf16.msra.mxu0 %v8180_v27  ;;  %4452 = vmatpush1.bf16.msra.mxu1 %v8183_v28  ;;  %v8576_v27 = vld [vmem:[#allocation40_spill] sm:$0xff] }
0x1719   :  { %4412 = vmatprep.subr.bf16.mxu0 %v8186_v54  ;;  %4453 = vmatprep.subr.bf16.mxu1 %v8189_v3  ;;  %v3380_v28 = vadd.f32 %v8576_v27, %v7950_v63  ;;  %v8577_v54 = vld [vmem:[#allocation41_spill] sm:$0xff] }
0x171a   :  { %4442 = vmatprep.mubr.bf16.mxu0 %v8467_v60  ;;  %4483 = vmatprep.mubr.bf16.mxu1 %v8467_v60  ;;  %v3453_v3 = vadd.f32 %v8577_v54, %v7953_v1  ;;  %v5452_v27 = vld [vmem:[#allocation11 + $0x70] ss:$8 sps:$4 sm:$0xff]   ;;  %v4534_v54 = vpack.c.bf16 %v8126_v50, %v8076_v46  ;;  %v8583_v46 = vld [vmem:[#allocation47_spill] sm:$0xff] }
0x171b   :  { %v3459_v50 = vadd.f32 %v8583_v46, %v7963_v44 }
0x171c   :  { %4413 = vmatpush1.bf16.msra.mxu0 %v8194_v62  ;;  %4454 = vmatpush1.bf16.msra.mxu1 %v8197_v30  ;;  %v8578_v62 = vld [vmem:[#allocation42_spill] sm:$0xff] }
0x171d   :  { %4414 = vmatprep.subr.bf16.mxu0 %v8200_v39  ;;  %4455 = vmatprep.subr.bf16.mxu1 %v8203_v37  ;;  %v3382_v30 = vadd.f32 %v8578_v62, %v7960_v8  ;;  %v8579_v39 = vld [vmem:[#allocation43_spill] sm:$0xff]  ;;  %v8580_v62 = vld [vmem:[#allocation44_spill] sm:$0xff] }
0x171e   :  { %v3455_v37 = vadd.f32 %v8579_v39, %v7963_v44  ;;  %v8582_v39 = vld [vmem:[#allocation46_spill] sm:$0xff] }
0x1720   :  { %4415 = vmatpush1.bf16.msra.mxu0 %v8206_v13  ;;  %4456 = vmatpush1.bf16.msra.mxu1 %v8209_v38 }
0x1721   :  { %4416 = vmatprep.subr.bf16.mxu0 %v8212_v55  ;;  %4457 = vmatprep.subr.bf16.mxu1 %v8215_v45 }
0x1724   :  { %4417 = vmatpush1.bf16.msra.mxu0 %v8218_v7  ;;  %4458 = vmatpush1.bf16.msra.mxu1 %v8221_v57 }
0x1725   :  { %4418 = vmatprep.subr.bf16.mxu0 %v8224_v32  ;;  %4459 = vmatprep.subr.bf16.mxu1 %v8227_v22 }
0x1728   :  { %4419 = vmatpush1.bf16.msra.mxu0 %v8230_v16  ;;  %4460 = vmatpush1.bf16.msra.mxu1 %v8233_v26 }
0x1729   :  { %4420 = vmatprep.subr.bf16.mxu0 %v8236_v15  ;;  %4461 = vmatprep.subr.bf16.mxu1 %v8239_v53 }
0x172c   :  { %4421 = vmatpush1.bf16.msra.mxu0 %v8242_v61  ;;  %4462 = vmatpush1.bf16.msra.mxu1 %v8245_v43 }
0x172d   :  { %4422 = vmatprep.subr.bf16.mxu0 %v8248_v2  ;;  %4463 = vmatprep.subr.bf16.mxu1 %v8251_v4 }
0x1730   :  { %4423 = vmatpush1.bf16.msra.mxu0 %v8254_v5  ;;  %4464 = vmatpush1.bf16.msra.mxu1 %v8257_v6 }
0x1731   :  { %4424 = vmatprep.subr.bf16.mxu0 %v8260_v9  ;;  %4465 = vmatprep.subr.bf16.mxu1 %v8263_v10 }
0x1734   :  { %4425 = vmatpush1.bf16.msra.mxu0 %v8266_v12  ;;  %4466 = vmatpush1.bf16.msra.mxu1 %v8269_v11 }
0x1735   :  { %4645 = vmatprep.subr.bf16.mxu0 %v5433_v25  ;;  %v5454_v25 = vld [vmem:[#allocation11 + $0x74] ss:$8 sps:$4 sm:$0xff]  }
0x17ea   :  { %v4332_v13 = vpop.f32.mrb[120].mxu0  ;;  %v4373_v38 = vpop.f32.mrb[152].mxu1 }
0x17eb   :  { %v4380_v55 = vadd.f32 %v4332_v13, %v3380_v28  ;;  %v4382_v45 = vadd.f32 %v4373_v38, %v3453_v3  ;;  %v4334_v7 = vpop.f32.mrb[121].mxu0  ;;  %v4375_v57 = vpop.f32.mrb[153].mxu1  ;;  %v4533_v28 = vpack.c.bf16 %v8026_v17, %v7976_v59  ;;  %v4535_v3 = vpack.c.bf16 %v8284_v24, %v8176_v58  ;;  %v8581_v59 = vld [vmem:[#allocation45_spill] sm:$0xff] }
0x17ec   :  { %v4381_v32 = vadd.f32 %v4334_v7, %v3382_v30  ;;  %v4383_v22 = vadd.f32 %v4375_v57, %v3455_v37  ;;  %v4336_v16 = vpop.f32.mrb[122].mxu0  ;;  %v4377_v26 = vpop.f32.mrb[154].mxu1  ;;  %v3384_v30 = vadd.f32 %v8580_v62, %v7950_v63  ;;  %v3457_v17 = vadd.f32 %v8581_v59, %v7953_v1 }
0x17ed   :  { %v5106_v15 = vmul.f32 -1.442695, %v4380_v55  ;;  %v4337_v53 = vpop.f32.mrb[123].mxu0  ;;  %v4378_v61 = vpop.f32.mrb[155].mxu1  ;;  %v3386_v37 = vadd.f32 %v8582_v39, %v7960_v8 }
0x17ee   :  { %v5107_v43 = vmul.f32 -1.442695, %v4381_v32  ;;  %v5108_v2 = vmul.f32 -1.442695, %v4383_v22 }
0x17ef   :  { %5807 = vpow2.f32 %v5106_v15 }
0x17f0   :  { %5809 = vpow2.f32 %v5107_v43  ;;  %v4553_v43 = vld [vmem:[%s8433_s7] sm:$0x3]  ;;  %s6133_s7 = smov [#allocation13]  }
0x17f1   :  { %5811 = vpow2.f32 %v5108_v2  ;;  %s4751_s11 = sshll.u32 %s6133_s7, 4  ;;  %s4752_s11 = int_to_ptr.vmem [resolvable:$true] %s4751_s11 }
0x17f2   :  { %5813 = vtanh.f32 %v4382_v45  ;;  %s6045_s12 = scalar_lea.vmem %s4752_s11, 384  ;;  %p6050_p13 = scmp.lt.s32.totalorder %s4752_s11, %s4752_s11 }
0x17f3   :  { %p6046_p12 = scmp.ne.s32.totalorder %s4752_s11, %s6045_s12  ;;  %p6051_p0 = scmp.lt.s32.totalorder %s6045_s12, %s6045_s12 }
0x17f5   :  { %p6052_p1 = por %p6051_p0, %p6050_p13 }
0x17f7   :  { %p6053_p2 = pnand %p6052_p1, %p6046_p12 }
0x17f9   :  { %v5808_v4 = vpop.eup %5807 }
0x17fa   :  { %v5810_v5 = vpop.eup %5809  ;;  %v4387_v6 = vadd.f32 1.0, %v5808_v4 }
0x17fb   :  { %v4393_v9 = vadd.f32 1.0, %v5810_v5  ;;  %v5812_v10 = vpop.eup %5811 }
0x17fc   :  { %5815 = vrcp.f32 %v4387_v6  ;;  %v5814_v12 = vpop.eup %5813  ;;  %v4400_v56 = vadd.f32 1.0, %v5812_v10  ;;  %v8584_v10 = vld [vmem:[#allocation21_spill] sm:$0xff] }
0x17fd   :  { %5817 = vrcp.f32 %v4393_v9 }
0x17fe   :  { %5819 = vrcp.f32 %v4400_v56 }
0x1806   :  { %v5816_v11 = vpop.eup %5815 }
0x1807   :  { %v5818_v51 = vpop.eup %5817  ;;  %v4404_v31 = vmul.f32 %v5816_v11, %v5814_v12  ;;  %v8358_v12 = vrot.slane %v4553_v43, %v8584_v10 }
0x1808   :  { %v4403_v33 = vmul.f32 %v5818_v51, %v8281_v23  ;;  %v5820_v49 = vpop.eup %5819  ;;  %v5448_v23 = vld [vmem:[#allocation11 + $0x54] ss:$8 sps:$4 sm:$0xff]  }
0x1809   :  { %v8585_v51 = vld [vmem:[#allocation22_spill] sm:$0xff] }
0x180a   :  { %v8329_v18 = vadd.f32 %v4404_v31, %v4403_v33  ;;  %v8362_v31 = vrot.slane %v4553_v43, %v8585_v51 }
0x180c   :  { %5821 = vtanh.f32 %v8329_v18 }
0x1816   :  { %v5822_v14 = vpop.eup %5821 }
0x1817   :  { %v8332_v41 = vmul.f32 %v5822_v14, %v5820_v49 }
0x1819   :  { %v4409_v19 = vpack.c.bf16 %v8332_v41, %v8332_v41 }
0x181b   :  { %4443 = vmatmul.mubr.bf16.vlgmr.msra.gmra.mrb[124].mxu0 %v4409_v19  ;;  %4484 = vmatmul.mubr.bf16.vlgmr.msra.gmra.mrb[156].mxu1 %v4409_v19 }
0x181c   :  { %4646 = vmatpush1.bf16.msra.mxu0 %v5431_v29  ;;  %4677 = vmatprep.mubr.bf16.mxu0 %v8467_v60 }
0x181d   :  { %4647 = vmatprep.subr.bf16.mxu0 %v5436_v21 }
0x1820   :  { %4648 = vmatpush1.bf16.msra.mxu0 %v5434_v34 }
0x1821   :  { %4649 = vmatprep.subr.bf16.mxu0 %v5439_v48 }
0x1824   :  { %4650 = vmatpush1.bf16.msra.mxu0 %v5437_v40 }
0x1825   :  { %4651 = vmatprep.subr.bf16.mxu0 %v5442_v0 }
0x1828   :  { %4652 = vmatpush1.bf16.msra.mxu0 %v5440_v47 }
0x1829   :  { %4653 = vmatprep.subr.bf16.mxu0 %v5445_v20 }
0x182c   :  { %4654 = vmatpush1.bf16.msra.mxu0 %v5443_v42 }
0x182d   :  { %4655 = vmatprep.subr.bf16.mxu0 %v5448_v23 }
0x1830   :  { %4656 = vmatpush1.bf16.msra.mxu0 %v5446_v36 }
0x1831   :  { %4657 = vmatprep.subr.bf16.mxu0 %v5451_v52 }
0x1834   :  { %4658 = vmatpush1.bf16.msra.mxu0 %v5449_v35 }
0x1835   :  { %4659 = vmatprep.subr.bf16.mxu0 %v5454_v25 }
0x1838   :  { %4660 = vmatpush1.bf16.msra.mxu0 %v5452_v27 }
0x183b   :  { %4678 = vmatmul.mubr.bf16.vlgmr.msra.gmra.mrb[128].mxu0 %v4533_v28 }
0x183c   :  { %4687 = vmatprep.mubr.bf16.mxu0 %v8467_v60 }
0x1843   :  { %4688 = vmatmul.mubr.bf16.gmra.mrb[132].mxu0 %v4534_v54 }
0x1844   :  { %4697 = vmatprep.mubr.bf16.mxu0 %v8467_v60 }
0x184b   :  { %4698 = vmatmul.mubr.bf16.gmra.mrb[136].mxu0 %v4535_v3 }
0x184c   :  { %4707 = vmatprep.mubr.bf16.mxu0 %v8467_v60 }
0x18ee   :  { %v4444_v13 = vpop.f32.mrb[124].mxu0  ;;  %v4485_v38 = vpop.f32.mrb[156].mxu1 }
0x18ef   :  { %v4492_v55 = vadd.f32 %v4444_v13, %v3384_v30  ;;  %v4494_v45 = vadd.f32 %v4485_v38, %v3457_v17  ;;  %v4446_v58 = vpop.f32.mrb[125].mxu0  ;;  %v4487_v24 = vpop.f32.mrb[157].mxu1 }
0x18f0   :  { %v4493_v7 = vadd.f32 %v4446_v58, %v3386_v37  ;;  %v4495_v60 = vadd.f32 %v4487_v24, %v3459_v50  ;;  %v4448_v57 = vpop.f32.mrb[126].mxu0  ;;  %v4489_v32 = vpop.f32.mrb[158].mxu1 }
0x18f1   :  { %v5109_v63 = vmul.f32 -1.442695, %v4492_v55  ;;  %v4449_v22 = vpop.f32.mrb[127].mxu0  ;;  %v4490_v16 = vpop.f32.mrb[159].mxu1 }
0x18f2   :  { %v5110_v1 = vmul.f32 -1.442695, %v4493_v7  ;;  %v5111_v8 = vmul.f32 -1.442695, %v4495_v60 }
0x18f3   :  { %5823 = vpow2.f32 %v5109_v63 }
0x18f4   :  { %5825 = vpow2.f32 %v5110_v1 }
0x18f5   :  { %5827 = vpow2.f32 %v5111_v8 }
0x18f6   :  { %5829 = vtanh.f32 %v4494_v45 }
0x18fd   :  { %v5824_v26 = vpop.eup %5823 }
0x18fe   :  { %v5826_v15 = vpop.eup %5825  ;;  %v4499_v44 = vadd.f32 1.0, %v5824_v26 }
0x18ff   :  { %v4505_v53 = vadd.f32 1.0, %v5826_v15  ;;  %v5828_v61 = vpop.eup %5827 }
0x1900   :  { %5831 = vrcp.f32 %v4499_v44  ;;  %v5830_v2 = vpop.eup %5829  ;;  %v4512_v9 = vadd.f32 1.0, %v5828_v61 }
0x1901   :  { %5833 = vrcp.f32 %v4505_v53 }
0x1902   :  { %5835 = vrcp.f32 %v4512_v9 }
0x190a   :  { %v5832_v4 = vpop.eup %5831 }
0x190b   :  { %v5834_v5 = vpop.eup %5833  ;;  %v4516_v6 = vmul.f32 %v5832_v4, %v5830_v2 }
0x190c   :  { %v4515_v11 = vmul.f32 %v5834_v5, %v8329_v18  ;;  %v5836_v42 = vpop.eup %5835 }
0x190e   :  { %v4517_v56 = vadd.f32 %v4516_v6, %v4515_v11  ;;  %v4679_v33 = vpop.f32.mrb[128].mxu0 }
0x190f   :  { %v4680_v49 = vadd.f32 %v4679_v33, %v8358_v12  ;;  %v4681_v14 = vpop.f32.mrb[129].mxu0 }
0x1910   :  { %4524 = vst [vmem:[#allocation15 + $0x10] sm:$0xff] %v4517_v56  ;;  %v4682_v29 = vadd.f32 %v4681_v14, %v8362_v31  ;;  %v4683_v19 = vpop.f32.mrb[130].mxu0  ;;  %5837 = vtanh.f32 %v4517_v56 }
0x1911   :  { %4718 = vst [vmem:[#allocation12] sm:$0xff] %v4680_v49  ;;  %v4684_v21 = vadd.f32 %v4683_v19, %v8358_v12  ;;  %v4685_v34 = vpop.f32.mrb[131].mxu0 }
0x1912   :  { %4719 = vst [vmem:[#allocation12 + $0x8] sm:$0xff] %v4682_v29  ;;  %v4686_v18 = vadd.f32 %v4685_v34, %v8362_v31 }
0x1913   :  { %4720 = vst [vmem:[#allocation12 + $0x10] sm:$0xff] %v4684_v21 }
0x1914   :  { %4721 = vst [vmem:[#allocation12 + $0x18] sm:$0xff] %v4686_v18 }
0x1916   :  { %v4689_v48 = vpop.f32.mrb[132].mxu0 }
0x1917   :  { %v4690_v40 = vadd.f32 %v4689_v48, %v8358_v12  ;;  %v4691_v0 = vpop.f32.mrb[133].mxu0 }
0x1918   :  { %v4692_v47 = vadd.f32 %v4691_v0, %v8362_v31  ;;  %v4693_v20 = vpop.f32.mrb[134].mxu0 }
0x1919   :  { %4722 = vst [vmem:[#allocation12 + $0x20] sm:$0xff] %v4690_v40  ;;  %v4694_v23 = vadd.f32 %v4693_v20, %v8358_v12  ;;  %v4695_v36 = vpop.f32.mrb[135].mxu0 }
0x191a   :  { %v5838_v52 = vpop.eup %5837  ;;  %4723 = vst [vmem:[#allocation12 + $0x28] sm:$0xff] %v4692_v47  ;;  %v4696_v35 = vadd.f32 %v4695_v36, %v8362_v31 }
0x191b   :  { %4724 = vst [vmem:[#allocation12 + $0x30] sm:$0xff] %v4694_v23  ;;  %v4519_v25 = vmul.f32 %v5838_v52, %v5836_v42 }
0x191c   :  { %4725 = vst [vmem:[#allocation12 + $0x38] sm:$0xff] %v4696_v35 }
0x191d   :  { %v4536_v27 = vpack.c.bf16 %v4519_v25, %v8332_v41  ;;  %4522 = vst [vmem:[#allocation13 + $0x10] sm:$0xff] %v4519_v25 }
0x191e   :  { %v4699_v28 = vpop.f32.mrb[136].mxu0 }
0x191f   :  { %v4700_v54 = vadd.f32 %v4699_v28, %v8358_v12  ;;  %v4701_v3 = vpop.f32.mrb[137].mxu0  ;;  %4708 = vmatmul.mubr.bf16.gmra.mrb[140].mxu0 %v4536_v27 }
0x1920   :  { %v4702_v62 = vadd.f32 %v4701_v3, %v8362_v31  ;;  %v4703_v30 = vpop.f32.mrb[138].mxu0 }
0x1921   :  { %4726 = vst [vmem:[#allocation12 + $0x40] sm:$0xff] %v4700_v54  ;;  %v4704_v59 = vadd.f32 %v4703_v30, %v8358_v12  ;;  %v4705_v17 = vpop.f32.mrb[139].mxu0 }
0x1922   :  { %4727 = vst [vmem:[#allocation12 + $0x48] sm:$0xff] %v4702_v62  ;;  %v4706_v39 = vadd.f32 %v4705_v17, %v8362_v31 }
0x1923   :  { %4728 = vst [vmem:[#allocation12 + $0x50] sm:$0xff] %v4704_v59 }
0x1924   :  { %4729 = vst [vmem:[#allocation12 + $0x58] sm:$0xff] %v4706_v39 }
0x1925   :  { %6056 = shalt.err (!%p6053_p2)
}
0x1926   :  { %s6057_s17 = scalar_lea.hbm %s8435_s9, 384 }
0x1927   :  { %p6058_p3 = scmp.ne.s32.totalorder %s8435_s9, %s6057_s17  ;;  %p6061_p4 = scmp.lt.u32.totalorder %s6057_s17, %s8435_s9 }
0x1929   :  { %p6063_p5 = pnand %p6061_p4, %p6058_p3 }
0x192b   :  { %6066 = shalt.err (!%p6063_p5)
}
0x192c   :  { %4757 = dma.vmem_to_hbm [thread:$0]  %s4752_s11, 384, %s8435_s9, [#allocation14], %s6126_s14, %s6126_s14, %s6127_s19  }
0x192d   :  { %s6134_s23 = smov [#allocation15]  }
0x192e   :  { %s4763_s6 = sshll.u32 %s6134_s23, 4  ;;  %s4764_s6 = int_to_ptr.vmem [resolvable:$true] %s4763_s6 }
0x192f   :  { %s6067_s18 = scalar_lea.vmem %s4764_s6, 384  ;;  %p6072_p7 = scmp.lt.s32.totalorder %s4764_s6, %s4764_s6 }
0x1930   :  { %p6068_p6 = scmp.ne.s32.totalorder %s4764_s6, %s6067_s18  ;;  %p6073_p8 = scmp.lt.s32.totalorder %s6067_s18, %s6067_s18 }
0x1932   :  { %p6074_p9 = por %p6073_p8, %p6072_p7 }
0x1934   :  { %p6075_p10 = pnand %p6074_p9, %p6068_p6 }
0x1936   :  { %6078 = shalt.err (!%p6075_p10)
}
0x1937   :  { %s6079_s2 = scalar_lea.hbm %s8436_s10, 384 }
0x1938   :  { %p6080_p11 = scmp.ne.s32.totalorder %s8436_s10, %s6079_s2  ;;  %p6083_p12 = scmp.lt.u32.totalorder %s6079_s2, %s8436_s10 }
0x193a   :  { %p6085_p13 = pnand %p6083_p12, %p6080_p11 }
0x193c   :  { %6088 = shalt.err (!%p6085_p13)
}
0x193d   :  { %4769 = dma.vmem_to_hbm [thread:$0]  %s4764_s6, 384, %s8436_s10, [#allocation14], %s6126_s14, %s6126_s14, %s6127_s19  }
0x193e   :  { %s6135_s0 = smov [#allocation12]  }
0x193f   :  { %s4739_s7 = sshll.u32 %s6135_s0, 4  ;;  %s4740_s7 = int_to_ptr.vmem [resolvable:$true] %s4739_s7 }
0x1940   :  { %s6089_s10 = scalar_lea.vmem %s4740_s7, 2048  ;;  %p6094_p1 = scmp.lt.s32.totalorder %s4740_s7, %s4740_s7 }
0x1941   :  { %p6090_p0 = scmp.ne.s32.totalorder %s4740_s7, %s6089_s10  ;;  %p6095_p2 = scmp.lt.s32.totalorder %s6089_s10, %s6089_s10 }
0x1943   :  { %p6096_p3 = por %p6095_p2, %p6094_p1 }
0x1945   :  { %p6097_p4 = pnand %p6096_p3, %p6090_p0 }
0x19f2   :  { %v4709_v41 = vpop.f32.mrb[140].mxu0 }
0x19f3   :  { %v4710_v37 = vadd.f32 %v4709_v41, %v8358_v12  ;;  %v4711_v46 = vpop.f32.mrb[141].mxu0 }
0x19f4   :  { %v4712_v50 = vadd.f32 %v4711_v46, %v8362_v31  ;;  %v4713_v13 = vpop.f32.mrb[142].mxu0 }
0x19f5   :  { %4730 = vst [vmem:[#allocation12 + $0x60] sm:$0xff] %v4710_v37  ;;  %v4714_v38 = vadd.f32 %v4713_v13, %v8358_v12  ;;  %v4715_v55 = vpop.f32.mrb[143].mxu0 }
0x19f6   :  { %4731 = vst [vmem:[#allocation12 + $0x68] sm:$0xff] %v4712_v50  ;;  %v4716_v45 = vadd.f32 %v4715_v55, %v8362_v31 }
0x19f7   :  { %4732 = vst [vmem:[#allocation12 + $0x70] sm:$0xff] %v4714_v38 }
0x19f8   :  { %4733 = vst [vmem:[#allocation12 + $0x78] sm:$0xff] %v4716_v45 }
0x19f9   :  { %6100 = shalt.err (!%p6097_p4)
}
0x19fa   :  { %s6101_s11 = scalar_lea.hbm %s8434_s8, 2048 }
0x19fb   :  { %p6102_p5 = scmp.ne.s32.totalorder %s8434_s8, %s6101_s11  ;;  %p6105_p6 = scmp.lt.u32.totalorder %s6101_s11, %s8434_s8 }
0x19fd   :  { %p6107_p7 = pnand %p6105_p6, %p6102_p5 }
0x19ff   :  { %6110 = shalt.err (!%p6107_p7)
}
0x1a00   :  { %4745 = dma.vmem_to_hbm [thread:$0]  %s4740_s7, 2048, %s8434_s8, [#allocation5], %s6128_s5, %s6128_s5, %s6129_s28  }
0x1a01   :  { %6117 = dma.done.wait [#allocation5], 2048  }
0x1a02   :  { %6118 = vsyncadd [#allocation5], 4294965248 }
0x1a03   :  { %6119 = dma.done.wait [#allocation14], 768  }
0x1a04   :  { %6120 = vsyncadd [#allocation14], 4294966528 }
0x1a05   :  { %4779 = vsyncpa [#allocation4], 1 }
0x1a06   :  { %4780 = vsyncpa [#allocation7], 1 }
0x1a07   :  { %4781 = vsyncpa [#allocation10], 1 }
0x1a08   :  { %4782 = vsyncpa [#allocation5], 1 }
0x1a09   :  { %4783 = vsyncpa [#allocation14], 1 }

</bundles_post_ra>
